<compile_context>
chip_gen: v7x
topology: tpu7x:2x2x1
jax: 0.10.0
libtpu: 0.0.40
codegen_flags: <defaults>
</compile_context>

<pallas_src>
import functools

import jax
import jax.numpy as jnp
import numpy as np
from jax.experimental import pallas as pl
from jax.experimental.pallas import tpu as pltpu  # noqa: F401  (kept for parity)

EPS = 1e-5                       # PyTorch BatchNorm1d default eps
KSIZE = 5                        # Conv1d kernel_size (padding = 2)
CONV_CHANNELS = (32, 32, 64, 128)
FC_FEATURES = (256, 128, 64)
ATT_HIDDEN = 64
POOL_STAGES = len(CONV_CHANNELS)           # each conv block halves the sequence


# ---------------------------------------------------------------------------
# In-kernel building blocks (pure jnp on VMEM-resident values).
# ---------------------------------------------------------------------------
def _conv_block(h, w_ref, b_ref, shift_ref, pool_ref):
    """Conv1d(k=5, pad=2) + folded-BN bias + ReLU + MaxPool1d(2, 2).

    `h` is (batch*l_cur, Cin), batch-major rows.  The four off-center conv taps
    are host-precomputed 0/1 shift matrices (cross-sequence zero padding baked
    in); the pool pair gather (and, for the last layer, the time-major row
    permutation) are host-precomputed selection matrices.  Everything in here
    is dot / max: no in-kernel mask construction.
    """
    acc = b_ref[...] + jnp.dot(h, w_ref[KSIZE // 2],
                               preferred_element_type=jnp.float32)
    tap_idx = 0
    for k in range(KSIZE):
        d = k - KSIZE // 2
        if d == 0:
            continue
        tap = jnp.dot(shift_ref[tap_idx], h, preferred_element_type=jnp.float32)
        acc = acc + jnp.dot(tap, w_ref[k], preferred_element_type=jnp.float32)
        tap_idx += 1
    y = jnp.maximum(acc, 0.0)                               # BN folded into (w, b)
    # MaxPool1d(2, 2): gather both members of each pair, take the max.
    return jnp.maximum(
        jnp.dot(pool_ref[0], y, preferred_element_type=jnp.float32),
        jnp.dot(pool_ref[1], y, preferred_element_type=jnp.float32))


def _gru_step(gx, h, whh_ref, bhh_ref):
    """One GRU cell update (PyTorch gate order r, z, n) with per-gate weights.

    gx = [gx_r, gx_z, gx_n] are the (B, H) pre-computed input projections for
    this timestep, so the recurrent critical path has no lane-range extracts.
    """
    gh_r = jnp.dot(h, whh_ref[0], preferred_element_type=jnp.float32) + bhh_ref[0]
    gh_z = jnp.dot(h, whh_ref[1], preferred_element_type=jnp.float32) + bhh_ref[1]
    gh_n = jnp.dot(h, whh_ref[2], preferred_element_type=jnp.float32) + bhh_ref[2]
    r = jax.nn.sigmoid(gx[0] + gh_r)
    z = jax.nn.sigmoid(gx[1] + gh_z)
    n = jnp.tanh(gx[2] + r * gh_n)                          # b_hn inside the r-gate
    return (1.0 - z) * n + z * h


# ---------------------------------------------------------------------------
# The fused forward kernel (single pallas_call for the whole network).
# ---------------------------------------------------------------------------
def _fused_forward_kernel(
        x_ref,
        sh1, pool1, sh2, pool2, sh3, pool3, sh4, pool4,
        c1w, c1b, c2w, c2b, c3w, c3b, c4w, c4b,
        wih, bih, whh_f, bhh_f, whh_b, bhh_b,
        aw1, ab1, aw2, ab2,
        f1w, f1b, f2w, f2b, f3w, f3b, fow, fob,
        o_ref, *, batch, hidden, n_time):
    B, H, T = batch, hidden, n_time

    # ---- conv stack: 4 x (conv + folded BN + ReLU + maxpool), all in VMEM ----
    h = _conv_block(x_ref[...], c1w, c1b, sh1, pool1)
    h = _conv_block(h, c2w, c2b, sh2, pool2)
    h = _conv_block(h, c3w, c3b, sh3, pool3)
    xg = _conv_block(h, c4w, c4b, sh4, pool4)     # (T*B, 128), time-major rows

    # ---- bidirectional GRU ---------------------------------------------------
    # One input-projection matmul for BOTH directions (columns: f_r f_z f_n
    # b_r b_z b_n), kept as a value; gate columns sliced once, off the
    # recurrent critical path.
    gx = jnp.dot(xg, wih[...], preferred_element_type=jnp.float32) + bih[...]
    gxf = [gx[:, g * H:(g + 1) * H] for g in range(3)]
    gxb = [gx[:, (3 + g) * H:(4 + g) * H] for g in range(3)]

    hf = jnp.zeros((B, H), jnp.float32)
    hb = jnp.zeros((B, H), jnp.float32)
    hf_seq, hb_seq = [None] * T, [None] * T
    for s in range(T):                             # static T -> fully unrolled
        tf, tb = s, T - 1 - s
        hf = _gru_step([g[tf * B:(tf + 1) * B] for g in gxf], hf, whh_f, bhh_f)
        hb = _gru_step([g[tb * B:(tb + 1) * B] for g in gxb], hb, whh_b, bhh_b)
        hf_seq[tf], hb_seq[tb] = hf, hb

    # ---- additive attention (batched over time) + softmax + context ----------
    h2 = [jnp.concatenate([hf_seq[t], hb_seq[t]], axis=1) for t in range(T)]
    h_all = jnp.concatenate(h2, axis=0)                      # (T*B, 2H)
    u = jnp.tanh(jnp.dot(h_all, aw1[...], preferred_element_type=jnp.float32)
                 + ab1[...])
    scores = jnp.sum(u * aw2[...], axis=-1, keepdims=True) + ab2[...]   # (T*B, 1)

    s_t = [scores[t * B:(t + 1) * B] for t in range(T)]      # (B, 1) each
    m = s_t[0]
    for t in range(1, T):
        m = jnp.maximum(m, s_t[t])                           # per-batch max over time
    e_t = [jnp.exp(s - m) for s in s_t]
    denom = e_t[0]
    for t in range(1, T):
        denom = denom + e_t[t]
    inv = pl.reciprocal(denom, approx=True)                  # EUP slot
    ctx = jnp.zeros((B, 2 * H), jnp.float32)
    for t in range(T):
        ctx = ctx + (e_t[t] * inv) * h2[t]                   # (B, 2H)

    # ---- FC head (BN folded into weights), final linear ----------------------
    y = jnp.maximum(jnp.dot(ctx, f1w[...],
                            preferred_element_type=jnp.float32) + f1b[...], 0.0)
    y = jnp.maximum(jnp.dot(y, f2w[...],
                            preferred_element_type=jnp.float32) + f2b[...], 0.0)
    y = jnp.maximum(jnp.dot(y, f3w[...],
                            preferred_element_type=jnp.float32) + f3b[...], 0.0)
    o_ref[...] = jnp.dot(y, fow[...], preferred_element_type=jnp.float32) + fob[...]


# ---------------------------------------------------------------------------
# Host-side glue: selection matrices, parameter init, BN folding, wrapper.
# ---------------------------------------------------------------------------
def _selection_matrices(batch, seq_len):
    """Host-precomputed 0/1 matrices per conv layer.

    shifts[layer]: (4, rows, rows)   tap[i] = h[i+d] within-sequence else 0,
                                     for d in (-2, -1, 1, 2).
    pools[layer]:  (2, rows/2, rows) gather of each pool pair (lo, hi); the last
                                     layer also reorders the output rows
                                     time-major (row = t*B + b) for the GRU.
    """
    shifts, pools = [], []
    l_cur = seq_len
    for layer in range(POOL_STAGES):
        rows = batch * l_cur
        i = np.arange(rows)
        t = i % l_cur
        s_stack = np.zeros((KSIZE - 1, rows, rows), np.float32)
        for idx, d in enumerate((-2, -1, 1, 2)):
            valid = (t + d >= 0) & (t + d < l_cur)
            s_stack[idx, i[valid], (i + d)[valid]] = 1.0
        shifts.append(jnp.asarray(s_stack))

        r_out = rows // 2
        r = np.arange(r_out)
        if layer == POOL_STAGES - 1:
            b = r % batch
            tt = r // batch
            src = b * l_cur + 2 * tt
        else:
            src = 2 * r
        p_stack = np.zeros((2, r_out, rows), np.float32)
        p_stack[0, r, src] = 1.0
        p_stack[1, r, src + 1] = 1.0
        pools.append(jnp.asarray(p_stack))
        l_cur //= 2
    return shifts, pools


def init_params(key, input_size, gru_hidden, output_size):
    """Synthetic parameters (transposed-PyTorch layout) including BN stats.

    Conv weights are (K, Cin, Cout) == torch_weight.permute(2, 1, 0); linear
    weights are (in, out) == torch_weight.T; GRU gate order is (r, z, n).
    """
    keys = iter(jax.random.split(key, 64))

    def nrm(shape, scale=0.1):
        return scale * jax.random.normal(next(keys), shape, dtype=jnp.float32)

    params = {}
    convs = []
    cin = input_size
    for cout in CONV_CHANNELS:
        convs.append(dict(
            w=nrm((KSIZE, cin, cout)), b=nrm((cout,)),
            gamma=1.0 + nrm((cout,), 0.05), beta=nrm((cout,), 0.05),
            mean=nrm((cout,), 0.05), var=1.0 + jnp.abs(nrm((cout,), 0.05))))
        cin = cout
    params['convs'] = convs

    H = gru_hidden

    def gru_dir():
        return dict(wih=nrm((cin, 3 * H)), whh=nrm((H, 3 * H)),
                    bih=nrm((3 * H,)), bhh=nrm((3 * H,)))

    params['gru_f'] = gru_dir()
    params['gru_b'] = gru_dir()

    params['att'] = dict(w1=nrm((2 * H, ATT_HIDDEN)), b1=nrm((ATT_HIDDEN,)),
                         w2=nrm((ATT_HIDDEN,)), b2=nrm(()))

    fcs = []
    fin = 2 * H
    for fout in FC_FEATURES:
        fcs.append(dict(
            w=nrm((fin, fout)), b=nrm((fout,)),
            gamma=1.0 + nrm((fout,), 0.05), beta=nrm((fout,), 0.05),
            mean=nrm((fout,), 0.05), var=1.0 + jnp.abs(nrm((fout,), 0.05))))
        fin = fout
    params['fcs'] = fcs
    params['fc_out'] = dict(w=nrm((fin, output_size)), b=nrm((output_size,)))
    return params


def fold_params(params):
    """One-time host transform: fold eval-mode BatchNorm into the neighbouring
    conv / linear weights, concatenate the GRU input projections of both
    directions, split the recurrent weights per gate, and lay out every tensor
    exactly as the kernel wants."""
    def bn_scale(p):
        return p['gamma'] / jnp.sqrt(p['var'] + EPS)

    flat = []
    for p in params['convs']:
        s = bn_scale(p)
        flat += [p['w'] * s[None, None, :],
                 ((p['b'] - p['mean']) * s + p['beta'])[None, :]]

    gf, gb = params['gru_f'], params['gru_b']
    H = gf['whh'].shape[0]
    wih_all = jnp.concatenate([gf['wih'], gb['wih']], axis=1)            # (Cin, 6H)
    bih_all = jnp.concatenate([gf['bih'], gb['bih']], axis=0)[None, :]   # (1, 6H)

    def split_gates_w(w):   # (H, 3H) -> (3, H, H), gate order r, z, n
        return jnp.stack([w[:, 0:H], w[:, H:2 * H], w[:, 2 * H:3 * H]], axis=0)

    def split_gates_b(b):   # (3H,) -> (3, 1, H)
        return jnp.stack([b[0:H], b[H:2 * H], b[2 * H:3 * H]], axis=0)[:, None, :]

    flat += [wih_all, bih_all,
             split_gates_w(gf['whh']), split_gates_b(gf['bhh']),
             split_gates_w(gb['whh']), split_gates_b(gb['bhh'])]

    a = params['att']
    flat += [a['w1'], a['b1'][None, :], a['w2'][None, :], a['b2'].reshape(1, 1)]
    for p in params['fcs']:
        s = bn_scale(p)
        flat += [p['w'] * s[None, :],
                 ((p['b'] - p['mean']) * s + p['beta'])[None, :]]
    flat += [params['fc_out']['w'], params['fc_out']['b'][None, :]]
    return tuple(flat)


def deep_pulse_detector(folded_params, x):
    """Eval-mode forward pass.  x: (B, seq_len, input_size) -> (B, output_size)."""
    # TODO(synk): Dropout layers are identity here (eval-mode semantics; no RNG).
    B, L, c_in = x.shape
    if L % (2 ** POOL_STAGES) != 0:
        raise ValueError("seq_len must be divisible by 16 (four MaxPool(2,2) stages)")
    T = L // (2 ** POOL_STAGES)
    H = folded_params[10].shape[1]                # whh_f stacked: (3, H, H)
    out_features = folded_params[-1].shape[1]     # fc_out bias: (1, out)

    x2d = x.reshape(B * L, c_in)                  # rows = (batch, time), batch-major
    shifts, pools = _selection_matrices(B, L)     # trace-time constants under jit
    sel = []
    for s_mat, p_mat in zip(shifts, pools):
        sel += [s_mat, p_mat]

    kernel = functools.partial(_fused_forward_kernel, batch=B, hidden=H, n_time=T)
    return pl.pallas_call(
        kernel,
        out_shape=jax.ShapeDtypeStruct((B, out_features), jnp.float32),
    )(x2d, *sel, *folded_params)


if __name__ == "__main__":
    key = jax.random.PRNGKey(0)
    pkey, xkey = jax.random.split(key)

    B, L, C_IN = 2, 64, 4          # L=64 -> T=4 timesteps after the four pools
    GRU_HIDDEN, OUT = 32, 2

    raw_params = init_params(pkey, C_IN, GRU_HIDDEN, OUT)
    folded = fold_params(raw_params)
    x = jax.random.normal(xkey, (B, L, C_IN), dtype=jnp.float32)

    fwd = jax.jit(deep_pulse_detector)
    y = fwd(folded, x)
    jax.block_until_ready(y)
    assert y.shape == (B, OUT) and y.dtype == jnp.float32
    print("KERNEL_OK")
</pallas_src>

<mosaic_0001>
module attributes {stable_mosaic.version = 11 : i64} {
  func.func @_fused_forward_kernel(%arg0: memref<128x4xf32, #tpu.memory_space<vmem>>, %arg1: memref<4x128x128xf32, #tpu.memory_space<vmem>>, %arg2: memref<2x64x128xf32, #tpu.memory_space<vmem>>, %arg3: memref<4x64x64xf32, #tpu.memory_space<vmem>>, %arg4: memref<2x32x64xf32, #tpu.memory_space<vmem>>, %arg5: memref<4x32x32xf32, #tpu.memory_space<vmem>>, %arg6: memref<2x16x32xf32, #tpu.memory_space<vmem>>, %arg7: memref<4x16x16xf32, #tpu.memory_space<vmem>>, %arg8: memref<2x8x16xf32, #tpu.memory_space<vmem>>, %arg9: memref<5x4x32xf32, #tpu.memory_space<vmem>>, %arg10: memref<1x32xf32, #tpu.memory_space<vmem>>, %arg11: memref<5x32x32xf32, #tpu.memory_space<vmem>>, %arg12: memref<1x32xf32, #tpu.memory_space<vmem>>, %arg13: memref<5x32x64xf32, #tpu.memory_space<vmem>>, %arg14: memref<1x64xf32, #tpu.memory_space<vmem>>, %arg15: memref<5x64x128xf32, #tpu.memory_space<vmem>>, %arg16: memref<1x128xf32, #tpu.memory_space<vmem>>, %arg17: memref<128x192xf32, #tpu.memory_space<vmem>>, %arg18: memref<1x192xf32, #tpu.memory_space<vmem>>, %arg19: memref<3x32x32xf32, #tpu.memory_space<vmem>>, %arg20: memref<3x1x32xf32, #tpu.memory_space<vmem>>, %arg21: memref<3x32x32xf32, #tpu.memory_space<vmem>>, %arg22: memref<3x1x32xf32, #tpu.memory_space<vmem>>, %arg23: memref<64x64xf32, #tpu.memory_space<vmem>>, %arg24: memref<1x64xf32, #tpu.memory_space<vmem>>, %arg25: memref<1x64xf32, #tpu.memory_space<vmem>>, %arg26: memref<1x1xf32, #tpu.memory_space<vmem>>, %arg27: memref<64x256xf32, #tpu.memory_space<vmem>>, %arg28: memref<1x256xf32, #tpu.memory_space<vmem>>, %arg29: memref<256x128xf32, #tpu.memory_space<vmem>>, %arg30: memref<1x128xf32, #tpu.memory_space<vmem>>, %arg31: memref<128x64xf32, #tpu.memory_space<vmem>>, %arg32: memref<1x64xf32, #tpu.memory_space<vmem>>, %arg33: memref<64x2xf32, #tpu.memory_space<vmem>>, %arg34: memref<1x2xf32, #tpu.memory_space<vmem>>, %arg35: memref<2x2xf32, #tpu.memory_space<vmem>>) attributes {dimension_semantics = [], scalar_prefetch = 0 : i64, scratch_operands = 0 : i64, tpu.core_type = #tpu.core_type<tc>} {
    %c0 = arith.constant 0 : index
    %c0_0 = arith.constant 0 : index
    %0 = vector.load %arg0[%c0, %c0_0] : memref<128x4xf32, #tpu.memory_space<vmem>>, vector<128x4xf32>
    %c0_1 = arith.constant 0 : index
    %c0_2 = arith.constant 0 : index
    %1 = vector.load %arg10[%c0_1, %c0_2] : memref<1x32xf32, #tpu.memory_space<vmem>>, vector<1x32xf32>
    %c2 = arith.constant 2 : index
    %c0_3 = arith.constant 0 : index
    %c0_4 = arith.constant 0 : index
    %2 = vector.load %arg9[%c2, %c0_3, %c0_4] : memref<5x4x32xf32, #tpu.memory_space<vmem>>, vector<1x4x32xf32>
    %3 = vector.shape_cast %2 : vector<1x4x32xf32> to vector<4x32xf32>
    %cst = arith.constant dense<0.000000e+00> : vector<128x32xf32>
    %4 = tpu.matmul %0, %3, %cst {dimension_numbers = #tpu.dot_dimension_numbers<[1], [0], [0], [1], [0, 0, 1, 1], [], []>} : vector<128x4xf32>, vector<4x32xf32>, vector<128x32xf32> -> vector<128x32xf32>
    %5 = vector.broadcast %1 : vector<1x32xf32> to vector<128x32xf32>
    %6 = arith.addf %5, %4 : vector<128x32xf32>
    %c0_5 = arith.constant 0 : index
    %c0_6 = arith.constant 0 : index
    %c0_7 = arith.constant 0 : index
    %7 = vector.load %arg1[%c0_5, %c0_6, %c0_7] : memref<4x128x128xf32, #tpu.memory_space<vmem>>, vector<1x128x128xf32>
    %8 = vector.shape_cast %7 : vector<1x128x128xf32> to vector<128x128xf32>
    %cst_8 = arith.constant dense<0.000000e+00> : vector<128x4xf32>
    %9 = tpu.matmul %8, %0, %cst_8 {dimension_numbers = #tpu.dot_dimension_numbers<[1], [0], [0], [1], [0, 0, 1, 1], [], []>} : vector<128x128xf32>, vector<128x4xf32>, vector<128x4xf32> -> vector<128x4xf32>
    %c0_9 = arith.constant 0 : index
    %c0_10 = arith.constant 0 : index
    %c0_11 = arith.constant 0 : index
    %10 = vector.load %arg9[%c0_9, %c0_10, %c0_11] : memref<5x4x32xf32, #tpu.memory_space<vmem>>, vector<1x4x32xf32>
    %11 = vector.shape_cast %10 : vector<1x4x32xf32> to vector<4x32xf32>
    %cst_12 = arith.constant dense<0.000000e+00> : vector<128x32xf32>
    %12 = tpu.matmul %9, %11, %cst_12 {dimension_numbers = #tpu.dot_dimension_numbers<[1], [0], [0], [1], [0, 0, 1, 1], [], []>} : vector<128x4xf32>, vector<4x32xf32>, vector<128x32xf32> -> vector<128x32xf32>
    %13 = arith.addf %6, %12 : vector<128x32xf32>
    %c1 = arith.constant 1 : index
    %c0_13 = arith.constant 0 : index
    %c0_14 = arith.constant 0 : index
    %14 = vector.load %arg1[%c1, %c0_13, %c0_14] : memref<4x128x128xf32, #tpu.memory_space<vmem>>, vector<1x128x128xf32>
    %15 = vector.shape_cast %14 : vector<1x128x128xf32> to vector<128x128xf32>
    %cst_15 = arith.constant dense<0.000000e+00> : vector<128x4xf32>
    %16 = tpu.matmul %15, %0, %cst_15 {dimension_numbers = #tpu.dot_dimension_numbers<[1], [0], [0], [1], [0, 0, 1, 1], [], []>} : vector<128x128xf32>, vector<128x4xf32>, vector<128x4xf32> -> vector<128x4xf32>
    %c1_16 = arith.constant 1 : index
    %c0_17 = arith.constant 0 : index
    %c0_18 = arith.constant 0 : index
    %17 = vector.load %arg9[%c1_16, %c0_17, %c0_18] : memref<5x4x32xf32, #tpu.memory_space<vmem>>, vector<1x4x32xf32>
    %18 = vector.shape_cast %17 : vector<1x4x32xf32> to vector<4x32xf32>
    %cst_19 = arith.constant dense<0.000000e+00> : vector<128x32xf32>
    %19 = tpu.matmul %16, %18, %cst_19 {dimension_numbers = #tpu.dot_dimension_numbers<[1], [0], [0], [1], [0, 0, 1, 1], [], []>} : vector<128x4xf32>, vector<4x32xf32>, vector<128x32xf32> -> vector<128x32xf32>
    %20 = arith.addf %13, %19 : vector<128x32xf32>
    %c2_20 = arith.constant 2 : index
    %c0_21 = arith.constant 0 : index
    %c0_22 = arith.constant 0 : index
    %21 = vector.load %arg1[%c2_20, %c0_21, %c0_22] : memref<4x128x128xf32, #tpu.memory_space<vmem>>, vector<1x128x128xf32>
    %22 = vector.shape_cast %21 : vector<1x128x128xf32> to vector<128x128xf32>
    %cst_23 = arith.constant dense<0.000000e+00> : vector<128x4xf32>
    %23 = tpu.matmul %22, %0, %cst_23 {dimension_numbers = #tpu.dot_dimension_numbers<[1], [0], [0], [1], [0, 0, 1, 1], [], []>} : vector<128x128xf32>, vector<128x4xf32>, vector<128x4xf32> -> vector<128x4xf32>
    %c3 = arith.constant 3 : index
    %c0_24 = arith.constant 0 : index
    %c0_25 = arith.constant 0 : index
    %24 = vector.load %arg9[%c3, %c0_24, %c0_25] : memref<5x4x32xf32, #tpu.memory_space<vmem>>, vector<1x4x32xf32>
    %25 = vector.shape_cast %24 : vector<1x4x32xf32> to vector<4x32xf32>
    %cst_26 = arith.constant dense<0.000000e+00> : vector<128x32xf32>
    %26 = tpu.matmul %23, %25, %cst_26 {dimension_numbers = #tpu.dot_dimension_numbers<[1], [0], [0], [1], [0, 0, 1, 1], [], []>} : vector<128x4xf32>, vector<4x32xf32>, vector<128x32xf32> -> vector<128x32xf32>
    %27 = arith.addf %20, %26 : vector<128x32xf32>
    %c3_27 = arith.constant 3 : index
    %c0_28 = arith.constant 0 : index
    %c0_29 = arith.constant 0 : index
    %28 = vector.load %arg1[%c3_27, %c0_28, %c0_29] : memref<4x128x128xf32, #tpu.memory_space<vmem>>, vector<1x128x128xf32>
    %29 = vector.shape_cast %28 : vector<1x128x128xf32> to vector<128x128xf32>
    %cst_30 = arith.constant dense<0.000000e+00> : vector<128x4xf32>
    %30 = tpu.matmul %29, %0, %cst_30 {dimension_numbers = #tpu.dot_dimension_numbers<[1], [0], [0], [1], [0, 0, 1, 1], [], []>} : vector<128x128xf32>, vector<128x4xf32>, vector<128x4xf32> -> vector<128x4xf32>
    %c4 = arith.constant 4 : index
    %c0_31 = arith.constant 0 : index
    %c0_32 = arith.constant 0 : index
    %31 = vector.load %arg9[%c4, %c0_31, %c0_32] : memref<5x4x32xf32, #tpu.memory_space<vmem>>, vector<1x4x32xf32>
    %32 = vector.shape_cast %31 : vector<1x4x32xf32> to vector<4x32xf32>
    %cst_33 = arith.constant dense<0.000000e+00> : vector<128x32xf32>
    %33 = tpu.matmul %30, %32, %cst_33 {dimension_numbers = #tpu.dot_dimension_numbers<[1], [0], [0], [1], [0, 0, 1, 1], [], []>} : vector<128x4xf32>, vector<4x32xf32>, vector<128x32xf32> -> vector<128x32xf32>
    %34 = arith.addf %27, %33 : vector<128x32xf32>
    %cst_34 = arith.constant 0.000000e+00 : f32
    %35 = vector.broadcast %cst_34 : f32 to vector<128x32xf32>
    %36 = arith.maximumf %34, %35 : vector<128x32xf32>
    %c0_35 = arith.constant 0 : index
    %c0_36 = arith.constant 0 : index
    %c0_37 = arith.constant 0 : index
    %37 = vector.load %arg2[%c0_35, %c0_36, %c0_37] : memref<2x64x128xf32, #tpu.memory_space<vmem>>, vector<1x64x128xf32>
    %38 = vector.shape_cast %37 : vector<1x64x128xf32> to vector<64x128xf32>
    %cst_38 = arith.constant dense<0.000000e+00> : vector<64x32xf32>
    %39 = tpu.matmul %38, %36, %cst_38 {dimension_numbers = #tpu.dot_dimension_numbers<[1], [0], [0], [1], [0, 0, 1, 1], [], []>} : vector<64x128xf32>, vector<128x32xf32>, vector<64x32xf32> -> vector<64x32xf32>
    %c1_39 = arith.constant 1 : index
    %c0_40 = arith.constant 0 : index
    %c0_41 = arith.constant 0 : index
    %40 = vector.load %arg2[%c1_39, %c0_40, %c0_41] : memref<2x64x128xf32, #tpu.memory_space<vmem>>, vector<1x64x128xf32>
    %41 = vector.shape_cast %40 : vector<1x64x128xf32> to vector<64x128xf32>
    %cst_42 = arith.constant dense<0.000000e+00> : vector<64x32xf32>
    %42 = tpu.matmul %41, %36, %cst_42 {dimension_numbers = #tpu.dot_dimension_numbers<[1], [0], [0], [1], [0, 0, 1, 1], [], []>} : vector<64x128xf32>, vector<128x32xf32>, vector<64x32xf32> -> vector<64x32xf32>
    %43 = arith.maximumf %39, %42 : vector<64x32xf32>
    %c0_43 = arith.constant 0 : index
    %c0_44 = arith.constant 0 : index
    %44 = vector.load %arg12[%c0_43, %c0_44] : memref<1x32xf32, #tpu.memory_space<vmem>>, vector<1x32xf32>
    %c2_45 = arith.constant 2 : index
    %c0_46 = arith.constant 0 : index
    %c0_47 = arith.constant 0 : index
    %45 = vector.load %arg11[%c2_45, %c0_46, %c0_47] : memref<5x32x32xf32, #tpu.memory_space<vmem>>, vector<1x32x32xf32>
    %46 = vector.shape_cast %45 : vector<1x32x32xf32> to vector<32x32xf32>
    %cst_48 = arith.constant dense<0.000000e+00> : vector<64x32xf32>
    %47 = tpu.matmul %43, %46, %cst_48 {dimension_numbers = #tpu.dot_dimension_numbers<[1], [0], [0], [1], [0, 0, 1, 1], [], []>} : vector<64x32xf32>, vector<32x32xf32>, vector<64x32xf32> -> vector<64x32xf32>
    %48 = vector.broadcast %44 : vector<1x32xf32> to vector<64x32xf32>
    %49 = arith.addf %48, %47 : vector<64x32xf32>
    %c0_49 = arith.constant 0 : index
    %c0_50 = arith.constant 0 : index
    %c0_51 = arith.constant 0 : index
    %50 = vector.load %arg3[%c0_49, %c0_50, %c0_51] : memref<4x64x64xf32, #tpu.memory_space<vmem>>, vector<1x64x64xf32>
    %51 = vector.shape_cast %50 : vector<1x64x64xf32> to vector<64x64xf32>
    %cst_52 = arith.constant dense<0.000000e+00> : vector<64x32xf32>
    %52 = tpu.matmul %51, %43, %cst_52 {dimension_numbers = #tpu.dot_dimension_numbers<[1], [0], [0], [1], [0, 0, 1, 1], [], []>} : vector<64x64xf32>, vector<64x32xf32>, vector<64x32xf32> -> vector<64x32xf32>
    %c0_53 = arith.constant 0 : index
    %c0_54 = arith.constant 0 : index
    %c0_55 = arith.constant 0 : index
    %53 = vector.load %arg11[%c0_53, %c0_54, %c0_55] : memref<5x32x32xf32, #tpu.memory_space<vmem>>, vector<1x32x32xf32>
    %54 = vector.shape_cast %53 : vector<1x32x32xf32> to vector<32x32xf32>
    %cst_56 = arith.constant dense<0.000000e+00> : vector<64x32xf32>
    %55 = tpu.matmul %52, %54, %cst_56 {dimension_numbers = #tpu.dot_dimension_numbers<[1], [0], [0], [1], [0, 0, 1, 1], [], []>} : vector<64x32xf32>, vector<32x32xf32>, vector<64x32xf32> -> vector<64x32xf32>
    %56 = arith.addf %49, %55 : vector<64x32xf32>
    %c1_57 = arith.constant 1 : index
    %c0_58 = arith.constant 0 : index
    %c0_59 = arith.constant 0 : index
    %57 = vector.load %arg3[%c1_57, %c0_58, %c0_59] : memref<4x64x64xf32, #tpu.memory_space<vmem>>, vector<1x64x64xf32>
    %58 = vector.shape_cast %57 : vector<1x64x64xf32> to vector<64x64xf32>
    %cst_60 = arith.constant dense<0.000000e+00> : vector<64x32xf32>
    %59 = tpu.matmul %58, %43, %cst_60 {dimension_numbers = #tpu.dot_dimension_numbers<[1], [0], [0], [1], [0, 0, 1, 1], [], []>} : vector<64x64xf32>, vector<64x32xf32>, vector<64x32xf32> -> vector<64x32xf32>
    %c1_61 = arith.constant 1 : index
    %c0_62 = arith.constant 0 : index
    %c0_63 = arith.constant 0 : index
    %60 = vector.load %arg11[%c1_61, %c0_62, %c0_63] : memref<5x32x32xf32, #tpu.memory_space<vmem>>, vector<1x32x32xf32>
    %61 = vector.shape_cast %60 : vector<1x32x32xf32> to vector<32x32xf32>
    %cst_64 = arith.constant dense<0.000000e+00> : vector<64x32xf32>
    %62 = tpu.matmul %59, %61, %cst_64 {dimension_numbers = #tpu.dot_dimension_numbers<[1], [0], [0], [1], [0, 0, 1, 1], [], []>} : vector<64x32xf32>, vector<32x32xf32>, vector<64x32xf32> -> vector<64x32xf32>
    %63 = arith.addf %56, %62 : vector<64x32xf32>
    %c2_65 = arith.constant 2 : index
    %c0_66 = arith.constant 0 : index
    %c0_67 = arith.constant 0 : index
    %64 = vector.load %arg3[%c2_65, %c0_66, %c0_67] : memref<4x64x64xf32, #tpu.memory_space<vmem>>, vector<1x64x64xf32>
    %65 = vector.shape_cast %64 : vector<1x64x64xf32> to vector<64x64xf32>
    %cst_68 = arith.constant dense<0.000000e+00> : vector<64x32xf32>
    %66 = tpu.matmul %65, %43, %cst_68 {dimension_numbers = #tpu.dot_dimension_numbers<[1], [0], [0], [1], [0, 0, 1, 1], [], []>} : vector<64x64xf32>, vector<64x32xf32>, vector<64x32xf32> -> vector<64x32xf32>
    %c3_69 = arith.constant 3 : index
    %c0_70 = arith.constant 0 : index
    %c0_71 = arith.constant 0 : index
    %67 = vector.load %arg11[%c3_69, %c0_70, %c0_71] : memref<5x32x32xf32, #tpu.memory_space<vmem>>, vector<1x32x32xf32>
    %68 = vector.shape_cast %67 : vector<1x32x32xf32> to vector<32x32xf32>
    %cst_72 = arith.constant dense<0.000000e+00> : vector<64x32xf32>
    %69 = tpu.matmul %66, %68, %cst_72 {dimension_numbers = #tpu.dot_dimension_numbers<[1], [0], [0], [1], [0, 0, 1, 1], [], []>} : vector<64x32xf32>, vector<32x32xf32>, vector<64x32xf32> -> vector<64x32xf32>
    %70 = arith.addf %63, %69 : vector<64x32xf32>
    %c3_73 = arith.constant 3 : index
    %c0_74 = arith.constant 0 : index
    %c0_75 = arith.constant 0 : index
    %71 = vector.load %arg3[%c3_73, %c0_74, %c0_75] : memref<4x64x64xf32, #tpu.memory_space<vmem>>, vector<1x64x64xf32>
    %72 = vector.shape_cast %71 : vector<1x64x64xf32> to vector<64x64xf32>
    %cst_76 = arith.constant dense<0.000000e+00> : vector<64x32xf32>
    %73 = tpu.matmul %72, %43, %cst_76 {dimension_numbers = #tpu.dot_dimension_numbers<[1], [0], [0], [1], [0, 0, 1, 1], [], []>} : vector<64x64xf32>, vector<64x32xf32>, vector<64x32xf32> -> vector<64x32xf32>
    %c4_77 = arith.constant 4 : index
    %c0_78 = arith.constant 0 : index
    %c0_79 = arith.constant 0 : index
    %74 = vector.load %arg11[%c4_77, %c0_78, %c0_79] : memref<5x32x32xf32, #tpu.memory_space<vmem>>, vector<1x32x32xf32>
    %75 = vector.shape_cast %74 : vector<1x32x32xf32> to vector<32x32xf32>
    %cst_80 = arith.constant dense<0.000000e+00> : vector<64x32xf32>
    %76 = tpu.matmul %73, %75, %cst_80 {dimension_numbers = #tpu.dot_dimension_numbers<[1], [0], [0], [1], [0, 0, 1, 1], [], []>} : vector<64x32xf32>, vector<32x32xf32>, vector<64x32xf32> -> vector<64x32xf32>
    %77 = arith.addf %70, %76 : vector<64x32xf32>
    %cst_81 = arith.constant 0.000000e+00 : f32
    %78 = vector.broadcast %cst_81 : f32 to vector<64x32xf32>
    %79 = arith.maximumf %77, %78 : vector<64x32xf32>
    %c0_82 = arith.constant 0 : index
    %c0_83 = arith.constant 0 : index
    %c0_84 = arith.constant 0 : index
    %80 = vector.load %arg4[%c0_82, %c0_83, %c0_84] : memref<2x32x64xf32, #tpu.memory_space<vmem>>, vector<1x32x64xf32>
    %81 = vector.shape_cast %80 : vector<1x32x64xf32> to vector<32x64xf32>
    %cst_85 = arith.constant dense<0.000000e+00> : vector<32x32xf32>
    %82 = tpu.matmul %81, %79, %cst_85 {dimension_numbers = #tpu.dot_dimension_numbers<[1], [0], [0], [1], [0, 0, 1, 1], [], []>} : vector<32x64xf32>, vector<64x32xf32>, vector<32x32xf32> -> vector<32x32xf32>
    %c1_86 = arith.constant 1 : index
    %c0_87 = arith.constant 0 : index
    %c0_88 = arith.constant 0 : index
    %83 = vector.load %arg4[%c1_86, %c0_87, %c0_88] : memref<2x32x64xf32, #tpu.memory_space<vmem>>, vector<1x32x64xf32>
    %84 = vector.shape_cast %83 : vector<1x32x64xf32> to vector<32x64xf32>
    %cst_89 = arith.constant dense<0.000000e+00> : vector<32x32xf32>
    %85 = tpu.matmul %84, %79, %cst_89 {dimension_numbers = #tpu.dot_dimension_numbers<[1], [0], [0], [1], [0, 0, 1, 1], [], []>} : vector<32x64xf32>, vector<64x32xf32>, vector<32x32xf32> -> vector<32x32xf32>
    %86 = arith.maximumf %82, %85 : vector<32x32xf32>
    %c0_90 = arith.constant 0 : index
    %c0_91 = arith.constant 0 : index
    %87 = vector.load %arg14[%c0_90, %c0_91] : memref<1x64xf32, #tpu.memory_space<vmem>>, vector<1x64xf32>
    %c2_92 = arith.constant 2 : index
    %c0_93 = arith.constant 0 : index
    %c0_94 = arith.constant 0 : index
    %88 = vector.load %arg13[%c2_92, %c0_93, %c0_94] : memref<5x32x64xf32, #tpu.memory_space<vmem>>, vector<1x32x64xf32>
    %89 = vector.shape_cast %88 : vector<1x32x64xf32> to vector<32x64xf32>
    %cst_95 = arith.constant dense<0.000000e+00> : vector<32x64xf32>
    %90 = tpu.matmul %86, %89, %cst_95 {dimension_numbers = #tpu.dot_dimension_numbers<[1], [0], [0], [1], [0, 0, 1, 1], [], []>} : vector<32x32xf32>, vector<32x64xf32>, vector<32x64xf32> -> vector<32x64xf32>
    %91 = vector.broadcast %87 : vector<1x64xf32> to vector<32x64xf32>
    %92 = arith.addf %91, %90 : vector<32x64xf32>
    %c0_96 = arith.constant 0 : index
    %c0_97 = arith.constant 0 : index
    %c0_98 = arith.constant 0 : index
    %93 = vector.load %arg5[%c0_96, %c0_97, %c0_98] : memref<4x32x32xf32, #tpu.memory_space<vmem>>, vector<1x32x32xf32>
    %94 = vector.shape_cast %93 : vector<1x32x32xf32> to vector<32x32xf32>
    %cst_99 = arith.constant dense<0.000000e+00> : vector<32x32xf32>
    %95 = tpu.matmul %94, %86, %cst_99 {dimension_numbers = #tpu.dot_dimension_numbers<[1], [0], [0], [1], [0, 0, 1, 1], [], []>} : vector<32x32xf32>, vector<32x32xf32>, vector<32x32xf32> -> vector<32x32xf32>
    %c0_100 = arith.constant 0 : index
    %c0_101 = arith.constant 0 : index
    %c0_102 = arith.constant 0 : index
    %96 = vector.load %arg13[%c0_100, %c0_101, %c0_102] : memref<5x32x64xf32, #tpu.memory_space<vmem>>, vector<1x32x64xf32>
    %97 = vector.shape_cast %96 : vector<1x32x64xf32> to vector<32x64xf32>
    %cst_103 = arith.constant dense<0.000000e+00> : vector<32x64xf32>
    %98 = tpu.matmul %95, %97, %cst_103 {dimension_numbers = #tpu.dot_dimension_numbers<[1], [0], [0], [1], [0, 0, 1, 1], [], []>} : vector<32x32xf32>, vector<32x64xf32>, vector<32x64xf32> -> vector<32x64xf32>
    %99 = arith.addf %92, %98 : vector<32x64xf32>
    %c1_104 = arith.constant 1 : index
    %c0_105 = arith.constant 0 : index
    %c0_106 = arith.constant 0 : index
    %100 = vector.load %arg5[%c1_104, %c0_105, %c0_106] : memref<4x32x32xf32, #tpu.memory_space<vmem>>, vector<1x32x32xf32>
    %101 = vector.shape_cast %100 : vector<1x32x32xf32> to vector<32x32xf32>
    %cst_107 = arith.constant dense<0.000000e+00> : vector<32x32xf32>
    %102 = tpu.matmul %101, %86, %cst_107 {dimension_numbers = #tpu.dot_dimension_numbers<[1], [0], [0], [1], [0, 0, 1, 1], [], []>} : vector<32x32xf32>, vector<32x32xf32>, vector<32x32xf32> -> vector<32x32xf32>
    %c1_108 = arith.constant 1 : index
    %c0_109 = arith.constant 0 : index
    %c0_110 = arith.constant 0 : index
    %103 = vector.load %arg13[%c1_108, %c0_109, %c0_110] : memref<5x32x64xf32, #tpu.memory_space<vmem>>, vector<1x32x64xf32>
    %104 = vector.shape_cast %103 : vector<1x32x64xf32> to vector<32x64xf32>
    %cst_111 = arith.constant dense<0.000000e+00> : vector<32x64xf32>
    %105 = tpu.matmul %102, %104, %cst_111 {dimension_numbers = #tpu.dot_dimension_numbers<[1], [0], [0], [1], [0, 0, 1, 1], [], []>} : vector<32x32xf32>, vector<32x64xf32>, vector<32x64xf32> -> vector<32x64xf32>
    %106 = arith.addf %99, %105 : vector<32x64xf32>
    %c2_112 = arith.constant 2 : index
    %c0_113 = arith.constant 0 : index
    %c0_114 = arith.constant 0 : index
    %107 = vector.load %arg5[%c2_112, %c0_113, %c0_114] : memref<4x32x32xf32, #tpu.memory_space<vmem>>, vector<1x32x32xf32>
    %108 = vector.shape_cast %107 : vector<1x32x32xf32> to vector<32x32xf32>
    %cst_115 = arith.constant dense<0.000000e+00> : vector<32x32xf32>
    %109 = tpu.matmul %108, %86, %cst_115 {dimension_numbers = #tpu.dot_dimension_numbers<[1], [0], [0], [1], [0, 0, 1, 1], [], []>} : vector<32x32xf32>, vector<32x32xf32>, vector<32x32xf32> -> vector<32x32xf32>
    %c3_116 = arith.constant 3 : index
    %c0_117 = arith.constant 0 : index
    %c0_118 = arith.constant 0 : index
    %110 = vector.load %arg13[%c3_116, %c0_117, %c0_118] : memref<5x32x64xf32, #tpu.memory_space<vmem>>, vector<1x32x64xf32>
    %111 = vector.shape_cast %110 : vector<1x32x64xf32> to vector<32x64xf32>
    %cst_119 = arith.constant dense<0.000000e+00> : vector<32x64xf32>
    %112 = tpu.matmul %109, %111, %cst_119 {dimension_numbers = #tpu.dot_dimension_numbers<[1], [0], [0], [1], [0, 0, 1, 1], [], []>} : vector<32x32xf32>, vector<32x64xf32>, vector<32x64xf32> -> vector<32x64xf32>
    %113 = arith.addf %106, %112 : vector<32x64xf32>
    %c3_120 = arith.constant 3 : index
    %c0_121 = arith.constant 0 : index
    %c0_122 = arith.constant 0 : index
    %114 = vector.load %arg5[%c3_120, %c0_121, %c0_122] : memref<4x32x32xf32, #tpu.memory_space<vmem>>, vector<1x32x32xf32>
    %115 = vector.shape_cast %114 : vector<1x32x32xf32> to vector<32x32xf32>
    %cst_123 = arith.constant dense<0.000000e+00> : vector<32x32xf32>
    %116 = tpu.matmul %115, %86, %cst_123 {dimension_numbers = #tpu.dot_dimension_numbers<[1], [0], [0], [1], [0, 0, 1, 1], [], []>} : vector<32x32xf32>, vector<32x32xf32>, vector<32x32xf32> -> vector<32x32xf32>
    %c4_124 = arith.constant 4 : index
    %c0_125 = arith.constant 0 : index
    %c0_126 = arith.constant 0 : index
    %117 = vector.load %arg13[%c4_124, %c0_125, %c0_126] : memref<5x32x64xf32, #tpu.memory_space<vmem>>, vector<1x32x64xf32>
    %118 = vector.shape_cast %117 : vector<1x32x64xf32> to vector<32x64xf32>
    %cst_127 = arith.constant dense<0.000000e+00> : vector<32x64xf32>
    %119 = tpu.matmul %116, %118, %cst_127 {dimension_numbers = #tpu.dot_dimension_numbers<[1], [0], [0], [1], [0, 0, 1, 1], [], []>} : vector<32x32xf32>, vector<32x64xf32>, vector<32x64xf32> -> vector<32x64xf32>
    %120 = arith.addf %113, %119 : vector<32x64xf32>
    %cst_128 = arith.constant 0.000000e+00 : f32
    %121 = vector.broadcast %cst_128 : f32 to vector<32x64xf32>
    %122 = arith.maximumf %120, %121 : vector<32x64xf32>
    %c0_129 = arith.constant 0 : index
    %c0_130 = arith.constant 0 : index
    %c0_131 = arith.constant 0 : index
    %123 = vector.load %arg6[%c0_129, %c0_130, %c0_131] : memref<2x16x32xf32, #tpu.memory_space<vmem>>, vector<1x16x32xf32>
    %124 = vector.shape_cast %123 : vector<1x16x32xf32> to vector<16x32xf32>
    %cst_132 = arith.constant dense<0.000000e+00> : vector<16x64xf32>
    %125 = tpu.matmul %124, %122, %cst_132 {dimension_numbers = #tpu.dot_dimension_numbers<[1], [0], [0], [1], [0, 0, 1, 1], [], []>} : vector<16x32xf32>, vector<32x64xf32>, vector<16x64xf32> -> vector<16x64xf32>
    %c1_133 = arith.constant 1 : index
    %c0_134 = arith.constant 0 : index
    %c0_135 = arith.constant 0 : index
    %126 = vector.load %arg6[%c1_133, %c0_134, %c0_135] : memref<2x16x32xf32, #tpu.memory_space<vmem>>, vector<1x16x32xf32>
    %127 = vector.shape_cast %126 : vector<1x16x32xf32> to vector<16x32xf32>
    %cst_136 = arith.constant dense<0.000000e+00> : vector<16x64xf32>
    %128 = tpu.matmul %127, %122, %cst_136 {dimension_numbers = #tpu.dot_dimension_numbers<[1], [0], [0], [1], [0, 0, 1, 1], [], []>} : vector<16x32xf32>, vector<32x64xf32>, vector<16x64xf32> -> vector<16x64xf32>
    %129 = arith.maximumf %125, %128 : vector<16x64xf32>
    %c0_137 = arith.constant 0 : index
    %c0_138 = arith.constant 0 : index
    %130 = vector.load %arg16[%c0_137, %c0_138] : memref<1x128xf32, #tpu.memory_space<vmem>>, vector<1x128xf32>
    %c2_139 = arith.constant 2 : index
    %c0_140 = arith.constant 0 : index
    %c0_141 = arith.constant 0 : index
    %131 = vector.load %arg15[%c2_139, %c0_140, %c0_141] : memref<5x64x128xf32, #tpu.memory_space<vmem>>, vector<1x64x128xf32>
    %132 = vector.shape_cast %131 : vector<1x64x128xf32> to vector<64x128xf32>
    %cst_142 = arith.constant dense<0.000000e+00> : vector<16x128xf32>
    %133 = tpu.matmul %129, %132, %cst_142 {dimension_numbers = #tpu.dot_dimension_numbers<[1], [0], [0], [1], [0, 0, 1, 1], [], []>} : vector<16x64xf32>, vector<64x128xf32>, vector<16x128xf32> -> vector<16x128xf32>
    %134 = vector.broadcast %130 : vector<1x128xf32> to vector<16x128xf32>
    %135 = arith.addf %134, %133 : vector<16x128xf32>
    %c0_143 = arith.constant 0 : index
    %c0_144 = arith.constant 0 : index
    %c0_145 = arith.constant 0 : index
    %136 = vector.load %arg7[%c0_143, %c0_144, %c0_145] : memref<4x16x16xf32, #tpu.memory_space<vmem>>, vector<1x16x16xf32>
    %137 = vector.shape_cast %136 : vector<1x16x16xf32> to vector<16x16xf32>
    %cst_146 = arith.constant dense<0.000000e+00> : vector<16x64xf32>
    %138 = tpu.matmul %137, %129, %cst_146 {dimension_numbers = #tpu.dot_dimension_numbers<[1], [0], [0], [1], [0, 0, 1, 1], [], []>} : vector<16x16xf32>, vector<16x64xf32>, vector<16x64xf32> -> vector<16x64xf32>
    %c0_147 = arith.constant 0 : index
    %c0_148 = arith.constant 0 : index
    %c0_149 = arith.constant 0 : index
    %139 = vector.load %arg15[%c0_147, %c0_148, %c0_149] : memref<5x64x128xf32, #tpu.memory_space<vmem>>, vector<1x64x128xf32>
    %140 = vector.shape_cast %139 : vector<1x64x128xf32> to vector<64x128xf32>
    %cst_150 = arith.constant dense<0.000000e+00> : vector<16x128xf32>
    %141 = tpu.matmul %138, %140, %cst_150 {dimension_numbers = #tpu.dot_dimension_numbers<[1], [0], [0], [1], [0, 0, 1, 1], [], []>} : vector<16x64xf32>, vector<64x128xf32>, vector<16x128xf32> -> vector<16x128xf32>
    %142 = arith.addf %135, %141 : vector<16x128xf32>
    %c1_151 = arith.constant 1 : index
    %c0_152 = arith.constant 0 : index
    %c0_153 = arith.constant 0 : index
    %143 = vector.load %arg7[%c1_151, %c0_152, %c0_153] : memref<4x16x16xf32, #tpu.memory_space<vmem>>, vector<1x16x16xf32>
    %144 = vector.shape_cast %143 : vector<1x16x16xf32> to vector<16x16xf32>
    %cst_154 = arith.constant dense<0.000000e+00> : vector<16x64xf32>
    %145 = tpu.matmul %144, %129, %cst_154 {dimension_numbers = #tpu.dot_dimension_numbers<[1], [0], [0], [1], [0, 0, 1, 1], [], []>} : vector<16x16xf32>, vector<16x64xf32>, vector<16x64xf32> -> vector<16x64xf32>
    %c1_155 = arith.constant 1 : index
    %c0_156 = arith.constant 0 : index
    %c0_157 = arith.constant 0 : index
    %146 = vector.load %arg15[%c1_155, %c0_156, %c0_157] : memref<5x64x128xf32, #tpu.memory_space<vmem>>, vector<1x64x128xf32>
    %147 = vector.shape_cast %146 : vector<1x64x128xf32> to vector<64x128xf32>
    %cst_158 = arith.constant dense<0.000000e+00> : vector<16x128xf32>
    %148 = tpu.matmul %145, %147, %cst_158 {dimension_numbers = #tpu.dot_dimension_numbers<[1], [0], [0], [1], [0, 0, 1, 1], [], []>} : vector<16x64xf32>, vector<64x128xf32>, vector<16x128xf32> -> vector<16x128xf32>
    %149 = arith.addf %142, %148 : vector<16x128xf32>
    %c2_159 = arith.constant 2 : index
    %c0_160 = arith.constant 0 : index
    %c0_161 = arith.constant 0 : index
    %150 = vector.load %arg7[%c2_159, %c0_160, %c0_161] : memref<4x16x16xf32, #tpu.memory_space<vmem>>, vector<1x16x16xf32>
    %151 = vector.shape_cast %150 : vector<1x16x16xf32> to vector<16x16xf32>
    %cst_162 = arith.constant dense<0.000000e+00> : vector<16x64xf32>
    %152 = tpu.matmul %151, %129, %cst_162 {dimension_numbers = #tpu.dot_dimension_numbers<[1], [0], [0], [1], [0, 0, 1, 1], [], []>} : vector<16x16xf32>, vector<16x64xf32>, vector<16x64xf32> -> vector<16x64xf32>
    %c3_163 = arith.constant 3 : index
    %c0_164 = arith.constant 0 : index
    %c0_165 = arith.constant 0 : index
    %153 = vector.load %arg15[%c3_163, %c0_164, %c0_165] : memref<5x64x128xf32, #tpu.memory_space<vmem>>, vector<1x64x128xf32>
    %154 = vector.shape_cast %153 : vector<1x64x128xf32> to vector<64x128xf32>
    %cst_166 = arith.constant dense<0.000000e+00> : vector<16x128xf32>
    %155 = tpu.matmul %152, %154, %cst_166 {dimension_numbers = #tpu.dot_dimension_numbers<[1], [0], [0], [1], [0, 0, 1, 1], [], []>} : vector<16x64xf32>, vector<64x128xf32>, vector<16x128xf32> -> vector<16x128xf32>
    %156 = arith.addf %149, %155 : vector<16x128xf32>
    %c3_167 = arith.constant 3 : index
    %c0_168 = arith.constant 0 : index
    %c0_169 = arith.constant 0 : index
    %157 = vector.load %arg7[%c3_167, %c0_168, %c0_169] : memref<4x16x16xf32, #tpu.memory_space<vmem>>, vector<1x16x16xf32>
    %158 = vector.shape_cast %157 : vector<1x16x16xf32> to vector<16x16xf32>
    %cst_170 = arith.constant dense<0.000000e+00> : vector<16x64xf32>
    %159 = tpu.matmul %158, %129, %cst_170 {dimension_numbers = #tpu.dot_dimension_numbers<[1], [0], [0], [1], [0, 0, 1, 1], [], []>} : vector<16x16xf32>, vector<16x64xf32>, vector<16x64xf32> -> vector<16x64xf32>
    %c4_171 = arith.constant 4 : index
    %c0_172 = arith.constant 0 : index
    %c0_173 = arith.constant 0 : index
    %160 = vector.load %arg15[%c4_171, %c0_172, %c0_173] : memref<5x64x128xf32, #tpu.memory_space<vmem>>, vector<1x64x128xf32>
    %161 = vector.shape_cast %160 : vector<1x64x128xf32> to vector<64x128xf32>
    %cst_174 = arith.constant dense<0.000000e+00> : vector<16x128xf32>
    %162 = tpu.matmul %159, %161, %cst_174 {dimension_numbers = #tpu.dot_dimension_numbers<[1], [0], [0], [1], [0, 0, 1, 1], [], []>} : vector<16x64xf32>, vector<64x128xf32>, vector<16x128xf32> -> vector<16x128xf32>
    %163 = arith.addf %156, %162 : vector<16x128xf32>
    %cst_175 = arith.constant 0.000000e+00 : f32
    %164 = vector.broadcast %cst_175 : f32 to vector<16x128xf32>
    %165 = arith.maximumf %163, %164 : vector<16x128xf32>
    %c0_176 = arith.constant 0 : index
    %c0_177 = arith.constant 0 : index
    %c0_178 = arith.constant 0 : index
    %166 = vector.load %arg8[%c0_176, %c0_177, %c0_178] : memref<2x8x16xf32, #tpu.memory_space<vmem>>, vector<1x8x16xf32>
    %167 = vector.shape_cast %166 : vector<1x8x16xf32> to vector<8x16xf32>
    %cst_179 = arith.constant dense<0.000000e+00> : vector<8x128xf32>
    %168 = tpu.matmul %167, %165, %cst_179 {dimension_numbers = #tpu.dot_dimension_numbers<[1], [0], [0], [1], [0, 0, 1, 1], [], []>} : vector<8x16xf32>, vector<16x128xf32>, vector<8x128xf32> -> vector<8x128xf32>
    %c1_180 = arith.constant 1 : index
    %c0_181 = arith.constant 0 : index
    %c0_182 = arith.constant 0 : index
    %169 = vector.load %arg8[%c1_180, %c0_181, %c0_182] : memref<2x8x16xf32, #tpu.memory_space<vmem>>, vector<1x8x16xf32>
    %170 = vector.shape_cast %169 : vector<1x8x16xf32> to vector<8x16xf32>
    %cst_183 = arith.constant dense<0.000000e+00> : vector<8x128xf32>
    %171 = tpu.matmul %170, %165, %cst_183 {dimension_numbers = #tpu.dot_dimension_numbers<[1], [0], [0], [1], [0, 0, 1, 1], [], []>} : vector<8x16xf32>, vector<16x128xf32>, vector<8x128xf32> -> vector<8x128xf32>
    %172 = arith.maximumf %168, %171 : vector<8x128xf32>
    %c0_184 = arith.constant 0 : index
    %c0_185 = arith.constant 0 : index
    %173 = vector.load %arg17[%c0_184, %c0_185] : memref<128x192xf32, #tpu.memory_space<vmem>>, vector<128x192xf32>
    %cst_186 = arith.constant dense<0.000000e+00> : vector<8x192xf32>
    %174 = tpu.matmul %172, %173, %cst_186 {dimension_numbers = #tpu.dot_dimension_numbers<[1], [0], [0], [1], [0, 0, 1, 1], [], []>} : vector<8x128xf32>, vector<128x192xf32>, vector<8x192xf32> -> vector<8x192xf32>
    %c0_187 = arith.constant 0 : index
    %c0_188 = arith.constant 0 : index
    %175 = vector.load %arg18[%c0_187, %c0_188] : memref<1x192xf32, #tpu.memory_space<vmem>>, vector<1x192xf32>
    %176 = vector.broadcast %175 : vector<1x192xf32> to vector<8x192xf32>
    %177 = arith.addf %174, %176 : vector<8x192xf32>
    %178 = vector.extract_strided_slice %177 {offsets = [0, 0], sizes = [8, 32], strides = [1, 1]} : vector<8x192xf32> to vector<8x32xf32>
    %179 = vector.extract_strided_slice %177 {offsets = [0, 32], sizes = [8, 32], strides = [1, 1]} : vector<8x192xf32> to vector<8x32xf32>
    %180 = vector.extract_strided_slice %177 {offsets = [0, 64], sizes = [8, 32], strides = [1, 1]} : vector<8x192xf32> to vector<8x32xf32>
    %181 = vector.extract_strided_slice %177 {offsets = [0, 96], sizes = [8, 32], strides = [1, 1]} : vector<8x192xf32> to vector<8x32xf32>
    %182 = vector.extract_strided_slice %177 {offsets = [0, 128], sizes = [8, 32], strides = [1, 1]} : vector<8x192xf32> to vector<8x32xf32>
    %183 = vector.extract_strided_slice %177 {offsets = [0, 160], sizes = [8, 32], strides = [1, 1]} : vector<8x192xf32> to vector<8x32xf32>
    %cst_189 = arith.constant 0.000000e+00 : f32
    %184 = vector.broadcast %cst_189 : f32 to vector<2x32xf32>
    %cst_190 = arith.constant 0.000000e+00 : f32
    %185 = vector.broadcast %cst_190 : f32 to vector<2x32xf32>
    %186 = vector.extract_strided_slice %178 {offsets = [0, 0], sizes = [2, 32], strides = [1, 1]} : vector<8x32xf32> to vector<2x32xf32>
    %187 = vector.extract_strided_slice %179 {offsets = [0, 0], sizes = [2, 32], strides = [1, 1]} : vector<8x32xf32> to vector<2x32xf32>
    %188 = vector.extract_strided_slice %180 {offsets = [0, 0], sizes = [2, 32], strides = [1, 1]} : vector<8x32xf32> to vector<2x32xf32>
    %c0_191 = arith.constant 0 : index
    %c0_192 = arith.constant 0 : index
    %c0_193 = arith.constant 0 : index
    %189 = vector.load %arg19[%c0_191, %c0_192, %c0_193] : memref<3x32x32xf32, #tpu.memory_space<vmem>>, vector<1x32x32xf32>
    %190 = vector.shape_cast %189 : vector<1x32x32xf32> to vector<32x32xf32>
    %cst_194 = arith.constant dense<0.000000e+00> : vector<2x32xf32>
    %191 = tpu.matmul %184, %190, %cst_194 {dimension_numbers = #tpu.dot_dimension_numbers<[1], [0], [0], [1], [0, 0, 1, 1], [], []>} : vector<2x32xf32>, vector<32x32xf32>, vector<2x32xf32> -> vector<2x32xf32>
    %c0_195 = arith.constant 0 : index
    %c0_196 = arith.constant 0 : index
    %c0_197 = arith.constant 0 : index
    %192 = vector.load %arg20[%c0_195, %c0_196, %c0_197] : memref<3x1x32xf32, #tpu.memory_space<vmem>>, vector<1x1x32xf32>
    %193 = vector.shape_cast %192 : vector<1x1x32xf32> to vector<1x32xf32>
    %194 = vector.broadcast %193 : vector<1x32xf32> to vector<2x32xf32>
    %195 = arith.addf %191, %194 : vector<2x32xf32>
    %c1_198 = arith.constant 1 : index
    %c0_199 = arith.constant 0 : index
    %c0_200 = arith.constant 0 : index
    %196 = vector.load %arg19[%c1_198, %c0_199, %c0_200] : memref<3x32x32xf32, #tpu.memory_space<vmem>>, vector<1x32x32xf32>
    %197 = vector.shape_cast %196 : vector<1x32x32xf32> to vector<32x32xf32>
    %cst_201 = arith.constant dense<0.000000e+00> : vector<2x32xf32>
    %198 = tpu.matmul %184, %197, %cst_201 {dimension_numbers = #tpu.dot_dimension_numbers<[1], [0], [0], [1], [0, 0, 1, 1], [], []>} : vector<2x32xf32>, vector<32x32xf32>, vector<2x32xf32> -> vector<2x32xf32>
    %c1_202 = arith.constant 1 : index
    %c0_203 = arith.constant 0 : index
    %c0_204 = arith.constant 0 : index
    %199 = vector.load %arg20[%c1_202, %c0_203, %c0_204] : memref<3x1x32xf32, #tpu.memory_space<vmem>>, vector<1x1x32xf32>
    %200 = vector.shape_cast %199 : vector<1x1x32xf32> to vector<1x32xf32>
    %201 = vector.broadcast %200 : vector<1x32xf32> to vector<2x32xf32>
    %202 = arith.addf %198, %201 : vector<2x32xf32>
    %c2_205 = arith.constant 2 : index
    %c0_206 = arith.constant 0 : index
    %c0_207 = arith.constant 0 : index
    %203 = vector.load %arg19[%c2_205, %c0_206, %c0_207] : memref<3x32x32xf32, #tpu.memory_space<vmem>>, vector<1x32x32xf32>
    %204 = vector.shape_cast %203 : vector<1x32x32xf32> to vector<32x32xf32>
    %cst_208 = arith.constant dense<0.000000e+00> : vector<2x32xf32>
    %205 = tpu.matmul %184, %204, %cst_208 {dimension_numbers = #tpu.dot_dimension_numbers<[1], [0], [0], [1], [0, 0, 1, 1], [], []>} : vector<2x32xf32>, vector<32x32xf32>, vector<2x32xf32> -> vector<2x32xf32>
    %c2_209 = arith.constant 2 : index
    %c0_210 = arith.constant 0 : index
    %c0_211 = arith.constant 0 : index
    %206 = vector.load %arg20[%c2_209, %c0_210, %c0_211] : memref<3x1x32xf32, #tpu.memory_space<vmem>>, vector<1x1x32xf32>
    %207 = vector.shape_cast %206 : vector<1x1x32xf32> to vector<1x32xf32>
    %208 = vector.broadcast %207 : vector<1x32xf32> to vector<2x32xf32>
    %209 = arith.addf %205, %208 : vector<2x32xf32>
    %210 = arith.addf %186, %195 : vector<2x32xf32>
    %211 = arith.negf %210 : vector<2x32xf32>
    %212 = math.exp %211 : vector<2x32xf32>
    %cst_212 = arith.constant 1.000000e+00 : f32
    %213 = vector.broadcast %cst_212 : f32 to vector<2x32xf32>
    %214 = arith.addf %213, %212 : vector<2x32xf32>
    %215 = arith.divf %213, %214 : vector<2x32xf32>
    %216 = arith.addf %187, %202 : vector<2x32xf32>
    %217 = arith.negf %216 : vector<2x32xf32>
    %218 = math.exp %217 : vector<2x32xf32>
    %cst_213 = arith.constant 1.000000e+00 : f32
    %219 = vector.broadcast %cst_213 : f32 to vector<2x32xf32>
    %220 = arith.addf %219, %218 : vector<2x32xf32>
    %221 = arith.divf %219, %220 : vector<2x32xf32>
    %222 = arith.mulf %215, %209 : vector<2x32xf32>
    %223 = arith.addf %188, %222 : vector<2x32xf32>
    %224 = math.tanh %223 : vector<2x32xf32>
    %cst_214 = arith.constant 1.000000e+00 : f32
    %225 = vector.broadcast %cst_214 : f32 to vector<2x32xf32>
    %226 = arith.subf %225, %221 : vector<2x32xf32>
    %227 = arith.mulf %226, %224 : vector<2x32xf32>
    %228 = arith.mulf %221, %184 : vector<2x32xf32>
    %229 = arith.addf %227, %228 : vector<2x32xf32>
    %230 = vector.extract_strided_slice %181 {offsets = [6, 0], sizes = [2, 32], strides = [1, 1]} : vector<8x32xf32> to vector<2x32xf32>
    %231 = vector.extract_strided_slice %182 {offsets = [6, 0], sizes = [2, 32], strides = [1, 1]} : vector<8x32xf32> to vector<2x32xf32>
    %232 = vector.extract_strided_slice %183 {offsets = [6, 0], sizes = [2, 32], strides = [1, 1]} : vector<8x32xf32> to vector<2x32xf32>
    %c0_215 = arith.constant 0 : index
    %c0_216 = arith.constant 0 : index
    %c0_217 = arith.constant 0 : index
    %233 = vector.load %arg21[%c0_215, %c0_216, %c0_217] : memref<3x32x32xf32, #tpu.memory_space<vmem>>, vector<1x32x32xf32>
    %234 = vector.shape_cast %233 : vector<1x32x32xf32> to vector<32x32xf32>
    %cst_218 = arith.constant dense<0.000000e+00> : vector<2x32xf32>
    %235 = tpu.matmul %185, %234, %cst_218 {dimension_numbers = #tpu.dot_dimension_numbers<[1], [0], [0], [1], [0, 0, 1, 1], [], []>} : vector<2x32xf32>, vector<32x32xf32>, vector<2x32xf32> -> vector<2x32xf32>
    %c0_219 = arith.constant 0 : index
    %c0_220 = arith.constant 0 : index
    %c0_221 = arith.constant 0 : index
    %236 = vector.load %arg22[%c0_219, %c0_220, %c0_221] : memref<3x1x32xf32, #tpu.memory_space<vmem>>, vector<1x1x32xf32>
    %237 = vector.shape_cast %236 : vector<1x1x32xf32> to vector<1x32xf32>
    %238 = vector.broadcast %237 : vector<1x32xf32> to vector<2x32xf32>
    %239 = arith.addf %235, %238 : vector<2x32xf32>
    %c1_222 = arith.constant 1 : index
    %c0_223 = arith.constant 0 : index
    %c0_224 = arith.constant 0 : index
    %240 = vector.load %arg21[%c1_222, %c0_223, %c0_224] : memref<3x32x32xf32, #tpu.memory_space<vmem>>, vector<1x32x32xf32>
    %241 = vector.shape_cast %240 : vector<1x32x32xf32> to vector<32x32xf32>
    %cst_225 = arith.constant dense<0.000000e+00> : vector<2x32xf32>
    %242 = tpu.matmul %185, %241, %cst_225 {dimension_numbers = #tpu.dot_dimension_numbers<[1], [0], [0], [1], [0, 0, 1, 1], [], []>} : vector<2x32xf32>, vector<32x32xf32>, vector<2x32xf32> -> vector<2x32xf32>
    %c1_226 = arith.constant 1 : index
    %c0_227 = arith.constant 0 : index
    %c0_228 = arith.constant 0 : index
    %243 = vector.load %arg22[%c1_226, %c0_227, %c0_228] : memref<3x1x32xf32, #tpu.memory_space<vmem>>, vector<1x1x32xf32>
    %244 = vector.shape_cast %243 : vector<1x1x32xf32> to vector<1x32xf32>
    %245 = vector.broadcast %244 : vector<1x32xf32> to vector<2x32xf32>
    %246 = arith.addf %242, %245 : vector<2x32xf32>
    %c2_229 = arith.constant 2 : index
    %c0_230 = arith.constant 0 : index
    %c0_231 = arith.constant 0 : index
    %247 = vector.load %arg21[%c2_229, %c0_230, %c0_231] : memref<3x32x32xf32, #tpu.memory_space<vmem>>, vector<1x32x32xf32>
    %248 = vector.shape_cast %247 : vector<1x32x32xf32> to vector<32x32xf32>
    %cst_232 = arith.constant dense<0.000000e+00> : vector<2x32xf32>
    %249 = tpu.matmul %185, %248, %cst_232 {dimension_numbers = #tpu.dot_dimension_numbers<[1], [0], [0], [1], [0, 0, 1, 1], [], []>} : vector<2x32xf32>, vector<32x32xf32>, vector<2x32xf32> -> vector<2x32xf32>
    %c2_233 = arith.constant 2 : index
    %c0_234 = arith.constant 0 : index
    %c0_235 = arith.constant 0 : index
    %250 = vector.load %arg22[%c2_233, %c0_234, %c0_235] : memref<3x1x32xf32, #tpu.memory_space<vmem>>, vector<1x1x32xf32>
    %251 = vector.shape_cast %250 : vector<1x1x32xf32> to vector<1x32xf32>
    %252 = vector.broadcast %251 : vector<1x32xf32> to vector<2x32xf32>
    %253 = arith.addf %249, %252 : vector<2x32xf32>
    %254 = arith.addf %230, %239 : vector<2x32xf32>
    %255 = arith.negf %254 : vector<2x32xf32>
    %256 = math.exp %255 : vector<2x32xf32>
    %cst_236 = arith.constant 1.000000e+00 : f32
    %257 = vector.broadcast %cst_236 : f32 to vector<2x32xf32>
    %258 = arith.addf %257, %256 : vector<2x32xf32>
    %259 = arith.divf %257, %258 : vector<2x32xf32>
    %260 = arith.addf %231, %246 : vector<2x32xf32>
    %261 = arith.negf %260 : vector<2x32xf32>
    %262 = math.exp %261 : vector<2x32xf32>
    %cst_237 = arith.constant 1.000000e+00 : f32
    %263 = vector.broadcast %cst_237 : f32 to vector<2x32xf32>
    %264 = arith.addf %263, %262 : vector<2x32xf32>
    %265 = arith.divf %263, %264 : vector<2x32xf32>
    %266 = arith.mulf %259, %253 : vector<2x32xf32>
    %267 = arith.addf %232, %266 : vector<2x32xf32>
    %268 = math.tanh %267 : vector<2x32xf32>
    %cst_238 = arith.constant 1.000000e+00 : f32
    %269 = vector.broadcast %cst_238 : f32 to vector<2x32xf32>
    %270 = arith.subf %269, %265 : vector<2x32xf32>
    %271 = arith.mulf %270, %268 : vector<2x32xf32>
    %272 = arith.mulf %265, %185 : vector<2x32xf32>
    %273 = arith.addf %271, %272 : vector<2x32xf32>
    %274 = vector.extract_strided_slice %178 {offsets = [2, 0], sizes = [2, 32], strides = [1, 1]} : vector<8x32xf32> to vector<2x32xf32>
    %275 = vector.extract_strided_slice %179 {offsets = [2, 0], sizes = [2, 32], strides = [1, 1]} : vector<8x32xf32> to vector<2x32xf32>
    %276 = vector.extract_strided_slice %180 {offsets = [2, 0], sizes = [2, 32], strides = [1, 1]} : vector<8x32xf32> to vector<2x32xf32>
    %c0_239 = arith.constant 0 : index
    %c0_240 = arith.constant 0 : index
    %c0_241 = arith.constant 0 : index
    %277 = vector.load %arg19[%c0_239, %c0_240, %c0_241] : memref<3x32x32xf32, #tpu.memory_space<vmem>>, vector<1x32x32xf32>
    %278 = vector.shape_cast %277 : vector<1x32x32xf32> to vector<32x32xf32>
    %cst_242 = arith.constant dense<0.000000e+00> : vector<2x32xf32>
    %279 = tpu.matmul %229, %278, %cst_242 {dimension_numbers = #tpu.dot_dimension_numbers<[1], [0], [0], [1], [0, 0, 1, 1], [], []>} : vector<2x32xf32>, vector<32x32xf32>, vector<2x32xf32> -> vector<2x32xf32>
    %c0_243 = arith.constant 0 : index
    %c0_244 = arith.constant 0 : index
    %c0_245 = arith.constant 0 : index
    %280 = vector.load %arg20[%c0_243, %c0_244, %c0_245] : memref<3x1x32xf32, #tpu.memory_space<vmem>>, vector<1x1x32xf32>
    %281 = vector.shape_cast %280 : vector<1x1x32xf32> to vector<1x32xf32>
    %282 = vector.broadcast %281 : vector<1x32xf32> to vector<2x32xf32>
    %283 = arith.addf %279, %282 : vector<2x32xf32>
    %c1_246 = arith.constant 1 : index
    %c0_247 = arith.constant 0 : index
    %c0_248 = arith.constant 0 : index
    %284 = vector.load %arg19[%c1_246, %c0_247, %c0_248] : memref<3x32x32xf32, #tpu.memory_space<vmem>>, vector<1x32x32xf32>
    %285 = vector.shape_cast %284 : vector<1x32x32xf32> to vector<32x32xf32>
    %cst_249 = arith.constant dense<0.000000e+00> : vector<2x32xf32>
    %286 = tpu.matmul %229, %285, %cst_249 {dimension_numbers = #tpu.dot_dimension_numbers<[1], [0], [0], [1], [0, 0, 1, 1], [], []>} : vector<2x32xf32>, vector<32x32xf32>, vector<2x32xf32> -> vector<2x32xf32>
    %c1_250 = arith.constant 1 : index
    %c0_251 = arith.constant 0 : index
    %c0_252 = arith.constant 0 : index
    %287 = vector.load %arg20[%c1_250, %c0_251, %c0_252] : memref<3x1x32xf32, #tpu.memory_space<vmem>>, vector<1x1x32xf32>
    %288 = vector.shape_cast %287 : vector<1x1x32xf32> to vector<1x32xf32>
    %289 = vector.broadcast %288 : vector<1x32xf32> to vector<2x32xf32>
    %290 = arith.addf %286, %289 : vector<2x32xf32>
    %c2_253 = arith.constant 2 : index
    %c0_254 = arith.constant 0 : index
    %c0_255 = arith.constant 0 : index
    %291 = vector.load %arg19[%c2_253, %c0_254, %c0_255] : memref<3x32x32xf32, #tpu.memory_space<vmem>>, vector<1x32x32xf32>
    %292 = vector.shape_cast %291 : vector<1x32x32xf32> to vector<32x32xf32>
    %cst_256 = arith.constant dense<0.000000e+00> : vector<2x32xf32>
    %293 = tpu.matmul %229, %292, %cst_256 {dimension_numbers = #tpu.dot_dimension_numbers<[1], [0], [0], [1], [0, 0, 1, 1], [], []>} : vector<2x32xf32>, vector<32x32xf32>, vector<2x32xf32> -> vector<2x32xf32>
    %c2_257 = arith.constant 2 : index
    %c0_258 = arith.constant 0 : index
    %c0_259 = arith.constant 0 : index
    %294 = vector.load %arg20[%c2_257, %c0_258, %c0_259] : memref<3x1x32xf32, #tpu.memory_space<vmem>>, vector<1x1x32xf32>
    %295 = vector.shape_cast %294 : vector<1x1x32xf32> to vector<1x32xf32>
    %296 = vector.broadcast %295 : vector<1x32xf32> to vector<2x32xf32>
    %297 = arith.addf %293, %296 : vector<2x32xf32>
    %298 = arith.addf %274, %283 : vector<2x32xf32>
    %299 = arith.negf %298 : vector<2x32xf32>
    %300 = math.exp %299 : vector<2x32xf32>
    %cst_260 = arith.constant 1.000000e+00 : f32
    %301 = vector.broadcast %cst_260 : f32 to vector<2x32xf32>
    %302 = arith.addf %301, %300 : vector<2x32xf32>
    %303 = arith.divf %301, %302 : vector<2x32xf32>
    %304 = arith.addf %275, %290 : vector<2x32xf32>
    %305 = arith.negf %304 : vector<2x32xf32>
    %306 = math.exp %305 : vector<2x32xf32>
    %cst_261 = arith.constant 1.000000e+00 : f32
    %307 = vector.broadcast %cst_261 : f32 to vector<2x32xf32>
    %308 = arith.addf %307, %306 : vector<2x32xf32>
    %309 = arith.divf %307, %308 : vector<2x32xf32>
    %310 = arith.mulf %303, %297 : vector<2x32xf32>
    %311 = arith.addf %276, %310 : vector<2x32xf32>
    %312 = math.tanh %311 : vector<2x32xf32>
    %cst_262 = arith.constant 1.000000e+00 : f32
    %313 = vector.broadcast %cst_262 : f32 to vector<2x32xf32>
    %314 = arith.subf %313, %309 : vector<2x32xf32>
    %315 = arith.mulf %314, %312 : vector<2x32xf32>
    %316 = arith.mulf %309, %229 : vector<2x32xf32>
    %317 = arith.addf %315, %316 : vector<2x32xf32>
    %318 = vector.extract_strided_slice %181 {offsets = [4, 0], sizes = [2, 32], strides = [1, 1]} : vector<8x32xf32> to vector<2x32xf32>
    %319 = vector.extract_strided_slice %182 {offsets = [4, 0], sizes = [2, 32], strides = [1, 1]} : vector<8x32xf32> to vector<2x32xf32>
    %320 = vector.extract_strided_slice %183 {offsets = [4, 0], sizes = [2, 32], strides = [1, 1]} : vector<8x32xf32> to vector<2x32xf32>
    %c0_263 = arith.constant 0 : index
    %c0_264 = arith.constant 0 : index
    %c0_265 = arith.constant 0 : index
    %321 = vector.load %arg21[%c0_263, %c0_264, %c0_265] : memref<3x32x32xf32, #tpu.memory_space<vmem>>, vector<1x32x32xf32>
    %322 = vector.shape_cast %321 : vector<1x32x32xf32> to vector<32x32xf32>
    %cst_266 = arith.constant dense<0.000000e+00> : vector<2x32xf32>
    %323 = tpu.matmul %273, %322, %cst_266 {dimension_numbers = #tpu.dot_dimension_numbers<[1], [0], [0], [1], [0, 0, 1, 1], [], []>} : vector<2x32xf32>, vector<32x32xf32>, vector<2x32xf32> -> vector<2x32xf32>
    %c0_267 = arith.constant 0 : index
    %c0_268 = arith.constant 0 : index
    %c0_269 = arith.constant 0 : index
    %324 = vector.load %arg22[%c0_267, %c0_268, %c0_269] : memref<3x1x32xf32, #tpu.memory_space<vmem>>, vector<1x1x32xf32>
    %325 = vector.shape_cast %324 : vector<1x1x32xf32> to vector<1x32xf32>
    %326 = vector.broadcast %325 : vector<1x32xf32> to vector<2x32xf32>
    %327 = arith.addf %323, %326 : vector<2x32xf32>
    %c1_270 = arith.constant 1 : index
    %c0_271 = arith.constant 0 : index
    %c0_272 = arith.constant 0 : index
    %328 = vector.load %arg21[%c1_270, %c0_271, %c0_272] : memref<3x32x32xf32, #tpu.memory_space<vmem>>, vector<1x32x32xf32>
    %329 = vector.shape_cast %328 : vector<1x32x32xf32> to vector<32x32xf32>
    %cst_273 = arith.constant dense<0.000000e+00> : vector<2x32xf32>
    %330 = tpu.matmul %273, %329, %cst_273 {dimension_numbers = #tpu.dot_dimension_numbers<[1], [0], [0], [1], [0, 0, 1, 1], [], []>} : vector<2x32xf32>, vector<32x32xf32>, vector<2x32xf32> -> vector<2x32xf32>
    %c1_274 = arith.constant 1 : index
    %c0_275 = arith.constant 0 : index
    %c0_276 = arith.constant 0 : index
    %331 = vector.load %arg22[%c1_274, %c0_275, %c0_276] : memref<3x1x32xf32, #tpu.memory_space<vmem>>, vector<1x1x32xf32>
    %332 = vector.shape_cast %331 : vector<1x1x32xf32> to vector<1x32xf32>
    %333 = vector.broadcast %332 : vector<1x32xf32> to vector<2x32xf32>
    %334 = arith.addf %330, %333 : vector<2x32xf32>
    %c2_277 = arith.constant 2 : index
    %c0_278 = arith.constant 0 : index
    %c0_279 = arith.constant 0 : index
    %335 = vector.load %arg21[%c2_277, %c0_278, %c0_279] : memref<3x32x32xf32, #tpu.memory_space<vmem>>, vector<1x32x32xf32>
    %336 = vector.shape_cast %335 : vector<1x32x32xf32> to vector<32x32xf32>
    %cst_280 = arith.constant dense<0.000000e+00> : vector<2x32xf32>
    %337 = tpu.matmul %273, %336, %cst_280 {dimension_numbers = #tpu.dot_dimension_numbers<[1], [0], [0], [1], [0, 0, 1, 1], [], []>} : vector<2x32xf32>, vector<32x32xf32>, vector<2x32xf32> -> vector<2x32xf32>
    %c2_281 = arith.constant 2 : index
    %c0_282 = arith.constant 0 : index
    %c0_283 = arith.constant 0 : index
    %338 = vector.load %arg22[%c2_281, %c0_282, %c0_283] : memref<3x1x32xf32, #tpu.memory_space<vmem>>, vector<1x1x32xf32>
    %339 = vector.shape_cast %338 : vector<1x1x32xf32> to vector<1x32xf32>
    %340 = vector.broadcast %339 : vector<1x32xf32> to vector<2x32xf32>
    %341 = arith.addf %337, %340 : vector<2x32xf32>
    %342 = arith.addf %318, %327 : vector<2x32xf32>
    %343 = arith.negf %342 : vector<2x32xf32>
    %344 = math.exp %343 : vector<2x32xf32>
    %cst_284 = arith.constant 1.000000e+00 : f32
    %345 = vector.broadcast %cst_284 : f32 to vector<2x32xf32>
    %346 = arith.addf %345, %344 : vector<2x32xf32>
    %347 = arith.divf %345, %346 : vector<2x32xf32>
    %348 = arith.addf %319, %334 : vector<2x32xf32>
    %349 = arith.negf %348 : vector<2x32xf32>
    %350 = math.exp %349 : vector<2x32xf32>
    %cst_285 = arith.constant 1.000000e+00 : f32
    %351 = vector.broadcast %cst_285 : f32 to vector<2x32xf32>
    %352 = arith.addf %351, %350 : vector<2x32xf32>
    %353 = arith.divf %351, %352 : vector<2x32xf32>
    %354 = arith.mulf %347, %341 : vector<2x32xf32>
    %355 = arith.addf %320, %354 : vector<2x32xf32>
    %356 = math.tanh %355 : vector<2x32xf32>
    %cst_286 = arith.constant 1.000000e+00 : f32
    %357 = vector.broadcast %cst_286 : f32 to vector<2x32xf32>
    %358 = arith.subf %357, %353 : vector<2x32xf32>
    %359 = arith.mulf %358, %356 : vector<2x32xf32>
    %360 = arith.mulf %353, %273 : vector<2x32xf32>
    %361 = arith.addf %359, %360 : vector<2x32xf32>
    %362 = vector.extract_strided_slice %178 {offsets = [4, 0], sizes = [2, 32], strides = [1, 1]} : vector<8x32xf32> to vector<2x32xf32>
    %363 = vector.extract_strided_slice %179 {offsets = [4, 0], sizes = [2, 32], strides = [1, 1]} : vector<8x32xf32> to vector<2x32xf32>
    %364 = vector.extract_strided_slice %180 {offsets = [4, 0], sizes = [2, 32], strides = [1, 1]} : vector<8x32xf32> to vector<2x32xf32>
    %c0_287 = arith.constant 0 : index
    %c0_288 = arith.constant 0 : index
    %c0_289 = arith.constant 0 : index
    %365 = vector.load %arg19[%c0_287, %c0_288, %c0_289] : memref<3x32x32xf32, #tpu.memory_space<vmem>>, vector<1x32x32xf32>
    %366 = vector.shape_cast %365 : vector<1x32x32xf32> to vector<32x32xf32>
    %cst_290 = arith.constant dense<0.000000e+00> : vector<2x32xf32>
    %367 = tpu.matmul %317, %366, %cst_290 {dimension_numbers = #tpu.dot_dimension_numbers<[1], [0], [0], [1], [0, 0, 1, 1], [], []>} : vector<2x32xf32>, vector<32x32xf32>, vector<2x32xf32> -> vector<2x32xf32>
    %c0_291 = arith.constant 0 : index
    %c0_292 = arith.constant 0 : index
    %c0_293 = arith.constant 0 : index
    %368 = vector.load %arg20[%c0_291, %c0_292, %c0_293] : memref<3x1x32xf32, #tpu.memory_space<vmem>>, vector<1x1x32xf32>
    %369 = vector.shape_cast %368 : vector<1x1x32xf32> to vector<1x32xf32>
    %370 = vector.broadcast %369 : vector<1x32xf32> to vector<2x32xf32>
    %371 = arith.addf %367, %370 : vector<2x32xf32>
    %c1_294 = arith.constant 1 : index
    %c0_295 = arith.constant 0 : index
    %c0_296 = arith.constant 0 : index
    %372 = vector.load %arg19[%c1_294, %c0_295, %c0_296] : memref<3x32x32xf32, #tpu.memory_space<vmem>>, vector<1x32x32xf32>
    %373 = vector.shape_cast %372 : vector<1x32x32xf32> to vector<32x32xf32>
    %cst_297 = arith.constant dense<0.000000e+00> : vector<2x32xf32>
    %374 = tpu.matmul %317, %373, %cst_297 {dimension_numbers = #tpu.dot_dimension_numbers<[1], [0], [0], [1], [0, 0, 1, 1], [], []>} : vector<2x32xf32>, vector<32x32xf32>, vector<2x32xf32> -> vector<2x32xf32>
    %c1_298 = arith.constant 1 : index
    %c0_299 = arith.constant 0 : index
    %c0_300 = arith.constant 0 : index
    %375 = vector.load %arg20[%c1_298, %c0_299, %c0_300] : memref<3x1x32xf32, #tpu.memory_space<vmem>>, vector<1x1x32xf32>
    %376 = vector.shape_cast %375 : vector<1x1x32xf32> to vector<1x32xf32>
    %377 = vector.broadcast %376 : vector<1x32xf32> to vector<2x32xf32>
    %378 = arith.addf %374, %377 : vector<2x32xf32>
    %c2_301 = arith.constant 2 : index
    %c0_302 = arith.constant 0 : index
    %c0_303 = arith.constant 0 : index
    %379 = vector.load %arg19[%c2_301, %c0_302, %c0_303] : memref<3x32x32xf32, #tpu.memory_space<vmem>>, vector<1x32x32xf32>
    %380 = vector.shape_cast %379 : vector<1x32x32xf32> to vector<32x32xf32>
    %cst_304 = arith.constant dense<0.000000e+00> : vector<2x32xf32>
    %381 = tpu.matmul %317, %380, %cst_304 {dimension_numbers = #tpu.dot_dimension_numbers<[1], [0], [0], [1], [0, 0, 1, 1], [], []>} : vector<2x32xf32>, vector<32x32xf32>, vector<2x32xf32> -> vector<2x32xf32>
    %c2_305 = arith.constant 2 : index
    %c0_306 = arith.constant 0 : index
    %c0_307 = arith.constant 0 : index
    %382 = vector.load %arg20[%c2_305, %c0_306, %c0_307] : memref<3x1x32xf32, #tpu.memory_space<vmem>>, vector<1x1x32xf32>
    %383 = vector.shape_cast %382 : vector<1x1x32xf32> to vector<1x32xf32>
    %384 = vector.broadcast %383 : vector<1x32xf32> to vector<2x32xf32>
    %385 = arith.addf %381, %384 : vector<2x32xf32>
    %386 = arith.addf %362, %371 : vector<2x32xf32>
    %387 = arith.negf %386 : vector<2x32xf32>
    %388 = math.exp %387 : vector<2x32xf32>
    %cst_308 = arith.constant 1.000000e+00 : f32
    %389 = vector.broadcast %cst_308 : f32 to vector<2x32xf32>
    %390 = arith.addf %389, %388 : vector<2x32xf32>
    %391 = arith.divf %389, %390 : vector<2x32xf32>
    %392 = arith.addf %363, %378 : vector<2x32xf32>
    %393 = arith.negf %392 : vector<2x32xf32>
    %394 = math.exp %393 : vector<2x32xf32>
    %cst_309 = arith.constant 1.000000e+00 : f32
    %395 = vector.broadcast %cst_309 : f32 to vector<2x32xf32>
    %396 = arith.addf %395, %394 : vector<2x32xf32>
    %397 = arith.divf %395, %396 : vector<2x32xf32>
    %398 = arith.mulf %391, %385 : vector<2x32xf32>
    %399 = arith.addf %364, %398 : vector<2x32xf32>
    %400 = math.tanh %399 : vector<2x32xf32>
    %cst_310 = arith.constant 1.000000e+00 : f32
    %401 = vector.broadcast %cst_310 : f32 to vector<2x32xf32>
    %402 = arith.subf %401, %397 : vector<2x32xf32>
    %403 = arith.mulf %402, %400 : vector<2x32xf32>
    %404 = arith.mulf %397, %317 : vector<2x32xf32>
    %405 = arith.addf %403, %404 : vector<2x32xf32>
    %406 = vector.extract_strided_slice %181 {offsets = [2, 0], sizes = [2, 32], strides = [1, 1]} : vector<8x32xf32> to vector<2x32xf32>
    %407 = vector.extract_strided_slice %182 {offsets = [2, 0], sizes = [2, 32], strides = [1, 1]} : vector<8x32xf32> to vector<2x32xf32>
    %408 = vector.extract_strided_slice %183 {offsets = [2, 0], sizes = [2, 32], strides = [1, 1]} : vector<8x32xf32> to vector<2x32xf32>
    %c0_311 = arith.constant 0 : index
    %c0_312 = arith.constant 0 : index
    %c0_313 = arith.constant 0 : index
    %409 = vector.load %arg21[%c0_311, %c0_312, %c0_313] : memref<3x32x32xf32, #tpu.memory_space<vmem>>, vector<1x32x32xf32>
    %410 = vector.shape_cast %409 : vector<1x32x32xf32> to vector<32x32xf32>
    %cst_314 = arith.constant dense<0.000000e+00> : vector<2x32xf32>
    %411 = tpu.matmul %361, %410, %cst_314 {dimension_numbers = #tpu.dot_dimension_numbers<[1], [0], [0], [1], [0, 0, 1, 1], [], []>} : vector<2x32xf32>, vector<32x32xf32>, vector<2x32xf32> -> vector<2x32xf32>
    %c0_315 = arith.constant 0 : index
    %c0_316 = arith.constant 0 : index
    %c0_317 = arith.constant 0 : index
    %412 = vector.load %arg22[%c0_315, %c0_316, %c0_317] : memref<3x1x32xf32, #tpu.memory_space<vmem>>, vector<1x1x32xf32>
    %413 = vector.shape_cast %412 : vector<1x1x32xf32> to vector<1x32xf32>
    %414 = vector.broadcast %413 : vector<1x32xf32> to vector<2x32xf32>
    %415 = arith.addf %411, %414 : vector<2x32xf32>
    %c1_318 = arith.constant 1 : index
    %c0_319 = arith.constant 0 : index
    %c0_320 = arith.constant 0 : index
    %416 = vector.load %arg21[%c1_318, %c0_319, %c0_320] : memref<3x32x32xf32, #tpu.memory_space<vmem>>, vector<1x32x32xf32>
    %417 = vector.shape_cast %416 : vector<1x32x32xf32> to vector<32x32xf32>
    %cst_321 = arith.constant dense<0.000000e+00> : vector<2x32xf32>
    %418 = tpu.matmul %361, %417, %cst_321 {dimension_numbers = #tpu.dot_dimension_numbers<[1], [0], [0], [1], [0, 0, 1, 1], [], []>} : vector<2x32xf32>, vector<32x32xf32>, vector<2x32xf32> -> vector<2x32xf32>
    %c1_322 = arith.constant 1 : index
    %c0_323 = arith.constant 0 : index
    %c0_324 = arith.constant 0 : index
    %419 = vector.load %arg22[%c1_322, %c0_323, %c0_324] : memref<3x1x32xf32, #tpu.memory_space<vmem>>, vector<1x1x32xf32>
    %420 = vector.shape_cast %419 : vector<1x1x32xf32> to vector<1x32xf32>
    %421 = vector.broadcast %420 : vector<1x32xf32> to vector<2x32xf32>
    %422 = arith.addf %418, %421 : vector<2x32xf32>
    %c2_325 = arith.constant 2 : index
    %c0_326 = arith.constant 0 : index
    %c0_327 = arith.constant 0 : index
    %423 = vector.load %arg21[%c2_325, %c0_326, %c0_327] : memref<3x32x32xf32, #tpu.memory_space<vmem>>, vector<1x32x32xf32>
    %424 = vector.shape_cast %423 : vector<1x32x32xf32> to vector<32x32xf32>
    %cst_328 = arith.constant dense<0.000000e+00> : vector<2x32xf32>
    %425 = tpu.matmul %361, %424, %cst_328 {dimension_numbers = #tpu.dot_dimension_numbers<[1], [0], [0], [1], [0, 0, 1, 1], [], []>} : vector<2x32xf32>, vector<32x32xf32>, vector<2x32xf32> -> vector<2x32xf32>
    %c2_329 = arith.constant 2 : index
    %c0_330 = arith.constant 0 : index
    %c0_331 = arith.constant 0 : index
    %426 = vector.load %arg22[%c2_329, %c0_330, %c0_331] : memref<3x1x32xf32, #tpu.memory_space<vmem>>, vector<1x1x32xf32>
    %427 = vector.shape_cast %426 : vector<1x1x32xf32> to vector<1x32xf32>
    %428 = vector.broadcast %427 : vector<1x32xf32> to vector<2x32xf32>
    %429 = arith.addf %425, %428 : vector<2x32xf32>
    %430 = arith.addf %406, %415 : vector<2x32xf32>
    %431 = arith.negf %430 : vector<2x32xf32>
    %432 = math.exp %431 : vector<2x32xf32>
    %cst_332 = arith.constant 1.000000e+00 : f32
    %433 = vector.broadcast %cst_332 : f32 to vector<2x32xf32>
    %434 = arith.addf %433, %432 : vector<2x32xf32>
    %435 = arith.divf %433, %434 : vector<2x32xf32>
    %436 = arith.addf %407, %422 : vector<2x32xf32>
    %437 = arith.negf %436 : vector<2x32xf32>
    %438 = math.exp %437 : vector<2x32xf32>
    %cst_333 = arith.constant 1.000000e+00 : f32
    %439 = vector.broadcast %cst_333 : f32 to vector<2x32xf32>
    %440 = arith.addf %439, %438 : vector<2x32xf32>
    %441 = arith.divf %439, %440 : vector<2x32xf32>
    %442 = arith.mulf %435, %429 : vector<2x32xf32>
    %443 = arith.addf %408, %442 : vector<2x32xf32>
    %444 = math.tanh %443 : vector<2x32xf32>
    %cst_334 = arith.constant 1.000000e+00 : f32
    %445 = vector.broadcast %cst_334 : f32 to vector<2x32xf32>
    %446 = arith.subf %445, %441 : vector<2x32xf32>
    %447 = arith.mulf %446, %444 : vector<2x32xf32>
    %448 = arith.mulf %441, %361 : vector<2x32xf32>
    %449 = arith.addf %447, %448 : vector<2x32xf32>
    %450 = vector.extract_strided_slice %178 {offsets = [6, 0], sizes = [2, 32], strides = [1, 1]} : vector<8x32xf32> to vector<2x32xf32>
    %451 = vector.extract_strided_slice %179 {offsets = [6, 0], sizes = [2, 32], strides = [1, 1]} : vector<8x32xf32> to vector<2x32xf32>
    %452 = vector.extract_strided_slice %180 {offsets = [6, 0], sizes = [2, 32], strides = [1, 1]} : vector<8x32xf32> to vector<2x32xf32>
    %c0_335 = arith.constant 0 : index
    %c0_336 = arith.constant 0 : index
    %c0_337 = arith.constant 0 : index
    %453 = vector.load %arg19[%c0_335, %c0_336, %c0_337] : memref<3x32x32xf32, #tpu.memory_space<vmem>>, vector<1x32x32xf32>
    %454 = vector.shape_cast %453 : vector<1x32x32xf32> to vector<32x32xf32>
    %cst_338 = arith.constant dense<0.000000e+00> : vector<2x32xf32>
    %455 = tpu.matmul %405, %454, %cst_338 {dimension_numbers = #tpu.dot_dimension_numbers<[1], [0], [0], [1], [0, 0, 1, 1], [], []>} : vector<2x32xf32>, vector<32x32xf32>, vector<2x32xf32> -> vector<2x32xf32>
    %c0_339 = arith.constant 0 : index
    %c0_340 = arith.constant 0 : index
    %c0_341 = arith.constant 0 : index
    %456 = vector.load %arg20[%c0_339, %c0_340, %c0_341] : memref<3x1x32xf32, #tpu.memory_space<vmem>>, vector<1x1x32xf32>
    %457 = vector.shape_cast %456 : vector<1x1x32xf32> to vector<1x32xf32>
    %458 = vector.broadcast %457 : vector<1x32xf32> to vector<2x32xf32>
    %459 = arith.addf %455, %458 : vector<2x32xf32>
    %c1_342 = arith.constant 1 : index
    %c0_343 = arith.constant 0 : index
    %c0_344 = arith.constant 0 : index
    %460 = vector.load %arg19[%c1_342, %c0_343, %c0_344] : memref<3x32x32xf32, #tpu.memory_space<vmem>>, vector<1x32x32xf32>
    %461 = vector.shape_cast %460 : vector<1x32x32xf32> to vector<32x32xf32>
    %cst_345 = arith.constant dense<0.000000e+00> : vector<2x32xf32>
    %462 = tpu.matmul %405, %461, %cst_345 {dimension_numbers = #tpu.dot_dimension_numbers<[1], [0], [0], [1], [0, 0, 1, 1], [], []>} : vector<2x32xf32>, vector<32x32xf32>, vector<2x32xf32> -> vector<2x32xf32>
    %c1_346 = arith.constant 1 : index
    %c0_347 = arith.constant 0 : index
    %c0_348 = arith.constant 0 : index
    %463 = vector.load %arg20[%c1_346, %c0_347, %c0_348] : memref<3x1x32xf32, #tpu.memory_space<vmem>>, vector<1x1x32xf32>
    %464 = vector.shape_cast %463 : vector<1x1x32xf32> to vector<1x32xf32>
    %465 = vector.broadcast %464 : vector<1x32xf32> to vector<2x32xf32>
    %466 = arith.addf %462, %465 : vector<2x32xf32>
    %c2_349 = arith.constant 2 : index
    %c0_350 = arith.constant 0 : index
    %c0_351 = arith.constant 0 : index
    %467 = vector.load %arg19[%c2_349, %c0_350, %c0_351] : memref<3x32x32xf32, #tpu.memory_space<vmem>>, vector<1x32x32xf32>
    %468 = vector.shape_cast %467 : vector<1x32x32xf32> to vector<32x32xf32>
    %cst_352 = arith.constant dense<0.000000e+00> : vector<2x32xf32>
    %469 = tpu.matmul %405, %468, %cst_352 {dimension_numbers = #tpu.dot_dimension_numbers<[1], [0], [0], [1], [0, 0, 1, 1], [], []>} : vector<2x32xf32>, vector<32x32xf32>, vector<2x32xf32> -> vector<2x32xf32>
    %c2_353 = arith.constant 2 : index
    %c0_354 = arith.constant 0 : index
    %c0_355 = arith.constant 0 : index
    %470 = vector.load %arg20[%c2_353, %c0_354, %c0_355] : memref<3x1x32xf32, #tpu.memory_space<vmem>>, vector<1x1x32xf32>
    %471 = vector.shape_cast %470 : vector<1x1x32xf32> to vector<1x32xf32>
    %472 = vector.broadcast %471 : vector<1x32xf32> to vector<2x32xf32>
    %473 = arith.addf %469, %472 : vector<2x32xf32>
    %474 = arith.addf %450, %459 : vector<2x32xf32>
    %475 = arith.negf %474 : vector<2x32xf32>
    %476 = math.exp %475 : vector<2x32xf32>
    %cst_356 = arith.constant 1.000000e+00 : f32
    %477 = vector.broadcast %cst_356 : f32 to vector<2x32xf32>
    %478 = arith.addf %477, %476 : vector<2x32xf32>
    %479 = arith.divf %477, %478 : vector<2x32xf32>
    %480 = arith.addf %451, %466 : vector<2x32xf32>
    %481 = arith.negf %480 : vector<2x32xf32>
    %482 = math.exp %481 : vector<2x32xf32>
    %cst_357 = arith.constant 1.000000e+00 : f32
    %483 = vector.broadcast %cst_357 : f32 to vector<2x32xf32>
    %484 = arith.addf %483, %482 : vector<2x32xf32>
    %485 = arith.divf %483, %484 : vector<2x32xf32>
    %486 = arith.mulf %479, %473 : vector<2x32xf32>
    %487 = arith.addf %452, %486 : vector<2x32xf32>
    %488 = math.tanh %487 : vector<2x32xf32>
    %cst_358 = arith.constant 1.000000e+00 : f32
    %489 = vector.broadcast %cst_358 : f32 to vector<2x32xf32>
    %490 = arith.subf %489, %485 : vector<2x32xf32>
    %491 = arith.mulf %490, %488 : vector<2x32xf32>
    %492 = arith.mulf %485, %405 : vector<2x32xf32>
    %493 = arith.addf %491, %492 : vector<2x32xf32>
    %494 = vector.extract_strided_slice %181 {offsets = [0, 0], sizes = [2, 32], strides = [1, 1]} : vector<8x32xf32> to vector<2x32xf32>
    %495 = vector.extract_strided_slice %182 {offsets = [0, 0], sizes = [2, 32], strides = [1, 1]} : vector<8x32xf32> to vector<2x32xf32>
    %496 = vector.extract_strided_slice %183 {offsets = [0, 0], sizes = [2, 32], strides = [1, 1]} : vector<8x32xf32> to vector<2x32xf32>
    %c0_359 = arith.constant 0 : index
    %c0_360 = arith.constant 0 : index
    %c0_361 = arith.constant 0 : index
    %497 = vector.load %arg21[%c0_359, %c0_360, %c0_361] : memref<3x32x32xf32, #tpu.memory_space<vmem>>, vector<1x32x32xf32>
    %498 = vector.shape_cast %497 : vector<1x32x32xf32> to vector<32x32xf32>
    %cst_362 = arith.constant dense<0.000000e+00> : vector<2x32xf32>
    %499 = tpu.matmul %449, %498, %cst_362 {dimension_numbers = #tpu.dot_dimension_numbers<[1], [0], [0], [1], [0, 0, 1, 1], [], []>} : vector<2x32xf32>, vector<32x32xf32>, vector<2x32xf32> -> vector<2x32xf32>
    %c0_363 = arith.constant 0 : index
    %c0_364 = arith.constant 0 : index
    %c0_365 = arith.constant 0 : index
    %500 = vector.load %arg22[%c0_363, %c0_364, %c0_365] : memref<3x1x32xf32, #tpu.memory_space<vmem>>, vector<1x1x32xf32>
    %501 = vector.shape_cast %500 : vector<1x1x32xf32> to vector<1x32xf32>
    %502 = vector.broadcast %501 : vector<1x32xf32> to vector<2x32xf32>
    %503 = arith.addf %499, %502 : vector<2x32xf32>
    %c1_366 = arith.constant 1 : index
    %c0_367 = arith.constant 0 : index
    %c0_368 = arith.constant 0 : index
    %504 = vector.load %arg21[%c1_366, %c0_367, %c0_368] : memref<3x32x32xf32, #tpu.memory_space<vmem>>, vector<1x32x32xf32>
    %505 = vector.shape_cast %504 : vector<1x32x32xf32> to vector<32x32xf32>
    %cst_369 = arith.constant dense<0.000000e+00> : vector<2x32xf32>
    %506 = tpu.matmul %449, %505, %cst_369 {dimension_numbers = #tpu.dot_dimension_numbers<[1], [0], [0], [1], [0, 0, 1, 1], [], []>} : vector<2x32xf32>, vector<32x32xf32>, vector<2x32xf32> -> vector<2x32xf32>
    %c1_370 = arith.constant 1 : index
    %c0_371 = arith.constant 0 : index
    %c0_372 = arith.constant 0 : index
    %507 = vector.load %arg22[%c1_370, %c0_371, %c0_372] : memref<3x1x32xf32, #tpu.memory_space<vmem>>, vector<1x1x32xf32>
    %508 = vector.shape_cast %507 : vector<1x1x32xf32> to vector<1x32xf32>
    %509 = vector.broadcast %508 : vector<1x32xf32> to vector<2x32xf32>
    %510 = arith.addf %506, %509 : vector<2x32xf32>
    %c2_373 = arith.constant 2 : index
    %c0_374 = arith.constant 0 : index
    %c0_375 = arith.constant 0 : index
    %511 = vector.load %arg21[%c2_373, %c0_374, %c0_375] : memref<3x32x32xf32, #tpu.memory_space<vmem>>, vector<1x32x32xf32>
    %512 = vector.shape_cast %511 : vector<1x32x32xf32> to vector<32x32xf32>
    %cst_376 = arith.constant dense<0.000000e+00> : vector<2x32xf32>
    %513 = tpu.matmul %449, %512, %cst_376 {dimension_numbers = #tpu.dot_dimension_numbers<[1], [0], [0], [1], [0, 0, 1, 1], [], []>} : vector<2x32xf32>, vector<32x32xf32>, vector<2x32xf32> -> vector<2x32xf32>
    %c2_377 = arith.constant 2 : index
    %c0_378 = arith.constant 0 : index
    %c0_379 = arith.constant 0 : index
    %514 = vector.load %arg22[%c2_377, %c0_378, %c0_379] : memref<3x1x32xf32, #tpu.memory_space<vmem>>, vector<1x1x32xf32>
    %515 = vector.shape_cast %514 : vector<1x1x32xf32> to vector<1x32xf32>
    %516 = vector.broadcast %515 : vector<1x32xf32> to vector<2x32xf32>
    %517 = arith.addf %513, %516 : vector<2x32xf32>
    %518 = arith.addf %494, %503 : vector<2x32xf32>
    %519 = arith.negf %518 : vector<2x32xf32>
    %520 = math.exp %519 : vector<2x32xf32>
    %cst_380 = arith.constant 1.000000e+00 : f32
    %521 = vector.broadcast %cst_380 : f32 to vector<2x32xf32>
    %522 = arith.addf %521, %520 : vector<2x32xf32>
    %523 = arith.divf %521, %522 : vector<2x32xf32>
    %524 = arith.addf %495, %510 : vector<2x32xf32>
    %525 = arith.negf %524 : vector<2x32xf32>
    %526 = math.exp %525 : vector<2x32xf32>
    %cst_381 = arith.constant 1.000000e+00 : f32
    %527 = vector.broadcast %cst_381 : f32 to vector<2x32xf32>
    %528 = arith.addf %527, %526 : vector<2x32xf32>
    %529 = arith.divf %527, %528 : vector<2x32xf32>
    %530 = arith.mulf %523, %517 : vector<2x32xf32>
    %531 = arith.addf %496, %530 : vector<2x32xf32>
    %532 = math.tanh %531 : vector<2x32xf32>
    %cst_382 = arith.constant 1.000000e+00 : f32
    %533 = vector.broadcast %cst_382 : f32 to vector<2x32xf32>
    %534 = arith.subf %533, %529 : vector<2x32xf32>
    %535 = arith.mulf %534, %532 : vector<2x32xf32>
    %536 = arith.mulf %529, %449 : vector<2x32xf32>
    %537 = arith.addf %535, %536 : vector<2x32xf32>
    %538 = tpu.concatenate %229, %537 in 1 : vector<2x32xf32>, vector<2x32xf32> -> vector<2x64xf32>
    %539 = tpu.concatenate %317, %449 in 1 : vector<2x32xf32>, vector<2x32xf32> -> vector<2x64xf32>
    %540 = tpu.concatenate %405, %361 in 1 : vector<2x32xf32>, vector<2x32xf32> -> vector<2x64xf32>
    %541 = tpu.concatenate %493, %273 in 1 : vector<2x32xf32>, vector<2x32xf32> -> vector<2x64xf32>
    %542 = tpu.concatenate %538, %539, %540, %541 in 0 : vector<2x64xf32>, vector<2x64xf32>, vector<2x64xf32>, vector<2x64xf32> -> vector<8x64xf32>
    %c0_383 = arith.constant 0 : index
    %c0_384 = arith.constant 0 : index
    %543 = vector.load %arg23[%c0_383, %c0_384] : memref<64x64xf32, #tpu.memory_space<vmem>>, vector<64x64xf32>
    %cst_385 = arith.constant dense<0.000000e+00> : vector<8x64xf32>
    %544 = tpu.matmul %542, %543, %cst_385 {dimension_numbers = #tpu.dot_dimension_numbers<[1], [0], [0], [1], [0, 0, 1, 1], [], []>} : vector<8x64xf32>, vector<64x64xf32>, vector<8x64xf32> -> vector<8x64xf32>
    %c0_386 = arith.constant 0 : index
    %c0_387 = arith.constant 0 : index
    %545 = vector.load %arg24[%c0_386, %c0_387] : memref<1x64xf32, #tpu.memory_space<vmem>>, vector<1x64xf32>
    %546 = vector.broadcast %545 : vector<1x64xf32> to vector<8x64xf32>
    %547 = arith.addf %544, %546 : vector<8x64xf32>
    %548 = math.tanh %547 : vector<8x64xf32>
    %c0_388 = arith.constant 0 : index
    %c0_389 = arith.constant 0 : index
    %549 = vector.load %arg25[%c0_388, %c0_389] : memref<1x64xf32, #tpu.memory_space<vmem>>, vector<1x64xf32>
    %550 = vector.broadcast %549 : vector<1x64xf32> to vector<8x64xf32>
    %551 = arith.mulf %548, %550 : vector<8x64xf32>
    %cst_390 = arith.constant dense<0.000000e+00> : vector<8xf32>
    %552 = vector.multi_reduction <add>, %551, %cst_390 [1] : vector<8x64xf32> to vector<8xf32>
    %553 = vector.shape_cast %552 : vector<8xf32> to vector<8x1xf32>
    %c0_391 = arith.constant 0 : index
    %c0_392 = arith.constant 0 : index
    %554 = vector.load %arg26[%c0_391, %c0_392] : memref<1x1xf32, #tpu.memory_space<vmem>>, vector<1x1xf32>
    %555 = vector.broadcast %554 : vector<1x1xf32> to vector<8x1xf32>
    %556 = arith.addf %553, %555 : vector<8x1xf32>
    %557 = vector.extract_strided_slice %556 {offsets = [0, 0], sizes = [2, 1], strides = [1, 1]} : vector<8x1xf32> to vector<2x1xf32>
    %558 = vector.extract_strided_slice %556 {offsets = [2, 0], sizes = [2, 1], strides = [1, 1]} : vector<8x1xf32> to vector<2x1xf32>
    %559 = vector.extract_strided_slice %556 {offsets = [4, 0], sizes = [2, 1], strides = [1, 1]} : vector<8x1xf32> to vector<2x1xf32>
    %560 = vector.extract_strided_slice %556 {offsets = [6, 0], sizes = [2, 1], strides = [1, 1]} : vector<8x1xf32> to vector<2x1xf32>
    %561 = arith.maximumf %557, %558 : vector<2x1xf32>
    %562 = arith.maximumf %561, %559 : vector<2x1xf32>
    %563 = arith.maximumf %562, %560 : vector<2x1xf32>
    %564 = arith.subf %557, %563 : vector<2x1xf32>
    %565 = math.exp %564 : vector<2x1xf32>
    %566 = arith.subf %558, %563 : vector<2x1xf32>
    %567 = math.exp %566 : vector<2x1xf32>
    %568 = arith.subf %559, %563 : vector<2x1xf32>
    %569 = math.exp %568 : vector<2x1xf32>
    %570 = arith.subf %560, %563 : vector<2x1xf32>
    %571 = math.exp %570 : vector<2x1xf32>
    %572 = arith.addf %565, %567 : vector<2x1xf32>
    %573 = arith.addf %572, %569 : vector<2x1xf32>
    %574 = arith.addf %573, %571 : vector<2x1xf32>
    %575 = tpu.reciprocal %574 {approx = true} : vector<2x1xf32> -> vector<2x1xf32>
    %cst_393 = arith.constant 0.000000e+00 : f32
    %576 = vector.broadcast %cst_393 : f32 to vector<2x64xf32>
    %577 = arith.mulf %565, %575 : vector<2x1xf32>
    %578 = vector.broadcast %577 : vector<2x1xf32> to vector<2x64xf32>
    %579 = arith.mulf %578, %538 : vector<2x64xf32>
    %580 = arith.addf %576, %579 : vector<2x64xf32>
    %581 = arith.mulf %567, %575 : vector<2x1xf32>
    %582 = vector.broadcast %581 : vector<2x1xf32> to vector<2x64xf32>
    %583 = arith.mulf %582, %539 : vector<2x64xf32>
    %584 = arith.addf %580, %583 : vector<2x64xf32>
    %585 = arith.mulf %569, %575 : vector<2x1xf32>
    %586 = vector.broadcast %585 : vector<2x1xf32> to vector<2x64xf32>
    %587 = arith.mulf %586, %540 : vector<2x64xf32>
    %588 = arith.addf %584, %587 : vector<2x64xf32>
    %589 = arith.mulf %571, %575 : vector<2x1xf32>
    %590 = vector.broadcast %589 : vector<2x1xf32> to vector<2x64xf32>
    %591 = arith.mulf %590, %541 : vector<2x64xf32>
    %592 = arith.addf %588, %591 : vector<2x64xf32>
    %c0_394 = arith.constant 0 : index
    %c0_395 = arith.constant 0 : index
    %593 = vector.load %arg27[%c0_394, %c0_395] : memref<64x256xf32, #tpu.memory_space<vmem>>, vector<64x256xf32>
    %cst_396 = arith.constant dense<0.000000e+00> : vector<2x256xf32>
    %594 = tpu.matmul %592, %593, %cst_396 {dimension_numbers = #tpu.dot_dimension_numbers<[1], [0], [0], [1], [0, 0, 1, 1], [], []>} : vector<2x64xf32>, vector<64x256xf32>, vector<2x256xf32> -> vector<2x256xf32>
    %c0_397 = arith.constant 0 : index
    %c0_398 = arith.constant 0 : index
    %595 = vector.load %arg28[%c0_397, %c0_398] : memref<1x256xf32, #tpu.memory_space<vmem>>, vector<1x256xf32>
    %596 = vector.broadcast %595 : vector<1x256xf32> to vector<2x256xf32>
    %597 = arith.addf %594, %596 : vector<2x256xf32>
    %cst_399 = arith.constant 0.000000e+00 : f32
    %598 = vector.broadcast %cst_399 : f32 to vector<2x256xf32>
    %599 = arith.maximumf %597, %598 : vector<2x256xf32>
    %c0_400 = arith.constant 0 : index
    %c0_401 = arith.constant 0 : index
    %600 = vector.load %arg29[%c0_400, %c0_401] : memref<256x128xf32, #tpu.memory_space<vmem>>, vector<256x128xf32>
    %cst_402 = arith.constant dense<0.000000e+00> : vector<2x128xf32>
    %601 = tpu.matmul %599, %600, %cst_402 {dimension_numbers = #tpu.dot_dimension_numbers<[1], [0], [0], [1], [0, 0, 1, 1], [], []>} : vector<2x256xf32>, vector<256x128xf32>, vector<2x128xf32> -> vector<2x128xf32>
    %c0_403 = arith.constant 0 : index
    %c0_404 = arith.constant 0 : index
    %602 = vector.load %arg30[%c0_403, %c0_404] : memref<1x128xf32, #tpu.memory_space<vmem>>, vector<1x128xf32>
    %603 = vector.broadcast %602 : vector<1x128xf32> to vector<2x128xf32>
    %604 = arith.addf %601, %603 : vector<2x128xf32>
    %cst_405 = arith.constant 0.000000e+00 : f32
    %605 = vector.broadcast %cst_405 : f32 to vector<2x128xf32>
    %606 = arith.maximumf %604, %605 : vector<2x128xf32>
    %c0_406 = arith.constant 0 : index
    %c0_407 = arith.constant 0 : index
    %607 = vector.load %arg31[%c0_406, %c0_407] : memref<128x64xf32, #tpu.memory_space<vmem>>, vector<128x64xf32>
    %cst_408 = arith.constant dense<0.000000e+00> : vector<2x64xf32>
    %608 = tpu.matmul %606, %607, %cst_408 {dimension_numbers = #tpu.dot_dimension_numbers<[1], [0], [0], [1], [0, 0, 1, 1], [], []>} : vector<2x128xf32>, vector<128x64xf32>, vector<2x64xf32> -> vector<2x64xf32>
    %c0_409 = arith.constant 0 : index
    %c0_410 = arith.constant 0 : index
    %609 = vector.load %arg32[%c0_409, %c0_410] : memref<1x64xf32, #tpu.memory_space<vmem>>, vector<1x64xf32>
    %610 = vector.broadcast %609 : vector<1x64xf32> to vector<2x64xf32>
    %611 = arith.addf %608, %610 : vector<2x64xf32>
    %cst_411 = arith.constant 0.000000e+00 : f32
    %612 = vector.broadcast %cst_411 : f32 to vector<2x64xf32>
    %613 = arith.maximumf %611, %612 : vector<2x64xf32>
    %c0_412 = arith.constant 0 : index
    %c0_413 = arith.constant 0 : index
    %614 = vector.load %arg33[%c0_412, %c0_413] : memref<64x2xf32, #tpu.memory_space<vmem>>, vector<64x2xf32>
    %cst_414 = arith.constant dense<0.000000e+00> : vector<2x2xf32>
    %615 = tpu.matmul %613, %614, %cst_414 {dimension_numbers = #tpu.dot_dimension_numbers<[1], [0], [0], [1], [0, 0, 1, 1], [], []>} : vector<2x64xf32>, vector<64x2xf32>, vector<2x2xf32> -> vector<2x2xf32>
    %c0_415 = arith.constant 0 : index
    %c0_416 = arith.constant 0 : index
    %616 = vector.load %arg34[%c0_415, %c0_416] : memref<1x2xf32, #tpu.memory_space<vmem>>, vector<1x2xf32>
    %617 = vector.broadcast %616 : vector<1x2xf32> to vector<2x2xf32>
    %618 = arith.addf %615, %617 : vector<2x2xf32>
    %c0_417 = arith.constant 0 : index
    %c0_418 = arith.constant 0 : index
    %619 = vector.load %arg35[%c0_417, %c0_418] : memref<2x2xf32, #tpu.memory_space<vmem>>, vector<2x2xf32>
    tpu.vector_store %arg35[%c0_417, %c0_418], %618 {strides = array<i32>} : memref<2x2xf32, #tpu.memory_space<vmem>>, vector<2x2xf32>,
    return
  }
}

</mosaic_0001>

<bundles_post_ra>
// kernel: deep_pulse_detector.1
= control target key start
LH: loop header
LB: loop body
LE: loop exit
PB: predicated region body
PF: predicated region fallthrough
CT: control target
= control target key end

     0   :  { %s12976_s6 = smov 1   ;;  %s12977_s10 = smov 2   ;;  %s14414_s0 = inlined_call_operand.smem [shape: u32[36], index: -1, kind: input, shape index: {}] }
   0x1   :  { %s13054_s5 = sld [smem:[%s14414_s0]]   ;;  %s12978_s14 = smov 3  }
   0x2   :  { %s13059_s9 = sld [smem:[%s14414_s0 + %s12976_s6]]   ;;  %s12979_s18 = smov 4  }
   0x3   :  { %s13064_s13 = sld [smem:[%s14414_s0 + %s12977_s10]]   ;;  %s12980_s22 = smov 5  }
   0x4   :  { %s13069_s17 = sld [smem:[%s14414_s0 + %s12978_s14]]   ;;  %s12981_s26 = smov 6  }
   0x5   :  { %s13074_s21 = sld [smem:[%s14414_s0 + %s12979_s18]]   ;;  %s12982_s30 = smov 7  }
   0x6   :  { %s13079_s25 = sld [smem:[%s14414_s0 + %s12980_s22]]   ;;  %s12983_s4 = smov 8  }
   0x7   :  { %14430 = sst [smem:[#allocation52_spill]] %s13054_s5  ;;  %s12984_s10 = smov 9  }
   0x8   :  { %14431 = sst [smem:[#allocation53_spill]] %s13059_s9  ;;  %s12985_s15 = smov 10  }
   0x9   :  { %s13084_s29 = sld [smem:[%s14414_s0 + %s12981_s26]]   ;;  %s12986_s20 = smov 11  }
   0xa   :  { %s13089_s3 = sld [smem:[%s14414_s0 + %s12982_s30]]   ;;  %s12987_s26 = smov 12  }
   0xb   :  { %s13094_s8 = sld [smem:[%s14414_s0 + %s12983_s4]]   ;;  %s12988_s1 = smov 13  }
   0xc   :  { %s13099_s14 = sld [smem:[%s14414_s0 + %s12984_s10]]   ;;  %s12989_s7 = smov 14  }
   0xd   :  { %s13104_s19 = sld [smem:[%s14414_s0 + %s12985_s15]]   ;;  %s12990_s15 = smov 15  }
   0xe   :  { %s13109_s24 = sld [smem:[%s14414_s0 + %s12986_s20]]   ;;  %s12991_s22 = smov 16  }
   0xf   :  { %14432 = sst [smem:[#allocation54_spill]] %s13084_s29  ;;  %s12992_s28 = smov 17  }
  0x10   :  { %s13114_s30 = sld [smem:[%s14414_s0 + %s12987_s26]]   ;;  %s13002_s16 = smov 27  }
  0x11   :  { %s13119_s6 = sld [smem:[%s14414_s0 + %s12988_s1]]   ;;  %s13003_s23 = smov 28  }
  0x12   :  { %s13124_s12 = sld [smem:[%s14414_s0 + %s12989_s7]]   ;;  %s12993_s7 = smov 18  }
  0x13   :  { %s13129_s20 = sld [smem:[%s14414_s0 + %s12990_s15]]   ;;  %s12994_s15 = smov 19  }
  0x14   :  { %14433 = sst [smem:[#allocation55_spill]] %s13109_s24  ;;  %s13004_s1 = smov 29  }
  0x15   :  { %s13134_s27 = sld [smem:[%s14414_s0 + %s12991_s22]]   ;;  %s12995_s22 = smov 20  }
  0x16   :  { %s13139_s4 = sld [smem:[%s14414_s0 + %s12992_s28]]   ;;  %s12996_s28 = smov 21  }
  0x17   :  { %14434 = sst [smem:[#allocation56_spill]] %s13119_s6  ;;  %s13005_s10 = smov 30  }
  0x18   :  { %s13144_s29 = sld [smem:[%s14414_s0 + %s12993_s7]]   ;;  %s12997_s7 = smov 22  }
  0x19   :  { %14435 = sst [smem:[#allocation57_spill]] %s13129_s20 }
  0x1a   :  { %s13149_s20 = sld [smem:[%s14414_s0 + %s12994_s15]]   ;;  %s12998_s15 = smov 23  }
  0x1b   :  { %14436 = sst [smem:[#allocation58_spill]] %s13134_s27 }
  0x1c   :  { %14437 = sst [smem:[#allocation59_spill]] %s13139_s4 }
  0x1d   :  { %s13154_s9 = sld [smem:[%s14414_s0 + %s12995_s22]]   ;;  %s12999_s22 = smov 24  }
  0x1e   :  { %14438 = sst [smem:[#allocation60_spill]] %s13144_s29 }
  0x1f   :  { %s13159_s4 = sld [smem:[%s14414_s0 + %s12996_s28]]   ;;  %s13000_s28 = smov 25  }
  0x20   :  { %14439 = sst [smem:[#allocation61_spill]] %s13149_s20 }
  0x21   :  { %s13164_s29 = sld [smem:[%s14414_s0 + %s12997_s7]]   ;;  %s13001_s7 = smov 26  }
  0x22   :  { %s13169_s20 = sld [smem:[%s14414_s0 + %s12998_s15]]   ;;  %s13010_s15 = smov 35  }
  0x23   :  { %14440 = sst [smem:[#allocation62_spill]] %s13154_s9 }
  0x24   :  { %s13174_s9 = sld [smem:[%s14414_s0 + %s12999_s22]]  }
  0x25   :  { %s13179_s5 = sld [smem:[%s14414_s0 + %s13000_s28]]  }
  0x26   :  { %s13192_s27 = sld [smem:[%s14414_s0 + %s13003_s23]]   ;;  %s13007_s23 = smov 32  }
  0x27   :  { %14441 = sst [smem:[#allocation63_spill]] %s13164_s29 }
  0x28   :  { %14442 = sst [smem:[#allocation64_spill]] %s13169_s20 }
  0x29   :  { %s8883_s29 = sld [smem:[%s14414_s0 + %s13001_s7]]  }
  0x2a   :  { %s13187_s20 = sld [smem:[%s14414_s0 + %s13002_s16]]   ;;  %s13006_s16 = smov 31  }
  0x2b   :  { %14443 = sst [smem:[#allocation65_spill]] %s13179_s5 }
  0x2c   :  { %14444 = sst [smem:[#allocation66_spill]] %s13192_s27 }
  0x2d   :  { %s13197_s5 = sld [smem:[%s14414_s0 + %s13004_s1]]   ;;  %s13008_s1 = smov 33  }
  0x2e   :  { %s13202_s6 = sld [smem:[%s14414_s0 + %s13005_s10]]   ;;  %s13009_s10 = smov 34  }
  0x2f   :  { %s13207_s24 = sld [smem:[%s14414_s0 + %s13006_s16]]   ;;  %v76_v0 = vstv %s8883_s29 }
  0x30   :  { %s13212_s27 = sld [smem:[%s14414_s0 + %s13007_s23]]   ;;  %77 = vst [vmem:[#allocation2] sm:$0x1] %v76_v0 }
  0x31   :  { %s13217_s7 = sld [smem:[%s14414_s0 + %s13008_s1]]  }
  0x32   :  { %s13222_s16 = sld [smem:[%s14414_s0 + %s13009_s10]]  }
  0x33   :  { %14445 = sst [smem:[#allocation67_spill]] %s13197_s5 }
  0x34   :  { %s13227_s23 = sld [smem:[%s14414_s0 + %s13010_s15]]  }
  0x35   :  { %14446 = sst [smem:[#allocation68_spill]] %s13207_s24 }
  0x36   :  { %78 = vsyncpa [#allocation4], 0 }
  0x37   :  { %79 = vsyncpa [#allocation7], 0 }
  0x38   :  { %80 = vsyncpa [#allocation10], 0 }
  0x39   :  { %81 = vsyncpa [#allocation13], 0 }
  0x3a   :  { %82 = vsyncpa [#allocation16], 0 }
  0x3b   :  { %83 = vsyncpa [#allocation19], 0 }
  0x3c   :  { %84 = vsyncpa [#allocation22], 0 }
  0x3d   :  { %85 = vsyncpa [#allocation25], 0 }
  0x3e   :  { %86 = vsyncpa [#allocation28], 0 }
  0x3f   :  { %87 = vsyncpa [#allocation31], 0 }
  0x40   :  { %88 = vsyncpa [#allocation34], 0 }
  0x41   :  { %89 = vsyncpa [#allocation37], 0 }
  0x42   :  { %90 = vsyncpa [#allocation5], 0  ;;  %s13011_s5 = smov [#allocation6]   ;;  %s13012_s0 = smov [#allocation9]  }
  0x43   :  { %s112_s29 = sshll.u32 %s13011_s5, 4  ;;  %s136_s24 = sshll.u32 %s13012_s0, 4  ;;  %s113_s29 = int_to_ptr.vmem [resolvable:$true] %s112_s29  ;;  %s13229_s24 = int_to_ptr.vmem [resolvable:$true] %s136_s24 }
  0x44   :  { %s12444_s22 = scalar_lea.hbm %s13069_s17, 4096 }
  0x45   :  { %p12445_p0 = scmp.ne.s32.totalorder %s13069_s17, %s12444_s22  ;;  %p12448_p1 = scmp.lt.u32.totalorder %s12444_s22, %s13069_s17 }
  0x47   :  { %p12450_p2 = pnand %p12448_p1, %p12445_p0 }
  0x49   :  { %12453 = shalt.err (!%p12450_p2)
}
  0x4a   :  { %s12454_s26 = scalar_lea.vmem %s113_s29, 4096  ;;  %p12459_p4 = scmp.lt.s32.totalorder %s113_s29, %s113_s29 }
  0x4b   :  { %p12455_p3 = scmp.ne.s32.totalorder %s113_s29, %s12454_s26  ;;  %p12460_p5 = scmp.lt.s32.totalorder %s12454_s26, %s12454_s26 }
  0x4d   :  { %p12461_p6 = por %p12460_p5, %p12459_p4 }
  0x4f   :  { %p12462_p7 = pnand %p12461_p6, %p12455_p3 }
  0x51   :  { %12465 = shalt.err (!%p12462_p7)
}
  0x52   :  { %s13013_s1 = smov 128   ;;  %s13014_s28 = smov 8  }
  0x53   :  { %118 = dma.hbm_to_vmem [thread:$0]  %s13069_s17, 4096, %s113_s29, [#allocation7], %s13013_s1, %s13013_s1, %s13014_s28  }
  0x54   :  { %s12466_s2 = scalar_lea.hbm %s13079_s25, 2048 }
  0x55   :  { %p12467_p8 = scmp.ne.s32.totalorder %s13079_s25, %s12466_s2  ;;  %p12470_p9 = scmp.lt.u32.totalorder %s12466_s2, %s13079_s25 }
  0x57   :  { %p12472_p10 = pnand %p12470_p9, %p12467_p8 }
  0x59   :  { %12475 = shalt.err (!%p12472_p10)
}
  0x5a   :  { %s12476_s10 = scalar_lea.vmem %s13229_s24, 2048  ;;  %p12481_p12 = scmp.lt.s32.totalorder %s13229_s24, %s13229_s24 }
  0x5b   :  { %p12477_p11 = scmp.ne.s32.totalorder %s13229_s24, %s12476_s10  ;;  %p12482_p13 = scmp.lt.s32.totalorder %s12476_s10, %s12476_s10 }
  0x5d   :  { %p12483_p0 = por %p12482_p13, %p12481_p12 }
  0x5f   :  { %p12484_p1 = pnand %p12483_p0, %p12477_p11 }
  0x61   :  { %12487 = shalt.err (!%p12484_p1)
}
  0x62   :  { %142 = dma.hbm_to_vmem [thread:$0]  %s13079_s25, 2048, %s13229_s24, [#allocation10], %s13013_s1, %s13013_s1, %s13014_s28  }
  0x63   :  { %s13015_s17 = smov [#allocation12]   ;;  %s13016_s15 = smov [#allocation15]  }
  0x64   :  { %s162_s11 = sshll.u32 %s13015_s17, 4  ;;  %s187_s18 = sshll.u32 %s13016_s15, 4  ;;  %s163_s11 = int_to_ptr.vmem [resolvable:$true] %s162_s11  ;;  %s188_s18 = int_to_ptr.vmem [resolvable:$true] %s187_s18 }
  0x65   :  { %s12488_s5 = scalar_lea.hbm %s13094_s8, 256 }
  0x66   :  { %p12489_p2 = scmp.ne.s32.totalorder %s13094_s8, %s12488_s5  ;;  %p12492_p3 = scmp.lt.u32.totalorder %s12488_s5, %s13094_s8 }
  0x68   :  { %p12494_p4 = pnand %p12492_p3, %p12489_p2 }
  0x6a   :  { %12497 = shalt.err (!%p12494_p4)
}
  0x6b   :  { %s12498_s29 = scalar_lea.vmem %s163_s11, 256  ;;  %p12503_p6 = scmp.lt.s32.totalorder %s163_s11, %s163_s11 }
  0x6c   :  { %p12499_p5 = scmp.ne.s32.totalorder %s163_s11, %s12498_s29  ;;  %p12504_p7 = scmp.lt.s32.totalorder %s12498_s29, %s12498_s29 }
  0x6e   :  { %p12505_p8 = por %p12504_p7, %p12503_p6 }
  0x70   :  { %p12506_p9 = pnand %p12505_p8, %p12499_p5 }
  0x72   :  { %12509 = shalt.err (!%p12506_p9)
}
  0x73   :  { %168 = dma.hbm_to_vmem [thread:$0]  %s13094_s8, 256, %s163_s11, [#allocation13], %s13013_s1, %s13013_s1, %s13014_s28  }
  0x74   :  { %s12510_s25 = scalar_lea.hbm %s13104_s19, 16 }
  0x75   :  { %p12511_p10 = scmp.ne.s32.totalorder %s13104_s19, %s12510_s25  ;;  %p12514_p11 = scmp.lt.u32.totalorder %s12510_s25, %s13104_s19 }
  0x77   :  { %p12516_p12 = pnand %p12514_p11, %p12511_p10 }
  0x79   :  { %12519 = shalt.err (!%p12516_p12)
}
  0x7a   :  { %s12520_s0 = scalar_lea.vmem %s188_s18, 16  ;;  %s12524_s24 = scalar_lea.vmem %s188_s18, 32 }
  0x7b   :  { %p12521_p13 = scmp.ne.s32.totalorder %s188_s18, %s12520_s0  ;;  %p12525_p0 = scmp.lt.s32.totalorder %s188_s18, %s188_s18 }
  0x7c   :  { %p12526_p1 = scmp.lt.s32.totalorder %s12524_s24, %s12520_s0 }
  0x7e   :  { %p12527_p2 = por %p12526_p1, %p12525_p0 }
  0x80   :  { %p12528_p3 = pnand %p12527_p2, %p12521_p13 }
  0x82   :  { %12531 = shalt.err (!%p12528_p3)
}
  0x83   :  { %190 = dma.hbm_to_vmem [thread:$0]  %s13104_s19, 16, %s188_s18, [#allocation16]  }
  0x84   :  { %s13017_s22 = smov [#allocation18]   ;;  %s13018_s26 = smov [#allocation21]  }
  0x85   :  { %s209_s8 = sshll.u32 %s13017_s22, 4  ;;  %s231_s2 = sshll.u32 %s13018_s26, 4  ;;  %s210_s8 = int_to_ptr.vmem [resolvable:$true] %s209_s8  ;;  %s232_s2 = int_to_ptr.vmem [resolvable:$true] %s231_s2 }
  0x86   :  { %s12532_s10 = scalar_lea.hbm %s13114_s30, 16 }
  0x87   :  { %p12533_p4 = scmp.ne.s32.totalorder %s13114_s30, %s12532_s10  ;;  %p12536_p5 = scmp.lt.u32.totalorder %s12532_s10, %s13114_s30 }
  0x89   :  { %p12538_p6 = pnand %p12536_p5, %p12533_p4 }
  0x8b   :  { %12541 = shalt.err (!%p12538_p6)
}
  0x8c   :  { %s12542_s17 = scalar_lea.vmem %s210_s8, 16  ;;  %s12546_s11 = scalar_lea.vmem %s210_s8, 32 }
  0x8d   :  { %p12543_p7 = scmp.ne.s32.totalorder %s210_s8, %s12542_s17  ;;  %p12547_p8 = scmp.lt.s32.totalorder %s210_s8, %s210_s8 }
  0x8e   :  { %p12548_p9 = scmp.lt.s32.totalorder %s12546_s11, %s12542_s17 }
  0x90   :  { %p12549_p10 = por %p12548_p9, %p12547_p8 }
  0x92   :  { %p12550_p11 = pnand %p12549_p10, %p12543_p7 }
  0x94   :  { %12553 = shalt.err (!%p12550_p11)
}
  0x95   :  { %212 = dma.hbm_to_vmem [thread:$0]  %s13114_s30, 16, %s210_s8, [#allocation19]  }
  0x96   :  { %s12554_s19 = scalar_lea.hbm %s13124_s12, 16 }
  0x97   :  { %p12555_p12 = scmp.ne.s32.totalorder %s13124_s12, %s12554_s19  ;;  %p12558_p13 = scmp.lt.u32.totalorder %s12554_s19, %s13124_s12 }
  0x99   :  { %p12560_p0 = pnand %p12558_p13, %p12555_p12 }
  0x9b   :  { %12563 = shalt.err (!%p12560_p0)
}
  0x9c   :  { %s12564_s15 = scalar_lea.vmem %s232_s2, 16  ;;  %s12568_s18 = scalar_lea.vmem %s232_s2, 32 }
  0x9d   :  { %p12565_p1 = scmp.ne.s32.totalorder %s232_s2, %s12564_s15  ;;  %p12569_p2 = scmp.lt.s32.totalorder %s232_s2, %s232_s2 }
  0x9e   :  { %p12570_p3 = scmp.lt.s32.totalorder %s12568_s18, %s12564_s15 }
  0xa0   :  { %p12571_p4 = por %p12570_p3, %p12569_p2 }
  0xa2   :  { %p12572_p5 = pnand %p12571_p4, %p12565_p1 }
  0xa4   :  { %12575 = shalt.err (!%p12572_p5)
}
  0xa5   :  { %234 = dma.hbm_to_vmem [thread:$0]  %s13124_s12, 16, %s232_s2, [#allocation22]  }
  0xa6   :  { %s13019_s5 = smov [#allocation24]   ;;  %s13020_s29 = smov [#allocation27]  }
  0xa7   :  { %s260_s30 = sshll.u32 %s13019_s5, 4  ;;  %s287_s25 = sshll.u32 %s13020_s29, 4  ;;  %s261_s30 = int_to_ptr.vmem [resolvable:$true] %s260_s30  ;;  %s288_s25 = int_to_ptr.vmem [resolvable:$true] %s287_s25 }
  0xa8   :  { %s12576_s0 = scalar_lea.hbm %s13159_s4, 1536 }
  0xa9   :  { %p12577_p6 = scmp.ne.s32.totalorder %s13159_s4, %s12576_s0  ;;  %p12580_p7 = scmp.lt.u32.totalorder %s12576_s0, %s13159_s4 }
  0xab   :  { %p12582_p8 = pnand %p12580_p7, %p12577_p6 }
  0xad   :  { %12585 = shalt.err (!%p12582_p8)
}
  0xae   :  { %s12586_s24 = scalar_lea.vmem %s261_s30, 1536  ;;  %p12591_p10 = scmp.lt.s32.totalorder %s261_s30, %s261_s30 }
  0xaf   :  { %p12587_p9 = scmp.ne.s32.totalorder %s261_s30, %s12586_s24  ;;  %p12592_p11 = scmp.lt.s32.totalorder %s12586_s24, %s12586_s24 }
  0xb1   :  { %p12593_p12 = por %p12592_p11, %p12591_p10 }
  0xb3   :  { %p12594_p13 = pnand %p12593_p12, %p12587_p9 }
  0xb5   :  { %12597 = shalt.err (!%p12594_p13)
}
  0xb6   :  { %266 = dma.hbm_to_vmem [thread:$0]  %s13159_s4, 1536, %s261_s30, [#allocation25], %s13013_s1, %s13013_s1, %s13014_s28  }
  0xb7   :  { %s12598_s12 = scalar_lea.hbm %s13174_s9, 16 }
  0xb8   :  { %p12599_p0 = scmp.ne.s32.totalorder %s13174_s9, %s12598_s12  ;;  %p12602_p1 = scmp.lt.u32.totalorder %s12598_s12, %s13174_s9 }
  0xba   :  { %p12604_p2 = pnand %p12602_p1, %p12599_p0 }
  0xbc   :  { %12607 = shalt.err (!%p12604_p2)
}
  0xbd   :  { %s12608_s22 = scalar_lea.vmem %s288_s25, 16  ;;  %s12612_s8 = scalar_lea.vmem %s288_s25, 32 }
  0xbe   :  { %p12609_p3 = scmp.ne.s32.totalorder %s288_s25, %s12608_s22  ;;  %p12613_p4 = scmp.lt.s32.totalorder %s288_s25, %s288_s25 }
  0xbf   :  { %p12614_p5 = scmp.lt.s32.totalorder %s12612_s8, %s12608_s22 }
  0xc1   :  { %p12615_p6 = por %p12614_p5, %p12613_p4 }
  0xc3   :  { %p12616_p7 = pnand %p12615_p6, %p12609_p3 }
  0xc5   :  { %12619 = shalt.err (!%p12616_p7)
}
  0xc6   :  { %290 = dma.hbm_to_vmem [thread:$0]  %s13174_s9, 16, %s288_s25, [#allocation28]  }
  0xc7   :  { %s13021_s26 = smov [#allocation30]   ;;  %s12620_s2 = scalar_lea.hbm %s13187_s20, 2048 }
  0xc8   :  { %s308_s4 = sshll.u32 %s13021_s26, 4  ;;  %p12621_p8 = scmp.ne.s32.totalorder %s13187_s20, %s12620_s2  ;;  %s309_s4 = int_to_ptr.vmem [resolvable:$true] %s308_s4 }
  0xc9   :  { %p12624_p9 = scmp.lt.u32.totalorder %s12620_s2, %s13187_s20 }
  0xcb   :  { %p12626_p10 = pnand %p12624_p9, %p12621_p8 }
  0xcd   :  { %12629 = shalt.err (!%p12626_p10)
}
  0xce   :  { %s12630_s10 = scalar_lea.vmem %s309_s4, 2048  ;;  %p12635_p12 = scmp.lt.s32.totalorder %s309_s4, %s309_s4 }
  0xcf   :  { %p12631_p11 = scmp.ne.s32.totalorder %s309_s4, %s12630_s10  ;;  %p12636_p13 = scmp.lt.s32.totalorder %s12630_s10, %s12630_s10 }
  0xd1   :  { %p12637_p0 = por %p12636_p13, %p12635_p12 }
  0xd3   :  { %p12638_p1 = pnand %p12637_p0, %p12631_p11 }
  0xd5   :  { %12641 = shalt.err (!%p12638_p1)
}
  0xd6   :  { %s13022_s17 = smov 256   ;;  %s13023_s9 = smov 16  }
  0xd7   :  { %314 = dma.hbm_to_vmem [thread:$0]  %s13187_s20, 2048, %s309_s4, [#allocation31], %s13022_s17, %s13022_s17, %s13023_s9  }
  0xd8   :  { %s13024_s11 = smov [#allocation33]   ;;  %s13025_s15 = smov [#allocation3]  }
  0xd9   :  { %s335_s19 = sshll.u32 %s13024_s11, 4  ;;  %s100_s18 = sshll.u32 %s13025_s15, 4  ;;  %s336_s19 = int_to_ptr.vmem [resolvable:$true] %s335_s19  ;;  %s101_s18 = int_to_ptr.vmem [resolvable:$true] %s100_s18 }
  0xda   :  { %s12642_s5 = scalar_lea.hbm %s13202_s6, 16 }
  0xdb   :  { %p12643_p2 = scmp.ne.s32.totalorder %s13202_s6, %s12642_s5  ;;  %p12646_p3 = scmp.lt.u32.totalorder %s12642_s5, %s13202_s6 }
  0xdd   :  { %p12648_p4 = pnand %p12646_p3, %p12643_p2 }
  0xdf   :  { %12651 = shalt.err (!%p12648_p4)
}
  0xe0   :  { %s12652_s30 = scalar_lea.vmem %s336_s19, 16  ;;  %s12656_s29 = scalar_lea.vmem %s336_s19, 32 }
  0xe1   :  { %p12653_p5 = scmp.ne.s32.totalorder %s336_s19, %s12652_s30  ;;  %p12657_p6 = scmp.lt.s32.totalorder %s336_s19, %s336_s19 }
  0xe2   :  { %p12658_p7 = scmp.lt.s32.totalorder %s12656_s29, %s12652_s30 }
  0xe4   :  { %p12659_p8 = por %p12658_p7, %p12657_p6 }
  0xe6   :  { %p12660_p9 = pnand %p12659_p8, %p12653_p5 }
  0xe8   :  { %12663 = shalt.err (!%p12660_p9)
}
  0xe9   :  { %338 = dma.hbm_to_vmem [thread:$0]  %s13202_s6, 16, %s336_s19, [#allocation34]  }
  0xea   :  { %s12664_s20 = scalar_lea.hbm %s13064_s13, 2048 }
  0xeb   :  { %p12665_p10 = scmp.ne.s32.totalorder %s13064_s13, %s12664_s20  ;;  %p12668_p11 = scmp.lt.u32.totalorder %s12664_s20, %s13064_s13 }
  0xed   :  { %p12670_p12 = pnand %p12668_p11, %p12665_p10 }
  0xef   :  { %12673 = shalt.err (!%p12670_p12)
}
  0xf0   :  { %s12674_s25 = scalar_lea.vmem %s101_s18, 2048  ;;  %p12679_p0 = scmp.lt.s32.totalorder %s101_s18, %s101_s18 }
  0xf1   :  { %p12675_p13 = scmp.ne.s32.totalorder %s101_s18, %s12674_s25  ;;  %p12680_p1 = scmp.lt.s32.totalorder %s12674_s25, %s12674_s25 }
  0xf3   :  { %p12681_p2 = por %p12680_p1, %p12679_p0 }
  0xf5   :  { %p12682_p3 = pnand %p12681_p2, %p12675_p13 }
  0xf7   :  { %12685 = shalt.err (!%p12682_p3)
}
  0xf8   :  { %106 = dma.hbm_to_vmem [thread:$0]  %s13064_s13, 2048, %s101_s18, [#allocation4], %s13013_s1, %s13013_s1, %s13014_s28  }
  0xf9   :  { %s13026_s6 = smov [#allocation8]   ;;  %s13027_s24 = smov [#allocation11]  }
  0xfa   :  { %s124_s0 = sshll.u32 %s13026_s6, 4  ;;  %s150_s12 = sshll.u32 %s13027_s24, 4  ;;  %s125_s0 = int_to_ptr.vmem [resolvable:$true] %s124_s0  ;;  %s151_s12 = int_to_ptr.vmem [resolvable:$true] %s150_s12 }
  0xfb   :  { %s12686_s22 = scalar_lea.hbm %s13074_s21, 1024 }
  0xfc   :  { %p12687_p4 = scmp.ne.s32.totalorder %s13074_s21, %s12686_s22  ;;  %p12690_p5 = scmp.lt.u32.totalorder %s12686_s22, %s13074_s21 }
  0xfe   :  { %p12692_p6 = pnand %p12690_p5, %p12687_p4 }
 0x100   :  { %12695 = shalt.err (!%p12692_p6)
}
 0x101   :  { %s12696_s8 = scalar_lea.vmem %s125_s0, 1024  ;;  %p12701_p8 = scmp.lt.s32.totalorder %s125_s0, %s125_s0 }
 0x102   :  { %p12697_p7 = scmp.ne.s32.totalorder %s125_s0, %s12696_s8  ;;  %p12702_p9 = scmp.lt.s32.totalorder %s12696_s8, %s12696_s8 }
 0x104   :  { %p12703_p10 = por %p12702_p9, %p12701_p8 }
 0x106   :  { %p12704_p11 = pnand %p12703_p10, %p12697_p7 }
 0x108   :  { %12707 = shalt.err (!%p12704_p11)
}
 0x109   :  { %130 = dma.hbm_to_vmem [thread:$0]  %s13074_s21, 1024, %s125_s0, [#allocation7], %s13013_s1, %s13013_s1, %s13014_s28  }
 0x10a   :  { %s12708_s13 = scalar_lea.hbm %s13089_s3, 1024 }
 0x10b   :  { %p12709_p12 = scmp.ne.s32.totalorder %s13089_s3, %s12708_s13  ;;  %p12712_p13 = scmp.lt.u32.totalorder %s12708_s13, %s13089_s3 }
 0x10d   :  { %p12714_p0 = pnand %p12712_p13, %p12709_p12 }
 0x10f   :  { %12717 = shalt.err (!%p12714_p0)
}
 0x110   :  { %s12718_s26 = scalar_lea.vmem %s151_s12, 1024  ;;  %p12723_p2 = scmp.lt.s32.totalorder %s151_s12, %s151_s12 }
 0x111   :  { %p12719_p1 = scmp.ne.s32.totalorder %s151_s12, %s12718_s26  ;;  %p12724_p3 = scmp.lt.s32.totalorder %s12718_s26, %s12718_s26 }
 0x113   :  { %p12725_p4 = por %p12724_p3, %p12723_p2 }
 0x115   :  { %p12726_p5 = pnand %p12725_p4, %p12719_p1 }
 0x117   :  { %12729 = shalt.err (!%p12726_p5)
}
 0x118   :  { %156 = dma.hbm_to_vmem [thread:$0]  %s13089_s3, 1024, %s151_s12, [#allocation10], %s13013_s1, %s13013_s1, %s13014_s28  }
 0x119   :  { %s13028_s21 = smov [#allocation14]   ;;  %s12730_s2 = scalar_lea.hbm %s13099_s14, 320 }
 0x11a   :  { %s174_s4 = sshll.u32 %s13028_s21, 4  ;;  %p12731_p6 = scmp.ne.s32.totalorder %s13099_s14, %s12730_s2  ;;  %s175_s4 = int_to_ptr.vmem [resolvable:$true] %s174_s4 }
 0x11b   :  { %p12734_p7 = scmp.lt.u32.totalorder %s12730_s2, %s13099_s14 }
 0x11d   :  { %p12736_p8 = pnand %p12734_p7, %p12731_p6 }
 0x11f   :  { %12739 = shalt.err (!%p12736_p8)
}
 0x120   :  { %s12740_s10 = scalar_lea.vmem %s175_s4, 320  ;;  %p12745_p10 = scmp.lt.s32.totalorder %s175_s4, %s175_s4 }
 0x121   :  { %p12741_p9 = scmp.ne.s32.totalorder %s175_s4, %s12740_s10  ;;  %p12746_p11 = scmp.lt.s32.totalorder %s12740_s10, %s12740_s10 }
 0x123   :  { %p12747_p12 = por %p12746_p11, %p12745_p10 }
 0x125   :  { %p12748_p13 = pnand %p12747_p12, %p12741_p9 }
 0x127   :  { %12751 = shalt.err (!%p12748_p13)
}
 0x128   :  { %s13029_s17 = smov 64   ;;  %s14447_s9 = sld [smem:[#allocation55_spill]] }
 0x129   :  { %s13030_s3 = smov 4   ;;  %s13031_s11 = smov [#allocation17]  }
 0x12a   :  { %180 = dma.hbm_to_vmem [thread:$0]  %s13099_s14, 320, %s175_s4, [#allocation13], %s13029_s17, %s13029_s17, %s13030_s3  }
 0x12b   :  { %s196_s19 = sshll.u32 %s13031_s11, 4  ;;  %s13032_s15 = smov [#allocation20]   ;;  %s197_s19 = int_to_ptr.vmem [resolvable:$true] %s196_s19 }
 0x12c   :  { %s218_s18 = sshll.u32 %s13032_s15, 4  ;;  %s13315_s18 = int_to_ptr.vmem [resolvable:$true] %s218_s18 }
 0x12e   :  { %s12752_s5 = scalar_lea.hbm %s14447_s9, 2560 }
 0x12f   :  { %p12753_p0 = scmp.ne.s32.totalorder %s14447_s9, %s12752_s5  ;;  %p12756_p1 = scmp.lt.u32.totalorder %s12752_s5, %s14447_s9 }
 0x131   :  { %p12758_p2 = pnand %p12756_p1, %p12753_p0 }
 0x133   :  { %12761 = shalt.err (!%p12758_p2)
}
 0x134   :  { %s12762_s30 = scalar_lea.vmem %s197_s19, 2560  ;;  %p12767_p4 = scmp.lt.s32.totalorder %s197_s19, %s197_s19 }
 0x135   :  { %p12763_p3 = scmp.ne.s32.totalorder %s197_s19, %s12762_s30  ;;  %p12768_p5 = scmp.lt.s32.totalorder %s12762_s30, %s12762_s30 }
 0x137   :  { %p12769_p6 = por %p12768_p5, %p12767_p4 }
 0x139   :  { %p12770_p7 = pnand %p12769_p6, %p12763_p3 }
 0x13b   :  { %12773 = shalt.err (!%p12770_p7)
}
 0x13c   :  { %s14448_s14 = sld [smem:[#allocation56_spill]] }
 0x13d   :  { %202 = dma.hbm_to_vmem [thread:$0]  %s14447_s9, 2560, %s197_s19, [#allocation16], %s13013_s1, %s13013_s1, %s13014_s28  }
 0x142   :  { %s12774_s29 = scalar_lea.hbm %s14448_s14, 2560 }
 0x143   :  { %p12775_p8 = scmp.ne.s32.totalorder %s14448_s14, %s12774_s29  ;;  %p12778_p9 = scmp.lt.u32.totalorder %s12774_s29, %s14448_s14 }
 0x145   :  { %p12780_p10 = pnand %p12778_p9, %p12775_p8 }
 0x147   :  { %12783 = shalt.err (!%p12780_p10)
}
 0x148   :  { %s12784_s20 = scalar_lea.vmem %s13315_s18, 2560  ;;  %p12789_p12 = scmp.lt.s32.totalorder %s13315_s18, %s13315_s18 }
 0x149   :  { %p12785_p11 = scmp.ne.s32.totalorder %s13315_s18, %s12784_s20  ;;  %p12790_p13 = scmp.lt.s32.totalorder %s12784_s20, %s12784_s20 }
 0x14b   :  { %p12791_p0 = por %p12790_p13, %p12789_p12 }
 0x14d   :  { %p12792_p1 = pnand %p12791_p0, %p12785_p11 }
 0x14f   :  { %12795 = shalt.err (!%p12792_p1)
}
 0x150   :  { %s14449_s25 = sld [smem:[#allocation58_spill]]  ;;  %s13033_s6 = smov [#allocation23]  }
 0x151   :  { %224 = dma.hbm_to_vmem [thread:$0]  %s14448_s14, 2560, %s13315_s18, [#allocation19], %s13013_s1, %s13013_s1, %s13014_s28  }
 0x152   :  { %s243_s0 = sshll.u32 %s13033_s6, 4  ;;  %s13034_s24 = smov [#allocation26]   ;;  %s244_s0 = int_to_ptr.vmem [resolvable:$true] %s243_s0 }
 0x153   :  { %s274_s12 = sshll.u32 %s13034_s24, 4  ;;  %s13336_s12 = int_to_ptr.vmem [resolvable:$true] %s274_s12 }
 0x156   :  { %s12796_s22 = scalar_lea.hbm %s14449_s25, 16 }
 0x157   :  { %p12797_p2 = scmp.ne.s32.totalorder %s14449_s25, %s12796_s22  ;;  %p12800_p3 = scmp.lt.u32.totalorder %s12796_s22, %s14449_s25 }
 0x159   :  { %p12802_p4 = pnand %p12800_p3, %p12797_p2 }
 0x15b   :  { %12805 = shalt.err (!%p12802_p4)
}
 0x15c   :  { %s12806_s8 = scalar_lea.vmem %s244_s0, 16  ;;  %s12810_s13 = scalar_lea.vmem %s244_s0, 32 }
 0x15d   :  { %p12807_p5 = scmp.ne.s32.totalorder %s244_s0, %s12806_s8  ;;  %p12811_p6 = scmp.lt.s32.totalorder %s244_s0, %s244_s0 }
 0x15e   :  { %p12812_p7 = scmp.lt.s32.totalorder %s12810_s13, %s12806_s8 }
 0x160   :  { %p12813_p8 = por %p12812_p7, %p12811_p6 }
 0x162   :  { %p12814_p9 = pnand %p12813_p8, %p12807_p5 }
 0x164   :  { %12817 = shalt.err (!%p12814_p9)
}
 0x165   :  { %s14450_s26 = sld [smem:[#allocation64_spill]] }
 0x166   :  { %246 = dma.hbm_to_vmem [thread:$0]  %s14449_s25, 16, %s244_s0, [#allocation22]  }
 0x16b   :  { %s12818_s21 = scalar_lea.hbm %s14450_s26, 1024 }
 0x16c   :  { %p12819_p10 = scmp.ne.s32.totalorder %s14450_s26, %s12818_s21  ;;  %p12822_p11 = scmp.lt.u32.totalorder %s12818_s21, %s14450_s26 }
 0x16e   :  { %p12824_p12 = pnand %p12822_p11, %p12819_p10 }
 0x170   :  { %12827 = shalt.err (!%p12824_p12)
}
 0x171   :  { %s12828_s4 = scalar_lea.vmem %s13336_s12, 1024  ;;  %p12833_p0 = scmp.lt.s32.totalorder %s13336_s12, %s13336_s12 }
 0x172   :  { %p12829_p13 = scmp.ne.s32.totalorder %s13336_s12, %s12828_s4  ;;  %p12834_p1 = scmp.lt.s32.totalorder %s12828_s4, %s12828_s4 }
 0x174   :  { %p12835_p2 = por %p12834_p1, %p12833_p0 }
 0x176   :  { %p12836_p3 = pnand %p12835_p2, %p12829_p13 }
 0x178   :  { %12839 = shalt.err (!%p12836_p3)
}
 0x179   :  { %s14451_s2 = sld [smem:[#allocation65_spill]]  ;;  %s13035_s10 = smov [#allocation29]  }
 0x17a   :  { %280 = dma.hbm_to_vmem [thread:$0]  %s14450_s26, 1024, %s13336_s12, [#allocation25], %s13013_s1, %s13013_s1, %s13014_s28  }
 0x17b   :  { %s297_s9 = sshll.u32 %s13035_s10, 4  ;;  %s13036_s3 = smov [#allocation32]   ;;  %s298_s9 = int_to_ptr.vmem [resolvable:$true] %s297_s9 }
 0x17c   :  { %s322_s11 = sshll.u32 %s13036_s3, 4  ;;  %s13354_s11 = int_to_ptr.vmem [resolvable:$true] %s322_s11 }
 0x17f   :  { %s12840_s19 = scalar_lea.hbm %s14451_s2, 16 }
 0x180   :  { %p12841_p4 = scmp.ne.s32.totalorder %s14451_s2, %s12840_s19  ;;  %p12844_p5 = scmp.lt.u32.totalorder %s12840_s19, %s14451_s2 }
 0x182   :  { %p12846_p6 = pnand %p12844_p5, %p12841_p4 }
 0x184   :  { %12849 = shalt.err (!%p12846_p6)
}
 0x185   :  { %s12850_s15 = scalar_lea.vmem %s298_s9, 16  ;;  %s12854_s18 = scalar_lea.vmem %s298_s9, 32 }
 0x186   :  { %p12851_p7 = scmp.ne.s32.totalorder %s298_s9, %s12850_s15  ;;  %p12855_p8 = scmp.lt.s32.totalorder %s298_s9, %s298_s9 }
 0x187   :  { %p12856_p9 = scmp.lt.s32.totalorder %s12854_s18, %s12850_s15 }
 0x189   :  { %p12857_p10 = por %p12856_p9, %p12855_p8 }
 0x18b   :  { %p12858_p11 = pnand %p12857_p10, %p12851_p7 }
 0x18d   :  { %12861 = shalt.err (!%p12858_p11)
}
 0x18e   :  { %s14452_s5 = sld [smem:[#allocation67_spill]] }
 0x18f   :  { %300 = dma.hbm_to_vmem [thread:$0]  %s14451_s2, 16, %s298_s9, [#allocation28]  }
 0x194   :  { %s12862_s30 = scalar_lea.hbm %s14452_s5, 4096 }
 0x195   :  { %p12863_p12 = scmp.ne.s32.totalorder %s14452_s5, %s12862_s30  ;;  %p12866_p13 = scmp.lt.u32.totalorder %s12862_s30, %s14452_s5 }
 0x197   :  { %p12868_p0 = pnand %p12866_p13, %p12863_p12 }
 0x199   :  { %12871 = shalt.err (!%p12868_p0)
}
 0x19a   :  { %s12872_s14 = scalar_lea.vmem %s13354_s11, 4096  ;;  %p12877_p2 = scmp.lt.s32.totalorder %s13354_s11, %s13354_s11 }
 0x19b   :  { %p12873_p1 = scmp.ne.s32.totalorder %s13354_s11, %s12872_s14  ;;  %p12878_p3 = scmp.lt.s32.totalorder %s12872_s14, %s12872_s14 }
 0x19d   :  { %p12879_p4 = por %p12878_p3, %p12877_p2 }
 0x19f   :  { %p12880_p5 = pnand %p12879_p4, %p12873_p1 }
 0x1a1   :  { %12883 = shalt.err (!%p12880_p5)
}
 0x1a2   :  { %328 = dma.hbm_to_vmem [thread:$0]  %s14452_s5, 4096, %s13354_s11, [#allocation31], %s13013_s1, %s13013_s1, %s13014_s28  }
 0x1a3   :  { %s13037_s29 = smov [#allocation35]   ;;  %s13038_s25 = smov [#allocation36]  }
 0x1a4   :  { %s347_s20 = sshll.u32 %s13037_s29, 4  ;;  %s359_s6 = sshll.u32 %s13038_s25, 4  ;;  %s348_s20 = int_to_ptr.vmem [resolvable:$true] %s347_s20  ;;  %s360_s6 = int_to_ptr.vmem [resolvable:$true] %s359_s6 }
 0x1a5   :  { %s12884_s0 = scalar_lea.hbm %s13212_s27, 16 }
 0x1a6   :  { %p12885_p6 = scmp.ne.s32.totalorder %s13212_s27, %s12884_s0  ;;  %p12888_p7 = scmp.lt.u32.totalorder %s12884_s0, %s13212_s27 }
 0x1a8   :  { %p12890_p8 = pnand %p12888_p7, %p12885_p6 }
 0x1aa   :  { %12893 = shalt.err (!%p12890_p8)
}
 0x1ab   :  { %s12894_s24 = scalar_lea.vmem %s348_s20, 16  ;;  %s12898_s12 = scalar_lea.vmem %s348_s20, 32 }
 0x1ac   :  { %p12895_p9 = scmp.ne.s32.totalorder %s348_s20, %s12894_s24  ;;  %p12899_p10 = scmp.lt.s32.totalorder %s348_s20, %s348_s20 }
 0x1ad   :  { %p12900_p11 = scmp.lt.s32.totalorder %s12898_s12, %s12894_s24 }
 0x1af   :  { %p12901_p12 = por %p12900_p11, %p12899_p10 }
 0x1b1   :  { %p12902_p13 = pnand %p12901_p12, %p12895_p9 }
 0x1b3   :  { %12905 = shalt.err (!%p12902_p13)
}
 0x1b4   :  { %350 = dma.hbm_to_vmem [thread:$0]  %s13212_s27, 16, %s348_s20, [#allocation34]  }
 0x1b5   :  { %s12906_s1 = scalar_lea.hbm %s13222_s16, 16 }
 0x1b6   :  { %p12907_p0 = scmp.ne.s32.totalorder %s13222_s16, %s12906_s1  ;;  %p12910_p1 = scmp.lt.u32.totalorder %s12906_s1, %s13222_s16 }
 0x1b8   :  { %p12912_p2 = pnand %p12910_p1, %p12907_p0 }
 0x1ba   :  { %12915 = shalt.err (!%p12912_p2)
}
 0x1bb   :  { %s12916_s28 = scalar_lea.vmem %s360_s6, 16  ;;  %s12920_s22 = scalar_lea.vmem %s360_s6, 32 }
 0x1bc   :  { %p12917_p3 = scmp.ne.s32.totalorder %s360_s6, %s12916_s28  ;;  %p12921_p4 = scmp.lt.s32.totalorder %s360_s6, %s360_s6 }
 0x1bd   :  { %p12922_p5 = scmp.lt.s32.totalorder %s12920_s22, %s12916_s28 }
 0x1bf   :  { %p12923_p6 = por %p12922_p5, %p12921_p4 }
 0x1c1   :  { %p12924_p7 = pnand %p12923_p6, %p12917_p3 }
 0x1c3   :  { %12927 = shalt.err (!%p12924_p7)
}
 0x1c4   :  { %362 = dma.hbm_to_vmem [thread:$0]  %s13222_s16, 16, %s360_s6, [#allocation37]  }
 0x1c5   :  { %12950 = dma.done.wait [#allocation4], 2048  }
 0x1c6   :  { %12951 = vsyncadd [#allocation4], 4294965248 }
 0x1c7   :  { %12952 = dma.done.wait [#allocation7], 5120  }
 0x1c8   :  { %12953 = vsyncadd [#allocation7], 4294962176 }
 0x1c9   :  { %12954 = dma.done.wait [#allocation10], 3072  }
 0x1ca   :  { %12955 = vsyncadd [#allocation10], 4294964224 }
 0x1cb   :  { %12956 = dma.done.wait [#allocation13], 576  }
 0x1cc   :  { %12957 = vsyncadd [#allocation13], 4294966720 }
 0x1cd   :  { %12958 = dma.done.wait [#allocation16], 2576  }
 0x1ce   :  { %12959 = vsyncadd [#allocation16], 4294964720 }
 0x1cf   :  { %12960 = dma.done.wait [#allocation19], 2576  }
 0x1d0   :  { %12961 = vsyncadd [#allocation19], 4294964720 }
 0x1d1   :  { %12962 = dma.done.wait [#allocation22], 32  }
 0x1d2   :  { %12963 = vsyncadd [#allocation22], 4294967264 }
 0x1d3   :  { %12964 = dma.done.wait [#allocation25], 2560  }
 0x1d4   :  { %12965 = vsyncadd [#allocation25], 4294964736 }
 0x1d5   :  { %12966 = dma.done.wait [#allocation28], 32  }
 0x1d6   :  { %12967 = vsyncadd [#allocation28], 4294967264 }
 0x1d7   :  { %12968 = dma.done.wait [#allocation31], 6144  }
 0x1d8   :  { %12969 = vsyncadd [#allocation31], 4294961152 }
 0x1d9   :  { %12970 = dma.done.wait [#allocation34], 32  }
 0x1da   :  { %12971 = vsyncadd [#allocation34], 4294967264 }
 0x1db   :  { %12972 = dma.done.wait [#allocation37], 16  }
 0x1dc   :  { %12973 = vsyncadd [#allocation37], 4294967280  ;;  %s14453_s27 = sld [smem:[#allocation52_spill]]  ;;  %s14454_s16 = sld [smem:[#allocation53_spill]]  ;;  %v447_v26 = vld [vmem:[#allocation14 + $0x8] sm:$0xf] }
 0x1dd   :  { %vm497_vm0 = vcmask 1043456   ;;  %vm448_vm1 = vcmask 31744   ;;  %v829_v27 = vld [vmem:[#allocation14] sm:$0xf]  ;;  %vm2579_vm2 = vcmask 523264   ;;  %vm2427_vm3 = vcmask 261120  }
 0x1de   :  { %10020 = vmatprep.subr.msk.mxu0 %vm497_vm0, %v447_v26  ;;  %s14455_s8 = sld [smem:[#allocation54_spill]]  ;;  %s14456_s13 = sld [smem:[#allocation57_spill]]  ;;  %vm5122_vm4 = vcmask 130048   ;;  %vm13040_vm5 = vmmov 0   ;;  %vm8231_vm6 = vcmask 1041408   ;;  %vm8234_vm7 = vcmask 1045504  }
 0x1df   :  { %10021 = vmatpush3.msk.msra.mxu0 %vm497_vm0, %v447_v26  ;;  %s14457_s26 = sld [smem:[#allocation59_spill]]  ;;  %s14458_s21 = sld [smem:[#allocation61_spill]]  ;;  %vm8830_vm8 = vcmask 9216  }
 0x1e0   :  { %10102 = vmatprep.subr.msk.mxu0 %vm497_vm0, %v829_v27  ;;  %s14459_s4 = sld [smem:[#allocation63_spill]]  ;;  %s13042_s2 = smov 96  }
 0x1e1   :  { %s14460_s10 = sld [smem:[#allocation60_spill]]  ;;  %s14461_s9 = sld [smem:[#allocation62_spill]] }
 0x1e2   :  { %v429_v1 = vld [vmem:[%s14453_s27] sm:$0xff]  ;;  %v430_v2 = vld [vmem:[%s14453_s27 + $0x8] sm:$0xff]  ;;  %v431_v3 = vld [vmem:[%s14453_s27 + $0x10] sm:$0xff]  ;;  %s13043_s3 = smov 32   ;;  %s14463_s11 = sld [smem:[#allocation66_spill]] }
 0x1e3   :  { %v13383_v4 = vpack.c.bf16 %v430_v2, %v429_v1  ;;  %v432_v5 = vld [vmem:[%s14453_s27 + $0x18] sm:$0xff]  ;;  %v13389_v7 = vld [vmem:[%s14453_s27 + $0x20] sm:$0xff]  ;;  %v13392_v8 = vld [vmem:[%s14453_s27 + $0x28] sm:$0xff]  ;;  %10022 = vmatprep.mubr.msk.f32.mxu0 %vm448_vm1, %v429_v1  ;;  %s13045_s19 = smov [#allocation38]  }
 0x1e4   :  { %v13386_v6 = vpack.c.bf16 %v432_v5, %v431_v3  ;;  %v13399_v9 = vpack.c.bf16 %v13392_v8, %v13389_v7  ;;  %v668_v10 = vld [vmem:[%s14454_s16] sm:$0xff]  ;;  %v13403_v11 = vld [vmem:[%s14453_s27 + $0x30] sm:$0xff]  ;;  %v13406_v12 = vld [vmem:[%s14453_s27 + $0x38] sm:$0xff]  ;;  %10023 = vmatmul.mubr.msk.f32.vlgmr.msra.gmra.mrb[0].mxu0 %vm448_vm1, %v430_v2  ;;  %s8838_s15 = sshll.u32 %s13045_s19, 4  ;;  %s8839_s15 = int_to_ptr.vmem [resolvable:$true] %s8838_s15 }
 0x1e5   :  { %11341 = vmatprep.subr.bf16.mxu1 %v13383_v4  ;;  %10078 = vmatprep.mubr.f32.mxu1 %v668_v10  ;;  %v13412_v13 = vpack.c.bf16 %v13406_v12, %v13403_v11  ;;  %v13415_v14 = vld [vmem:[%s14453_s27 + $0x40] sm:$0xff]  ;;  %v13418_v15 = vld [vmem:[%s14453_s27 + $0x48] sm:$0xff]  ;;  %v13427_v17 = vld [vmem:[%s14453_s27 + $0x50] sm:$0xff]  ;;  %s12928_s18 = scalar_lea.vmem %s8839_s15, 32  ;;  %p12933_p9 = scmp.lt.s32.totalorder %s8839_s15, %s8839_s15 }
 0x1e6   :  { %11343 = vmatpush3.bf16.msra.mxu1 %v13383_v4  ;;  %v13424_v16 = vpack.c.bf16 %v13418_v15, %v13415_v14  ;;  %v13430_v18 = vld [vmem:[%s14453_s27 + $0x58] sm:$0xff]  ;;  %v13439_v20 = vld [vmem:[%s14453_s27 + $0x60] sm:$0xff]  ;;  %v13442_v21 = vld [vmem:[%s14453_s27 + $0x68] sm:$0xff]  ;;  %10103 = vmatpush3.msk.msra.mxu0 %vm497_vm0, %v829_v27  ;;  %p12929_p8 = scmp.ne.s32.totalorder %s8839_s15, %s12928_s18  ;;  %p12934_p10 = scmp.lt.s32.totalorder %s12928_s18, %s12928_s18 }
 0x1e7   :  { %11345 = vmatprep.subr.bf16.mxu1 %v13386_v6  ;;  %v13436_v19 = vpack.c.bf16 %v13430_v18, %v13427_v17  ;;  %v13448_v22 = vpack.c.bf16 %v13442_v21, %v13439_v20  ;;  %v13451_v23 = vld [vmem:[%s14453_s27 + $0x70] sm:$0xff]  ;;  %v13454_v24 = vld [vmem:[%s14453_s27 + $0x78] sm:$0xff]  ;;  %v669_v28 = vld [vmem:[%s14454_s16 + $0x8] sm:$0xff]  ;;  %10025 = vmatprep.mubr.msk.f32.mxu0 %vm448_vm1, %v431_v3 }
 0x1e8   :  { %v13460_v25 = vpack.c.bf16 %v13454_v24, %v13451_v23  ;;  %v670_v29 = vld [vmem:[%s14454_s16 + $0x10] sm:$0xff]  ;;  %v671_v30 = vld [vmem:[%s14454_s16 + $0x18] sm:$0xff]  ;;  %v672_v31 = vld [vmem:[%s14454_s16 + $0x20] sm:$0xff]  ;;  %10026 = vmatmul.mubr.msk.f32.gmra.mrb[2].mxu0 %vm448_vm1, %v432_v5  ;;  %p12935_p11 = por %p12934_p10, %p12933_p9 }
 0x1e9   :  { %v673_v32 = vld [vmem:[%s14454_s16 + $0x28] sm:$0xff]  ;;  %v674_v33 = vld [vmem:[%s14454_s16 + $0x30] sm:$0xff]  ;;  %10028 = vmatprep.mubr.msk.f32.mxu0 %vm448_vm1, %v13389_v7  ;;  %v675_v34 = vld [vmem:[%s14454_s16 + $0x38] sm:$0xff] }
 0x1ea   :  { %11347 = vmatpush3.bf16.msra.mxu1 %v13386_v6  ;;  %v676_v35 = vld [vmem:[%s14454_s16 + $0x40] sm:$0xff]  ;;  %v677_v36 = vld [vmem:[%s14454_s16 + $0x48] sm:$0xff]  ;;  %v678_v37 = vld [vmem:[%s14454_s16 + $0x50] sm:$0xff]  ;;  %p12936_p12 = pnand %p12935_p11, %p12929_p8 }
 0x1eb   :  { %11349 = vmatprep.subr.bf16.mxu1 %v13399_v9  ;;  %v679_v38 = vld [vmem:[%s14454_s16 + $0x58] sm:$0xff]  ;;  %v680_v39 = vld [vmem:[%s14454_s16 + $0x60] sm:$0xff]  ;;  %v681_v40 = vld [vmem:[%s14454_s16 + $0x68] sm:$0xff] }
 0x1ec   :  { %10029 = vmatmul.mubr.msk.f32.gmra.mrb[4].mxu0 %vm448_vm1, %v13392_v8  ;;  %v682_v41 = vld [vmem:[%s14454_s16 + $0x70] sm:$0xff]  ;;  %v683_v42 = vld [vmem:[%s14454_s16 + $0x78] sm:$0xff]  ;;  %v8928_v43 = vld [vmem:[%s14454_s16 + $0x80] sm:$0xff] }
 0x1ed   :  { %10031 = vmatprep.mubr.msk.f32.mxu0 %vm448_vm1, %v13403_v11  ;;  %v8929_v44 = vld [vmem:[%s14454_s16 + $0x88] sm:$0xff]  ;;  %v8930_v45 = vld [vmem:[%s14454_s16 + $0x90] sm:$0xff]  ;;  %v8931_v46 = vld [vmem:[%s14454_s16 + $0x98] sm:$0xff] }
 0x1ee   :  { %11351 = vmatpush3.bf16.msra.mxu1 %v13399_v9  ;;  %v8932_v47 = vld [vmem:[%s14454_s16 + $0xa0] sm:$0xff]  ;;  %v8933_v48 = vld [vmem:[%s14454_s16 + $0xa8] sm:$0xff]  ;;  %v8934_v49 = vld [vmem:[%s14454_s16 + $0xb0] sm:$0xff] }
 0x1ef   :  { %11353 = vmatprep.subr.bf16.mxu1 %v13412_v13  ;;  %v8935_v50 = vld [vmem:[%s14454_s16 + $0xb8] sm:$0xff]  ;;  %v8936_v51 = vld [vmem:[%s14454_s16 + $0xc0] sm:$0xff]  ;;  %v8937_v52 = vld [vmem:[%s14454_s16 + $0xc8] sm:$0xff] }
 0x1f0   :  { %10032 = vmatmul.mubr.msk.f32.gmra.mrb[6].mxu0 %vm448_vm1, %v13406_v12  ;;  %v8938_v53 = vld [vmem:[%s14454_s16 + $0xd0] sm:$0xff]  ;;  %v8939_v54 = vld [vmem:[%s14454_s16 + $0xd8] sm:$0xff]  ;;  %v8940_v55 = vld [vmem:[%s14454_s16 + $0xe0] sm:$0xff] }
 0x1f1   :  { %10034 = vmatprep.mubr.msk.f32.mxu0 %vm448_vm1, %v13415_v14  ;;  %v8941_v56 = vld [vmem:[%s14454_s16 + $0xe8] sm:$0xff]  ;;  %v8942_v57 = vld [vmem:[%s14454_s16 + $0xf0] sm:$0xff]  ;;  %v8943_v58 = vld [vmem:[%s14454_s16 + $0xf8] sm:$0xff] }
 0x1f2   :  { %11355 = vmatpush3.bf16.msra.mxu1 %v13412_v13  ;;  %v8961_v59 = vld [vmem:[%s14454_s16 + $0x100] sm:$0xff]  ;;  %v8962_v60 = vld [vmem:[%s14454_s16 + $0x108] sm:$0xff]  ;;  %v8963_v61 = vld [vmem:[%s14454_s16 + $0x110] sm:$0xff] }
 0x1f3   :  { %11357 = vmatprep.subr.bf16.mxu1 %v13424_v16  ;;  %v8964_v62 = vld [vmem:[%s14454_s16 + $0x118] sm:$0xff]  ;;  %v8965_v63 = vld [vmem:[%s14454_s16 + $0x120] sm:$0xff]  ;;  %v8966_v0 = vld [vmem:[%s14454_s16 + $0x128] sm:$0xff] }
 0x1f4   :  { %10035 = vmatmul.mubr.msk.f32.gmra.mrb[8].mxu0 %vm448_vm1, %v13418_v15  ;;  %v8967_v1 = vld [vmem:[%s14454_s16 + $0x130] sm:$0xff]  ;;  %v8968_v2 = vld [vmem:[%s14454_s16 + $0x138] sm:$0xff]  ;;  %v8969_v3 = vld [vmem:[%s14454_s16 + $0x140] sm:$0xff] }
 0x1f5   :  { %10037 = vmatprep.mubr.msk.f32.mxu0 %vm448_vm1, %v13427_v17  ;;  %v8971_v5 = vld [vmem:[%s14454_s16 + $0x150] sm:$0xff]  ;;  %v8973_v7 = vld [vmem:[%s14454_s16 + $0x160] sm:$0xff]  ;;  %v8974_v8 = vld [vmem:[%s14454_s16 + $0x168] sm:$0xff] }
 0x1f6   :  { %11359 = vmatpush3.bf16.msra.mxu1 %v13424_v16  ;;  %v1205_v10 = vld [vmem:[#allocation14 + $0x4] sm:$0xf]  ;;  %v8994_v12 = vld [vmem:[%s14454_s16 + $0x180] sm:$0xff]  ;;  %v8999_v17 = vld [vmem:[%s14454_s16 + $0x1a8] sm:$0xff] }
 0x1f7   :  { %11361 = vmatprep.subr.bf16.mxu1 %v13436_v19  ;;  %10184 = vmatprep.subr.msk.mxu0 %vm497_vm0, %v1205_v10  ;;  %v8976_v11 = vld [vmem:[%s14454_s16 + $0x178] sm:$0xff]  ;;  %v8996_v14 = vld [vmem:[%s14454_s16 + $0x190] sm:$0xff] }
 0x1f8   :  { %10038 = vmatmul.mubr.msk.f32.gmra.mrb[10].mxu0 %vm448_vm1, %v13430_v18  ;;  %v8997_v15 = vld [vmem:[%s14454_s16 + $0x198] sm:$0xff]  ;;  %v9000_v18 = vld [vmem:[%s14454_s16 + $0x1b0] sm:$0xff] }
 0x1f9   :  { %10040 = vmatprep.mubr.msk.f32.mxu0 %vm448_vm1, %v13439_v20  ;;  %v9002_v20 = vld [vmem:[%s14454_s16 + $0x1c0] sm:$0xff]  ;;  %v9008_v26 = vld [vmem:[%s14454_s16 + $0x1f0] sm:$0xff]  ;;  %v9009_v27 = vld [vmem:[%s14454_s16 + $0x1f8] sm:$0xff] }
 0x1fa   :  { %11363 = vmatpush3.bf16.msra.mxu1 %v13436_v19 }
 0x1fb   :  { %11365 = vmatprep.subr.bf16.mxu1 %v13448_v22 }
 0x1fc   :  { %10041 = vmatmul.mubr.msk.f32.gmra.mrb[12].mxu0 %vm448_vm1, %v13442_v21  ;;  %v9003_v21 = vld [vmem:[%s14454_s16 + $0x1c8] sm:$0xff] }
 0x1fd   :  { %10043 = vmatprep.mubr.msk.f32.mxu0 %vm448_vm1, %v13451_v23  ;;  %v9005_v23 = vld [vmem:[%s14454_s16 + $0x1d8] sm:$0xff] }
 0x1fe   :  { %11367 = vmatpush3.bf16.msra.mxu1 %v13448_v22 }
 0x1ff   :  { %11369 = vmatprep.subr.bf16.mxu1 %v13460_v25 }
 0x200   :  { %10044 = vmatmul.mubr.msk.f32.gmra.mrb[14].mxu0 %vm448_vm1, %v13454_v24  ;;  %v9006_v24 = vld [vmem:[%s14454_s16 + $0x1e0] sm:$0xff] }
 0x202   :  { %11371 = vmatpush3.bf16.msra.mxu1 %v13460_v25 }
 0x203   :  { %11373 = vmatprep.subr.bf16.mxu1 %v13383_v4 }
 0x205   :  { %10079 = vmatmul.mubr.f32.vlgmr.msra.gmra.mrb[0].mxu1 %v669_v28 }
 0x206   :  { %11375 = vmatpush3.bf16.msra.mxu1 %v13383_v4  ;;  %10081 = vmatprep.mubr.f32.mxu1 %v670_v29 }
 0x207   :  { %11377 = vmatprep.subr.bf16.mxu1 %v13386_v6 }
 0x209   :  { %10082 = vmatmul.mubr.f32.gmra.mrb[2].mxu1 %v671_v30  ;;  %v1581_v30 = vld [vmem:[#allocation14 + $0xc] sm:$0xf] }
 0x20a   :  { %11379 = vmatpush3.bf16.msra.mxu1 %v13386_v6  ;;  %10084 = vmatprep.mubr.f32.mxu1 %v672_v31 }
 0x20b   :  { %11381 = vmatprep.subr.bf16.mxu1 %v13399_v9 }
 0x20d   :  { %10085 = vmatmul.mubr.f32.gmra.mrb[4].mxu1 %v673_v32 }
 0x20e   :  { %11383 = vmatpush3.bf16.msra.mxu1 %v13399_v9  ;;  %10087 = vmatprep.mubr.f32.mxu1 %v674_v33 }
 0x20f   :  { %11385 = vmatprep.subr.bf16.mxu1 %v13412_v13 }
 0x211   :  { %10088 = vmatmul.mubr.f32.gmra.mrb[6].mxu1 %v675_v34 }
 0x212   :  { %11387 = vmatpush3.bf16.msra.mxu1 %v13412_v13  ;;  %10090 = vmatprep.mubr.f32.mxu1 %v676_v35 }
 0x213   :  { %11389 = vmatprep.subr.bf16.mxu1 %v13424_v16 }
 0x215   :  { %10091 = vmatmul.mubr.f32.gmra.mrb[8].mxu1 %v677_v36 }
 0x216   :  { %11391 = vmatpush3.bf16.msra.mxu1 %v13424_v16  ;;  %10093 = vmatprep.mubr.f32.mxu1 %v678_v37 }
 0x217   :  { %11393 = vmatprep.subr.bf16.mxu1 %v13436_v19 }
 0x219   :  { %10094 = vmatmul.mubr.f32.gmra.mrb[10].mxu1 %v679_v38 }
 0x21a   :  { %11395 = vmatpush3.bf16.msra.mxu1 %v13436_v19  ;;  %10096 = vmatprep.mubr.f32.mxu1 %v680_v39 }
 0x21b   :  { %11397 = vmatprep.subr.bf16.mxu1 %v13448_v22 }
 0x21d   :  { %10097 = vmatmul.mubr.f32.gmra.mrb[12].mxu1 %v681_v40 }
 0x21e   :  { %11399 = vmatpush3.bf16.msra.mxu1 %v13448_v22  ;;  %10099 = vmatprep.mubr.f32.mxu1 %v682_v41 }
 0x21f   :  { %11401 = vmatprep.subr.bf16.mxu1 %v13460_v25 }
 0x221   :  { %10100 = vmatmul.mubr.f32.gmra.mrb[14].mxu1 %v683_v42 }
 0x222   :  { %11403 = vmatpush3.bf16.msra.mxu1 %v13460_v25  ;;  %10160 = vmatprep.mubr.f32.mxu1 %v8928_v43 }
 0x223   :  { %11405 = vmatprep.subr.bf16.mxu1 %v13383_v4 }
 0x225   :  { %10161 = vmatmul.mubr.f32.vlgmr.msra.gmra.mrb[16].mxu1 %v8929_v44 }
 0x226   :  { %11407 = vmatpush3.bf16.msra.mxu1 %v13383_v4  ;;  %10163 = vmatprep.mubr.f32.mxu1 %v8930_v45 }
 0x227   :  { %11409 = vmatprep.subr.bf16.mxu1 %v13386_v6 }
 0x229   :  { %10164 = vmatmul.mubr.f32.gmra.mrb[18].mxu1 %v8931_v46 }
 0x22a   :  { %11411 = vmatpush3.bf16.msra.mxu1 %v13386_v6  ;;  %10166 = vmatprep.mubr.f32.mxu1 %v8932_v47  ;;  %v1957_v47 = vld [vmem:[#allocation14 + $0x10] sm:$0xf] }
 0x22b   :  { %11413 = vmatprep.subr.bf16.mxu1 %v13399_v9 }
 0x22d   :  { %10167 = vmatmul.mubr.f32.gmra.mrb[20].mxu1 %v8933_v48 }
 0x22e   :  { %11415 = vmatpush3.bf16.msra.mxu1 %v13399_v9  ;;  %10169 = vmatprep.mubr.f32.mxu1 %v8934_v49 }
 0x22f   :  { %11417 = vmatprep.subr.bf16.mxu1 %v13412_v13 }
 0x231   :  { %10170 = vmatmul.mubr.f32.gmra.mrb[22].mxu1 %v8935_v50 }
 0x232   :  { %11419 = vmatpush3.bf16.msra.mxu1 %v13412_v13  ;;  %10172 = vmatprep.mubr.f32.mxu1 %v8936_v51 }
 0x233   :  { %11421 = vmatprep.subr.bf16.mxu1 %v13424_v16 }
 0x235   :  { %10173 = vmatmul.mubr.f32.gmra.mrb[24].mxu1 %v8937_v52 }
 0x236   :  { %11423 = vmatpush3.bf16.msra.mxu1 %v13424_v16  ;;  %10175 = vmatprep.mubr.f32.mxu1 %v8938_v53 }
 0x237   :  { %11425 = vmatprep.subr.bf16.mxu1 %v13436_v19 }
 0x239   :  { %10176 = vmatmul.mubr.f32.gmra.mrb[26].mxu1 %v8939_v54 }
 0x23a   :  { %11427 = vmatpush3.bf16.msra.mxu1 %v13436_v19  ;;  %10178 = vmatprep.mubr.f32.mxu1 %v8940_v55 }
 0x23b   :  { %11429 = vmatprep.subr.bf16.mxu1 %v13448_v22 }
 0x23d   :  { %10179 = vmatmul.mubr.f32.gmra.mrb[28].mxu1 %v8941_v56 }
 0x23e   :  { %11431 = vmatpush3.bf16.msra.mxu1 %v13448_v22  ;;  %10181 = vmatprep.mubr.f32.mxu1 %v8942_v57 }
 0x23f   :  { %11433 = vmatprep.subr.bf16.mxu1 %v13460_v25 }
 0x241   :  { %10182 = vmatmul.mubr.f32.gmra.mrb[30].mxu1 %v8943_v58 }
 0x242   :  { %11435 = vmatpush3.bf16.msra.mxu1 %v13460_v25  ;;  %10242 = vmatprep.mubr.f32.mxu1 %v8961_v59 }
 0x243   :  { %11437 = vmatprep.subr.bf16.mxu1 %v13383_v4 }
 0x245   :  { %10243 = vmatmul.mubr.f32.vlgmr.msra.gmra.mrb[32].mxu1 %v8962_v60 }
 0x246   :  { %11439 = vmatpush3.bf16.msra.mxu1 %v13383_v4  ;;  %10245 = vmatprep.mubr.f32.mxu1 %v8963_v61  ;;  %v8970_v4 = vld [vmem:[%s14454_s16 + $0x148] sm:$0xff] }
 0x247   :  { %11441 = vmatprep.subr.bf16.mxu1 %v13386_v6 }
 0x249   :  { %10246 = vmatmul.mubr.f32.gmra.mrb[34].mxu1 %v8964_v62 }
 0x24a   :  { %11443 = vmatpush3.bf16.msra.mxu1 %v13386_v6  ;;  %10248 = vmatprep.mubr.f32.mxu1 %v8965_v63  ;;  %v8972_v6 = vld [vmem:[%s14454_s16 + $0x158] sm:$0xff] }
 0x24b   :  { %11445 = vmatprep.subr.bf16.mxu1 %v13399_v9 }
 0x24d   :  { %10249 = vmatmul.mubr.f32.gmra.mrb[36].mxu1 %v8966_v0 }
 0x24e   :  { %11447 = vmatpush3.bf16.msra.mxu1 %v13399_v9  ;;  %10251 = vmatprep.mubr.f32.mxu1 %v8967_v1  ;;  %v8975_v9 = vld [vmem:[%s14454_s16 + $0x170] sm:$0xff] }
 0x24f   :  { %11449 = vmatprep.subr.bf16.mxu1 %v13412_v13 }
 0x251   :  { %10252 = vmatmul.mubr.f32.gmra.mrb[38].mxu1 %v8968_v2 }
 0x252   :  { %11451 = vmatpush3.bf16.msra.mxu1 %v13412_v13  ;;  %10254 = vmatprep.mubr.f32.mxu1 %v8969_v3  ;;  %v8995_v13 = vld [vmem:[%s14454_s16 + $0x188] sm:$0xff] }
 0x253   :  { %11453 = vmatprep.subr.bf16.mxu1 %v13424_v16 }
 0x255   :  { %10255 = vmatmul.mubr.f32.gmra.mrb[40].mxu1 %v8970_v4 }
 0x256   :  { %11455 = vmatpush3.bf16.msra.mxu1 %v13424_v16  ;;  %10257 = vmatprep.mubr.f32.mxu1 %v8971_v5  ;;  %v8998_v16 = vld [vmem:[%s14454_s16 + $0x1a0] sm:$0xff] }
 0x257   :  { %11457 = vmatprep.subr.bf16.mxu1 %v13436_v19 }
 0x259   :  { %10258 = vmatmul.mubr.f32.gmra.mrb[42].mxu1 %v8972_v6 }
 0x25a   :  { %11459 = vmatpush3.bf16.msra.mxu1 %v13436_v19  ;;  %10260 = vmatprep.mubr.f32.mxu1 %v8973_v7  ;;  %v9001_v19 = vld [vmem:[%s14454_s16 + $0x1b8] sm:$0xff] }
 0x25b   :  { %11461 = vmatprep.subr.bf16.mxu1 %v13448_v22 }
 0x25d   :  { %10261 = vmatmul.mubr.f32.gmra.mrb[44].mxu1 %v8974_v8 }
 0x25e   :  { %11463 = vmatpush3.bf16.msra.mxu1 %v13448_v22  ;;  %10263 = vmatprep.mubr.f32.mxu1 %v8975_v9  ;;  %v9004_v22 = vld [vmem:[%s14454_s16 + $0x1d0] sm:$0xff] }
 0x25f   :  { %11465 = vmatprep.subr.bf16.mxu1 %v13460_v25 }
 0x261   :  { %10264 = vmatmul.mubr.f32.gmra.mrb[46].mxu1 %v8976_v11 }
 0x262   :  { %11467 = vmatpush3.bf16.msra.mxu1 %v13460_v25  ;;  %10324 = vmatprep.mubr.f32.mxu1 %v8994_v12  ;;  %v9007_v25 = vld [vmem:[%s14454_s16 + $0x1e8] sm:$0xff] }
 0x265   :  { %10325 = vmatmul.mubr.f32.vlgmr.msra.gmra.mrb[48].mxu1 %v8995_v13 }
 0x266   :  { %10327 = vmatprep.mubr.f32.mxu1 %v8996_v14 }
 0x269   :  { %10328 = vmatmul.mubr.f32.gmra.mrb[50].mxu1 %v8997_v15 }
 0x26a   :  { %10330 = vmatprep.mubr.f32.mxu1 %v8998_v16 }
 0x26d   :  { %10331 = vmatmul.mubr.f32.gmra.mrb[52].mxu1 %v8999_v17 }
 0x26e   :  { %10333 = vmatprep.mubr.f32.mxu1 %v9000_v18 }
 0x271   :  { %10334 = vmatmul.mubr.f32.gmra.mrb[54].mxu1 %v9001_v19 }
 0x272   :  { %10336 = vmatprep.mubr.f32.mxu1 %v9002_v20 }
 0x275   :  { %10337 = vmatmul.mubr.f32.gmra.mrb[56].mxu1 %v9003_v21 }
 0x276   :  { %10339 = vmatprep.mubr.f32.mxu1 %v9004_v22 }
 0x279   :  { %10340 = vmatmul.mubr.f32.gmra.mrb[58].mxu1 %v9005_v23 }
 0x27a   :  { %10342 = vmatprep.mubr.f32.mxu1 %v9006_v24 }
 0x27d   :  { %10343 = vmatmul.mubr.f32.gmra.mrb[60].mxu1 %v9007_v25 }
 0x27e   :  { %10345 = vmatprep.mubr.f32.mxu1 %v9008_v26 }
 0x281   :  { %10346 = vmatmul.mubr.f32.gmra.mrb[62].mxu1 %v9009_v27 }
 0x2d8   :  { %v10080_v28 = vpop.f32.mrb[0].mxu1 }
 0x2d9   :  { %v750_v29 = vpop.f32.mrb[1].mxu1 }
 0x2da   :  { %10104 = vmatprep.mubr.msk.f32.mxu0 %vm448_vm1, %v750_v29 }
 0x2db   :  { %10105 = vmatmul.mubr.msk.f32.vlgmr.msra.gmra.mrb[0].mxu0 %vm448_vm1, %v10080_v28 }
 0x2dc   :  { %v10083_v31 = vpop.f32.mrb[2].mxu1  ;;  %10185 = vmatpush3.msk.msra.mxu0 %vm497_vm0, %v1205_v10 }
 0x2dd   :  { %v760_v32 = vpop.f32.mrb[3].mxu1  ;;  %10266 = vmatprep.subr.msk.mxu0 %vm497_vm0, %v1581_v30 }
 0x2de   :  { %10107 = vmatprep.mubr.msk.f32.mxu0 %vm448_vm1, %v760_v32  ;;  %v13678_v32 = vld [vmem:[#allocation15] ss:$0 sm:$0xff] }
 0x2df   :  { %10108 = vmatmul.mubr.msk.f32.gmra.mrb[2].mxu0 %vm448_vm1, %v10083_v31  ;;  %v2300_v31 = vld [vmem:[#allocation3 + $0x40] sm:$0xff] }
 0x2e0   :  { %v10086_v33 = vpop.f32.mrb[4].mxu1 }
 0x2e1   :  { %v770_v34 = vpop.f32.mrb[5].mxu1 }
 0x2e2   :  { %10110 = vmatprep.mubr.msk.f32.mxu0 %vm448_vm1, %v770_v34 }
 0x2e3   :  { %10111 = vmatmul.mubr.msk.f32.gmra.mrb[4].mxu0 %vm448_vm1, %v10086_v33 }
 0x2e4   :  { %v10089_v35 = vpop.f32.mrb[6].mxu1 }
 0x2e5   :  { %v780_v36 = vpop.f32.mrb[7].mxu1 }
 0x2e6   :  { %10113 = vmatprep.mubr.msk.f32.mxu0 %vm448_vm1, %v780_v36 }
 0x2e7   :  { %10114 = vmatmul.mubr.msk.f32.gmra.mrb[6].mxu0 %vm448_vm1, %v10089_v35 }
 0x2e8   :  { %v10092_v37 = vpop.f32.mrb[8].mxu1 }
 0x2e9   :  { %v790_v38 = vpop.f32.mrb[9].mxu1 }
 0x2ea   :  { %10116 = vmatprep.mubr.msk.f32.mxu0 %vm448_vm1, %v790_v38 }
 0x2eb   :  { %10117 = vmatmul.mubr.msk.f32.gmra.mrb[8].mxu0 %vm448_vm1, %v10092_v37 }
 0x2ec   :  { %v10095_v39 = vpop.f32.mrb[10].mxu1 }
 0x2ed   :  { %v800_v40 = vpop.f32.mrb[11].mxu1 }
 0x2ee   :  { %10119 = vmatprep.mubr.msk.f32.mxu0 %vm448_vm1, %v800_v40 }
 0x2ef   :  { %10120 = vmatmul.mubr.msk.f32.gmra.mrb[10].mxu0 %vm448_vm1, %v10095_v39 }
 0x2f0   :  { %v10098_v41 = vpop.f32.mrb[12].mxu1 }
 0x2f1   :  { %v810_v42 = vpop.f32.mrb[13].mxu1 }
 0x2f2   :  { %10122 = vmatprep.mubr.msk.f32.mxu0 %vm448_vm1, %v810_v42 }
 0x2f3   :  { %10123 = vmatmul.mubr.msk.f32.gmra.mrb[12].mxu0 %vm448_vm1, %v10098_v41 }
 0x2f4   :  { %v10101_v43 = vpop.f32.mrb[14].mxu1 }
 0x2f5   :  { %v820_v44 = vpop.f32.mrb[15].mxu1 }
 0x2f6   :  { %10125 = vmatprep.mubr.msk.f32.mxu0 %vm448_vm1, %v820_v44 }
 0x2f7   :  { %10126 = vmatmul.mubr.msk.f32.gmra.mrb[14].mxu0 %vm448_vm1, %v10101_v43 }
 0x2f8   :  { %v10162_v45 = vpop.f32.mrb[16].mxu1 }
 0x2f9   :  { %v1125_v46 = vpop.f32.mrb[17].mxu1 }
 0x2fa   :  { %10186 = vmatprep.mubr.msk.f32.mxu0 %vm448_vm1, %v1125_v46 }
 0x2fb   :  { %10187 = vmatmul.mubr.msk.f32.vlgmr.msra.gmra.mrb[0].mxu0 %vm448_vm1, %v10162_v45 }
 0x2fc   :  { %v10165_v48 = vpop.f32.mrb[18].mxu1  ;;  %10267 = vmatpush3.msk.msra.mxu0 %vm497_vm0, %v1581_v30  ;;  %v2186_v30 = vld [vmem:[#allocation3] sm:$0xff] }
 0x2fd   :  { %v1135_v49 = vpop.f32.mrb[19].mxu1  ;;  %10348 = vmatprep.subr.msk.mxu0 %vm497_vm0, %v1957_v47  ;;  %10406 = vmatprep.mubr.f32.mxu1 %v2186_v30  ;;  %v2188_v30 = vld [vmem:[#allocation3 + $0x10] sm:$0xff] }
 0x2fe   :  { %10189 = vmatprep.mubr.msk.f32.mxu0 %vm448_vm1, %v1135_v49 }
 0x2ff   :  { %10190 = vmatmul.mubr.msk.f32.gmra.mrb[2].mxu0 %vm448_vm1, %v10165_v48 }
 0x300   :  { %v10168_v50 = vpop.f32.mrb[20].mxu1 }
 0x301   :  { %v1145_v51 = vpop.f32.mrb[21].mxu1 }
 0x302   :  { %10192 = vmatprep.mubr.msk.f32.mxu0 %vm448_vm1, %v1145_v51 }
 0x303   :  { %10193 = vmatmul.mubr.msk.f32.gmra.mrb[4].mxu0 %vm448_vm1, %v10168_v50 }
 0x304   :  { %v10171_v52 = vpop.f32.mrb[22].mxu1 }
 0x305   :  { %v1155_v53 = vpop.f32.mrb[23].mxu1 }
 0x306   :  { %10195 = vmatprep.mubr.msk.f32.mxu0 %vm448_vm1, %v1155_v53 }
 0x307   :  { %10196 = vmatmul.mubr.msk.f32.gmra.mrb[6].mxu0 %vm448_vm1, %v10171_v52 }
 0x308   :  { %v10174_v54 = vpop.f32.mrb[24].mxu1 }
 0x309   :  { %v1165_v55 = vpop.f32.mrb[25].mxu1 }
 0x30a   :  { %10198 = vmatprep.mubr.msk.f32.mxu0 %vm448_vm1, %v1165_v55 }
 0x30b   :  { %10199 = vmatmul.mubr.msk.f32.gmra.mrb[8].mxu0 %vm448_vm1, %v10174_v54 }
 0x30c   :  { %v10177_v56 = vpop.f32.mrb[26].mxu1 }
 0x30d   :  { %v1175_v57 = vpop.f32.mrb[27].mxu1 }
 0x30e   :  { %10201 = vmatprep.mubr.msk.f32.mxu0 %vm448_vm1, %v1175_v57 }
 0x30f   :  { %10202 = vmatmul.mubr.msk.f32.gmra.mrb[10].mxu0 %vm448_vm1, %v10177_v56 }
 0x310   :  { %v10180_v58 = vpop.f32.mrb[28].mxu1 }
 0x311   :  { %v1185_v59 = vpop.f32.mrb[29].mxu1 }
 0x312   :  { %10204 = vmatprep.mubr.msk.f32.mxu0 %vm448_vm1, %v1185_v59 }
 0x313   :  { %10205 = vmatmul.mubr.msk.f32.gmra.mrb[12].mxu0 %vm448_vm1, %v10180_v58 }
 0x314   :  { %v10183_v60 = vpop.f32.mrb[30].mxu1 }
 0x315   :  { %v1195_v61 = vpop.f32.mrb[31].mxu1 }
 0x316   :  { %10207 = vmatprep.mubr.msk.f32.mxu0 %vm448_vm1, %v1195_v61 }
 0x317   :  { %10208 = vmatmul.mubr.msk.f32.gmra.mrb[14].mxu0 %vm448_vm1, %v10183_v60 }
 0x318   :  { %v10244_v62 = vpop.f32.mrb[32].mxu1 }
 0x319   :  { %v1501_v63 = vpop.f32.mrb[33].mxu1 }
 0x31a   :  { %10268 = vmatprep.mubr.msk.f32.mxu0 %vm448_vm1, %v1501_v63 }
 0x31b   :  { %10269 = vmatmul.mubr.msk.f32.vlgmr.msra.gmra.mrb[0].mxu0 %vm448_vm1, %v10244_v62 }
 0x31c   :  { %v10247_v0 = vpop.f32.mrb[34].mxu1  ;;  %10349 = vmatpush3.msk.msra.mxu0 %vm497_vm0, %v1957_v47 }
 0x31d   :  { %v1511_v1 = vpop.f32.mrb[35].mxu1 }
 0x31e   :  { %10271 = vmatprep.mubr.msk.f32.mxu0 %vm448_vm1, %v1511_v1 }
 0x31f   :  { %10272 = vmatmul.mubr.msk.f32.gmra.mrb[2].mxu0 %vm448_vm1, %v10247_v0 }
 0x320   :  { %v10250_v2 = vpop.f32.mrb[36].mxu1 }
 0x321   :  { %v1521_v3 = vpop.f32.mrb[37].mxu1 }
 0x322   :  { %10274 = vmatprep.mubr.msk.f32.mxu0 %vm448_vm1, %v1521_v3 }
 0x323   :  { %10275 = vmatmul.mubr.msk.f32.gmra.mrb[4].mxu0 %vm448_vm1, %v10250_v2 }
 0x324   :  { %v10253_v4 = vpop.f32.mrb[38].mxu1 }
 0x325   :  { %v1531_v5 = vpop.f32.mrb[39].mxu1 }
 0x326   :  { %10277 = vmatprep.mubr.msk.f32.mxu0 %vm448_vm1, %v1531_v5 }
 0x327   :  { %10278 = vmatmul.mubr.msk.f32.gmra.mrb[6].mxu0 %vm448_vm1, %v10253_v4 }
 0x328   :  { %v10256_v6 = vpop.f32.mrb[40].mxu1 }
 0x329   :  { %v1541_v7 = vpop.f32.mrb[41].mxu1 }
 0x32a   :  { %10280 = vmatprep.mubr.msk.f32.mxu0 %vm448_vm1, %v1541_v7 }
 0x32b   :  { %10281 = vmatmul.mubr.msk.f32.gmra.mrb[8].mxu0 %vm448_vm1, %v10256_v6 }
 0x32c   :  { %v10259_v8 = vpop.f32.mrb[42].mxu1 }
 0x32d   :  { %v1551_v9 = vpop.f32.mrb[43].mxu1 }
 0x32e   :  { %10283 = vmatprep.mubr.msk.f32.mxu0 %vm448_vm1, %v1551_v9 }
 0x32f   :  { %10284 = vmatmul.mubr.msk.f32.gmra.mrb[10].mxu0 %vm448_vm1, %v10259_v8 }
 0x330   :  { %v10262_v10 = vpop.f32.mrb[44].mxu1 }
 0x331   :  { %v1561_v11 = vpop.f32.mrb[45].mxu1 }
 0x332   :  { %10286 = vmatprep.mubr.msk.f32.mxu0 %vm448_vm1, %v1561_v11 }
 0x333   :  { %10287 = vmatmul.mubr.msk.f32.gmra.mrb[12].mxu0 %vm448_vm1, %v10262_v10 }
 0x334   :  { %v10265_v12 = vpop.f32.mrb[46].mxu1 }
 0x335   :  { %v1571_v13 = vpop.f32.mrb[47].mxu1 }
 0x336   :  { %10289 = vmatprep.mubr.msk.f32.mxu0 %vm448_vm1, %v1571_v13 }
 0x337   :  { %10290 = vmatmul.mubr.msk.f32.gmra.mrb[14].mxu0 %vm448_vm1, %v10265_v12 }
 0x338   :  { %v10326_v14 = vpop.f32.mrb[48].mxu1 }
 0x339   :  { %v1877_v15 = vpop.f32.mrb[49].mxu1 }
 0x33a   :  { %10350 = vmatprep.mubr.msk.f32.mxu0 %vm448_vm1, %v1877_v15 }
 0x33b   :  { %10351 = vmatmul.mubr.msk.f32.vlgmr.msra.gmra.mrb[0].mxu0 %vm448_vm1, %v10326_v14 }
 0x33c   :  { %v10329_v16 = vpop.f32.mrb[50].mxu1 }
 0x33d   :  { %v1887_v17 = vpop.f32.mrb[51].mxu1 }
 0x33e   :  { %10353 = vmatprep.mubr.msk.f32.mxu0 %vm448_vm1, %v1887_v17 }
 0x33f   :  { %10354 = vmatmul.mubr.msk.f32.gmra.mrb[2].mxu0 %vm448_vm1, %v10329_v16 }
 0x340   :  { %v10332_v18 = vpop.f32.mrb[52].mxu1 }
 0x341   :  { %v1897_v19 = vpop.f32.mrb[53].mxu1 }
 0x342   :  { %10356 = vmatprep.mubr.msk.f32.mxu0 %vm448_vm1, %v1897_v19 }
 0x343   :  { %10357 = vmatmul.mubr.msk.f32.gmra.mrb[4].mxu0 %vm448_vm1, %v10332_v18 }
 0x344   :  { %v10335_v20 = vpop.f32.mrb[54].mxu1 }
 0x345   :  { %v1907_v21 = vpop.f32.mrb[55].mxu1 }
 0x346   :  { %10359 = vmatprep.mubr.msk.f32.mxu0 %vm448_vm1, %v1907_v21 }
 0x347   :  { %10360 = vmatmul.mubr.msk.f32.gmra.mrb[6].mxu0 %vm448_vm1, %v10335_v20 }
 0x348   :  { %v10338_v22 = vpop.f32.mrb[56].mxu1 }
 0x349   :  { %v1917_v23 = vpop.f32.mrb[57].mxu1 }
 0x34a   :  { %10362 = vmatprep.mubr.msk.f32.mxu0 %vm448_vm1, %v1917_v23  ;;  %v2423_v23 = vld [vmem:[#allocation17 + $0x40] sm:$0xff] }
 0x34b   :  { %10363 = vmatmul.mubr.msk.f32.gmra.mrb[8].mxu0 %vm448_vm1, %v10338_v22 }
 0x34c   :  { %v10341_v24 = vpop.f32.mrb[58].mxu1 }
 0x34d   :  { %v1927_v25 = vpop.f32.mrb[59].mxu1 }
 0x34e   :  { %10365 = vmatprep.mubr.msk.f32.mxu0 %vm448_vm1, %v1927_v25 }
 0x34f   :  { %10366 = vmatmul.mubr.msk.f32.gmra.mrb[10].mxu0 %vm448_vm1, %v10341_v24  ;;  %v2424_v24 = vld [vmem:[#allocation17 + $0x48] sm:$0xff] }
 0x350   :  { %v10344_v26 = vpop.f32.mrb[60].mxu1 }
 0x351   :  { %v1937_v27 = vpop.f32.mrb[61].mxu1 }
 0x352   :  { %10368 = vmatprep.mubr.msk.f32.mxu0 %vm448_vm1, %v1937_v27  ;;  %v11532_v27 = vpack.c.bf16 %v2424_v24, %v2423_v23  ;;  %v2851_v23 = vld [vmem:[#allocation6 + $0x40] sm:$0xff]  ;;  %v2852_v24 = vld [vmem:[#allocation6 + $0x48] sm:$0xff] }
 0x353   :  { %10369 = vmatmul.mubr.msk.f32.gmra.mrb[12].mxu0 %vm448_vm1, %v10344_v26 }
 0x354   :  { %v10347_v28 = vpop.f32.mrb[62].mxu1 }
 0x355   :  { %v1947_v29 = vpop.f32.mrb[63].mxu1 }
 0x356   :  { %10371 = vmatprep.mubr.msk.f32.mxu0 %vm448_vm1, %v1947_v29  ;;  %v2301_v29 = vld [vmem:[#allocation3 + $0x48] sm:$0xff] }
 0x357   :  { %10372 = vmatmul.mubr.msk.f32.gmra.mrb[14].mxu0 %vm448_vm1, %v10347_v28  ;;  %v2187_v28 = vld [vmem:[#allocation3 + $0x8] sm:$0xff] }
 0x358   :  { %10450 = vmatprep.mubr.f32.mxu0 %v2300_v31  ;;  %v2302_v31 = vld [vmem:[#allocation3 + $0x50] sm:$0xff] }
 0x40e   :  { %v10352_v33 = vpop.f32.mrb[0].mxu0 }
 0x40f   :  { %v12130_v34 = vadd.f32 %v10352_v33, %v13678_v32  ;;  %v2075_v35 = vpop.f32.mrb[1].mxu0  ;;  %v2303_v33 = vld [vmem:[#allocation3 + $0x58] sm:$0xff] }
 0x410   :  { %v12131_v36 = vadd.f32 %v13678_v32, %v2075_v35  ;;  %v2304_v35 = vld [vmem:[#allocation3 + $0x60] sm:$0xff] }
 0x411   :  { %v2171_v37 = vmax.f32 %v12130_v34, 0.0  ;;  %v2190_v34 = vld [vmem:[#allocation3 + $0x20] sm:$0xff] }
 0x412   :  { %v2170_v38 = vmax.f32 %v12131_v36, 0.0  ;;  %v10355_v39 = vpop.f32.mrb[2].mxu0  ;;  %v2191_v36 = vld [vmem:[#allocation3 + $0x28] sm:$0xff] }
 0x413   :  { %v12132_v40 = vadd.f32 %v10355_v39, %v13678_v32  ;;  %v2085_v41 = vpop.f32.mrb[3].mxu0  ;;  %v2306_v39 = vld [vmem:[#allocation3 + $0x70] sm:$0xff] }
 0x414   :  { %v11468_v42 = vpack.c.bf16 %v2171_v37, %v2170_v38  ;;  %v12133_v43 = vadd.f32 %v13678_v32, %v2085_v41  ;;  %v2305_v37 = vld [vmem:[#allocation3 + $0x68] sm:$0xff]  ;;  %v2192_v38 = vld [vmem:[#allocation3 + $0x30] sm:$0xff]  ;;  %v2307_v41 = vld [vmem:[#allocation3 + $0x78] sm:$0xff] }
 0x415   :  { %v2173_v44 = vmax.f32 %v12132_v40, 0.0  ;;  %v2193_v40 = vld [vmem:[#allocation3 + $0x38] sm:$0xff] }
 0x416   :  { %v2172_v45 = vmax.f32 %v12133_v43, 0.0  ;;  %v10358_v46 = vpop.f32.mrb[4].mxu0  ;;  %11469 = vmatprep.subr.bf16.mxu1 %v11468_v42  ;;  %11501 = vmatprep.subr.bf16.mxu0 %v11468_v42  ;;  %v2426_v43 = vld [vmem:[#allocation17 + $0x58] sm:$0xff] }
 0x417   :  { %v12134_v47 = vadd.f32 %v10358_v46, %v13678_v32  ;;  %v2095_v48 = vpop.f32.mrb[5].mxu0  ;;  %11471 = vmatpush3.bf16.msra.mxu1 %v11468_v42  ;;  %11503 = vmatpush3.bf16.msra.mxu0 %v11468_v42  ;;  %v2425_v42 = vld [vmem:[#allocation17 + $0x50] sm:$0xff]  ;;  %v2709_v46 = vld [vmem:[#allocation17] sm:$0xff] }
 0x418   :  { %v11472_v49 = vpack.c.bf16 %v2173_v44, %v2172_v45  ;;  %v12135_v50 = vadd.f32 %v13678_v32, %v2095_v48  ;;  %v11536_v44 = vpack.c.bf16 %v2426_v43, %v2425_v42  ;;  %v2571_v45 = vld [vmem:[#allocation6] sm:$0xff]  ;;  %v3414_v42 = vld [vmem:[#allocation6 + $0xd8] sm:$0xff] }
 0x419   :  { %v2175_v51 = vmax.f32 %v12134_v47, 0.0  ;;  %v2710_v47 = vld [vmem:[#allocation17 + $0x8] sm:$0xff]  ;;  %v3415_v43 = vld [vmem:[#allocation6 + $0xe0] sm:$0xff] }
 0x41a   :  { %v2174_v52 = vmax.f32 %v12135_v50, 0.0  ;;  %v10361_v53 = vpop.f32.mrb[6].mxu0  ;;  %11473 = vmatprep.subr.bf16.mxu1 %v11472_v49  ;;  %11505 = vmatprep.subr.bf16.mxu0 %v11472_v49  ;;  %v11556_v48 = vpack.c.bf16 %v2710_v47, %v2709_v46  ;;  %v3418_v46 = vld [vmem:[#allocation6 + $0xf8] sm:$0xff]  ;;  %v2989_v47 = vld [vmem:[#allocation17 + $0x20] sm:$0xff] }
 0x41b   :  { %v12136_v54 = vadd.f32 %v10361_v53, %v13678_v32  ;;  %v2105_v55 = vpop.f32.mrb[7].mxu0  ;;  %11475 = vmatpush3.bf16.msra.mxu1 %v11472_v49  ;;  %11507 = vmatpush3.bf16.msra.mxu0 %v11472_v49 }
 0x41c   :  { %v11476_v56 = vpack.c.bf16 %v2175_v51, %v2174_v52  ;;  %v12137_v57 = vadd.f32 %v13678_v32, %v2105_v55  ;;  %v2711_v51 = vld [vmem:[#allocation17 + $0x10] sm:$0xff]  ;;  %v2712_v52 = vld [vmem:[#allocation17 + $0x18] sm:$0xff] }
 0x41d   :  { %v2177_v58 = vmax.f32 %v12136_v54, 0.0 }
 0x41e   :  { %v2176_v59 = vmax.f32 %v12137_v57, 0.0  ;;  %v10364_v60 = vpop.f32.mrb[8].mxu0  ;;  %11477 = vmatprep.subr.bf16.mxu1 %v11476_v56  ;;  %11509 = vmatprep.subr.bf16.mxu0 %v11476_v56  ;;  %v11560_v57 = vpack.c.bf16 %v2712_v52, %v2711_v51  ;;  %v2992_v51 = vld [vmem:[#allocation17 + $0x38] sm:$0xff] }
 0x41f   :  { %v12138_v61 = vadd.f32 %v10364_v60, %v13678_v32  ;;  %v2115_v62 = vpop.f32.mrb[9].mxu0  ;;  %11479 = vmatpush3.bf16.msra.mxu1 %v11476_v56  ;;  %11511 = vmatpush3.bf16.msra.mxu0 %v11476_v56 }
 0x420   :  { %v11480_v63 = vpack.c.bf16 %v2177_v58, %v2176_v59  ;;  %v12139_v0 = vadd.f32 %v13678_v32, %v2115_v62 }
 0x421   :  { %v2179_v1 = vmax.f32 %v12138_v61, 0.0 }
 0x422   :  { %v2178_v2 = vmax.f32 %v12139_v0, 0.0  ;;  %v10367_v3 = vpop.f32.mrb[10].mxu0  ;;  %11481 = vmatprep.subr.bf16.mxu1 %v11480_v63  ;;  %11513 = vmatprep.subr.bf16.mxu0 %v11480_v63 }
 0x423   :  { %v12140_v4 = vadd.f32 %v10367_v3, %v13678_v32  ;;  %v2125_v5 = vpop.f32.mrb[11].mxu0  ;;  %11483 = vmatpush3.bf16.msra.mxu1 %v11480_v63  ;;  %11515 = vmatpush3.bf16.msra.mxu0 %v11480_v63 }
 0x424   :  { %v11484_v6 = vpack.c.bf16 %v2179_v1, %v2178_v2  ;;  %v12141_v7 = vadd.f32 %v13678_v32, %v2125_v5 }
 0x425   :  { %v2181_v8 = vmax.f32 %v12140_v4, 0.0 }
 0x426   :  { %v2180_v9 = vmax.f32 %v12141_v7, 0.0  ;;  %v10370_v10 = vpop.f32.mrb[12].mxu0  ;;  %11485 = vmatprep.subr.bf16.mxu1 %v11484_v6  ;;  %11517 = vmatprep.subr.bf16.mxu0 %v11484_v6 }
 0x427   :  { %v12142_v11 = vadd.f32 %v10370_v10, %v13678_v32  ;;  %v2135_v12 = vpop.f32.mrb[13].mxu0  ;;  %11487 = vmatpush3.bf16.msra.mxu1 %v11484_v6  ;;  %11519 = vmatpush3.bf16.msra.mxu0 %v11484_v6 }
 0x428   :  { %v11488_v13 = vpack.c.bf16 %v2181_v8, %v2180_v9  ;;  %v12143_v14 = vadd.f32 %v13678_v32, %v2135_v12 }
 0x429   :  { %v2183_v15 = vmax.f32 %v12142_v11, 0.0 }
 0x42a   :  { %v2182_v16 = vmax.f32 %v12143_v14, 0.0  ;;  %v10373_v17 = vpop.f32.mrb[14].mxu0  ;;  %11489 = vmatprep.subr.bf16.mxu1 %v11488_v13  ;;  %11521 = vmatprep.subr.bf16.mxu0 %v11488_v13 }
 0x42b   :  { %v12144_v18 = vadd.f32 %v10373_v17, %v13678_v32  ;;  %v2145_v19 = vpop.f32.mrb[15].mxu0  ;;  %11491 = vmatpush3.bf16.msra.mxu1 %v11488_v13  ;;  %11523 = vmatpush3.bf16.msra.mxu0 %v11488_v13  ;;  %v2573_v17 = vld [vmem:[#allocation6 + $0x10] sm:$0xff] }
 0x42c   :  { %v11492_v20 = vpack.c.bf16 %v2183_v15, %v2182_v16  ;;  %v12145_v21 = vadd.f32 %v13678_v32, %v2145_v19  ;;  %v2189_v32 = vld [vmem:[#allocation3 + $0x18] sm:$0xff]  ;;  %v2572_v16 = vld [vmem:[#allocation6 + $0x8] sm:$0xff]  ;;  %v2575_v19 = vld [vmem:[#allocation6 + $0x20] sm:$0xff] }
 0x42d   :  { %v2185_v22 = vmax.f32 %v12144_v18, 0.0  ;;  %v2574_v18 = vld [vmem:[#allocation6 + $0x18] sm:$0xff] }
 0x42e   :  { %v2184_v25 = vmax.f32 %v12145_v21, 0.0  ;;  %11493 = vmatprep.subr.bf16.mxu1 %v11492_v20  ;;  %11525 = vmatprep.subr.bf16.mxu0 %v11492_v20  ;;  %v2577_v21 = vld [vmem:[#allocation6 + $0x30] sm:$0xff] }
 0x42f   :  { %11495 = vmatpush3.bf16.msra.mxu1 %v11492_v20  ;;  %11527 = vmatpush3.bf16.msra.mxu0 %v11492_v20  ;;  %v2576_v20 = vld [vmem:[#allocation6 + $0x28] sm:$0xff] }
 0x430   :  { %v11496_v26 = vpack.c.bf16 %v2185_v22, %v2184_v25  ;;  %v2578_v22 = vld [vmem:[#allocation6 + $0x38] sm:$0xff]  ;;  %v2853_v25 = vld [vmem:[#allocation6 + $0x50] sm:$0xff] }
 0x432   :  { %11497 = vmatprep.subr.bf16.mxu1 %v11496_v26  ;;  %11529 = vmatprep.subr.bf16.mxu0 %v11496_v26 }
 0x433   :  { %11499 = vmatpush3.bf16.msra.mxu1 %v11496_v26  ;;  %11531 = vmatpush3.bf16.msra.mxu0 %v11496_v26  ;;  %v2854_v26 = vld [vmem:[#allocation6 + $0x58] sm:$0xff] }
 0x434   :  { %11533 = vmatprep.subr.bf16.mxu1 %v11532_v27 }
 0x436   :  { %10407 = vmatmul.mubr.f32.vlgmr.msra.gmra.mrb[64].mxu1 %v2187_v28  ;;  %10451 = vmatmul.mubr.f32.vlgmr.msra.gmra.mrb[16].mxu0 %v2301_v29  ;;  %v2856_v28 = vld [vmem:[#allocation6 + $0x68] sm:$0xff]  ;;  %v2857_v29 = vld [vmem:[#allocation6 + $0x70] sm:$0xff] }
 0x437   :  { %10409 = vmatprep.mubr.f32.mxu1 %v2188_v30  ;;  %10453 = vmatprep.mubr.f32.mxu0 %v2302_v31  ;;  %v2858_v30 = vld [vmem:[#allocation6 + $0x78] sm:$0xff]  ;;  %v3131_v31 = vld [vmem:[#allocation6 + $0x80] sm:$0xff] }
 0x438   :  { %11535 = vmatpush3.bf16.msra.mxu1 %v11532_v27  ;;  %v2855_v27 = vld [vmem:[#allocation6 + $0x60] sm:$0xff] }
 0x439   :  { %11537 = vmatprep.subr.bf16.mxu1 %v11536_v44 }
 0x43a   :  { %10410 = vmatmul.mubr.f32.gmra.mrb[66].mxu1 %v2189_v32  ;;  %10454 = vmatmul.mubr.f32.gmra.mrb[18].mxu0 %v2303_v33  ;;  %v3132_v32 = vld [vmem:[#allocation6 + $0x88] sm:$0xff]  ;;  %v3133_v33 = vld [vmem:[#allocation6 + $0x90] sm:$0xff] }
 0x43b   :  { %10412 = vmatprep.mubr.f32.mxu1 %v2190_v34  ;;  %10456 = vmatprep.mubr.f32.mxu0 %v2304_v35  ;;  %v3134_v34 = vld [vmem:[#allocation6 + $0x98] sm:$0xff]  ;;  %v3135_v35 = vld [vmem:[#allocation6 + $0xa0] sm:$0xff] }
 0x43c   :  { %11539 = vmatpush3.bf16.msra.mxu1 %v11536_v44  ;;  %v3416_v44 = vld [vmem:[#allocation6 + $0xe8] sm:$0xff] }
 0x43d   :  { %11557 = vmatprep.subr.bf16.mxu1 %v11556_v48 }
 0x43e   :  { %10413 = vmatmul.mubr.f32.gmra.mrb[68].mxu1 %v2191_v36  ;;  %10457 = vmatmul.mubr.f32.gmra.mrb[20].mxu0 %v2305_v37  ;;  %v3136_v36 = vld [vmem:[#allocation6 + $0xa8] sm:$0xff]  ;;  %v3137_v37 = vld [vmem:[#allocation6 + $0xb0] sm:$0xff] }
 0x43f   :  { %10415 = vmatprep.mubr.f32.mxu1 %v2192_v38  ;;  %10459 = vmatprep.mubr.f32.mxu0 %v2306_v39  ;;  %v3138_v38 = vld [vmem:[#allocation6 + $0xb8] sm:$0xff]  ;;  %v3411_v39 = vld [vmem:[#allocation6 + $0xc0] sm:$0xff] }
 0x442   :  { %10416 = vmatmul.mubr.f32.gmra.mrb[70].mxu1 %v2193_v40  ;;  %10460 = vmatmul.mubr.f32.gmra.mrb[22].mxu0 %v2307_v41  ;;  %v3412_v40 = vld [vmem:[#allocation6 + $0xc8] sm:$0xff]  ;;  %v3413_v41 = vld [vmem:[#allocation6 + $0xd0] sm:$0xff] }
 0x443   :  { %10498 = vmatprep.mubr.msk.f32.mxu0 %vm2579_vm2, %v2571_v45  ;;  %v3417_v45 = vld [vmem:[#allocation6 + $0xf0] sm:$0xff] }
 0x509   :  { %v10408_v49 = vpop.f32.mrb[64].mxu1  ;;  %v10452_v50 = vpop.f32.mrb[16].mxu0 }
 0x50a   :  { %v2414_v53 = vmax.f32 %v10408_v49, %v10452_v50  ;;  %v2260_v54 = vpop.f32.mrb[65].mxu1  ;;  %v2374_v55 = vpop.f32.mrb[17].mxu0  ;;  %v2991_v50 = vld [vmem:[#allocation17 + $0x30] sm:$0xff] }
 0x50b   :  { %v2413_v56 = vmax.f32 %v2260_v54, %v2374_v55  ;;  %v11584_v54 = vpack.c.bf16 %v2992_v51, %v2991_v50  ;;  %v3269_v55 = vld [vmem:[#allocation17 + $0x60] sm:$0xff] }
 0x50d   :  { %v13697_v58 = vpack.c.bf16 %v2414_v53, %v2413_v56  ;;  %v10411_v59 = vpop.f32.mrb[66].mxu1  ;;  %v10455_v60 = vpop.f32.mrb[18].mxu0  ;;  %10470 = vmatprep.mubr.msk.f32.mxu1 %vm2427_vm3, %v2413_v56  ;;  %v3270_v56 = vld [vmem:[#allocation17 + $0x68] sm:$0xff] }
 0x50e   :  { %v2416_v61 = vmax.f32 %v10411_v59, %v10455_v60  ;;  %v2270_v62 = vpop.f32.mrb[67].mxu1  ;;  %v2384_v63 = vpop.f32.mrb[19].mxu0  ;;  %10471 = vmatmul.mubr.msk.f32.vlgmr.msra.gmra.mrb[72].mxu1 %vm2427_vm3, %v2414_v53  ;;  %v11604_v59 = vpack.c.bf16 %v3270_v56, %v3269_v55 }
 0x50f   :  { %v2415_v0 = vmax.f32 %v2270_v62, %v2384_v63  ;;  %11541 = vmatprep.subr.bf16.mxu0 %v13697_v58  ;;  %11559 = vmatpush3.bf16.msra.mxu1 %v11556_v48  ;;  %v2990_v48 = vld [vmem:[#allocation17 + $0x28] sm:$0xff] }
 0x510   :  { %11543 = vmatpush3.bf16.msra.mxu0 %v13697_v58  ;;  %11561 = vmatprep.subr.bf16.mxu1 %v11560_v57  ;;  %v11580_v49 = vpack.c.bf16 %v2990_v48, %v2989_v47 }
 0x511   :  { %v13703_v1 = vpack.c.bf16 %v2416_v61, %v2415_v0  ;;  %v10414_v2 = vpop.f32.mrb[68].mxu1  ;;  %v10458_v3 = vpop.f32.mrb[20].mxu0  ;;  %10473 = vmatprep.mubr.msk.f32.mxu1 %vm2427_vm3, %v2415_v0  ;;  %v3271_v0 = vld [vmem:[#allocation17 + $0x70] sm:$0xff] }
 0x512   :  { %v2418_v4 = vmax.f32 %v10414_v2, %v10458_v3  ;;  %v2280_v5 = vpop.f32.mrb[69].mxu1  ;;  %v2394_v6 = vpop.f32.mrb[21].mxu0  ;;  %10474 = vmatmul.mubr.msk.f32.gmra.mrb[74].mxu1 %vm2427_vm3, %v2416_v61 }
 0x513   :  { %v2417_v7 = vmax.f32 %v2280_v5, %v2394_v6  ;;  %11545 = vmatprep.subr.bf16.mxu0 %v13703_v1  ;;  %11563 = vmatpush3.bf16.msra.mxu1 %v11560_v57  ;;  %v3549_v5 = vld [vmem:[#allocation17 + $0x80] sm:$0xff]  ;;  %v3550_v6 = vld [vmem:[#allocation17 + $0x88] sm:$0xff] }
 0x514   :  { %11547 = vmatpush3.bf16.msra.mxu0 %v13703_v1  ;;  %11581 = vmatprep.subr.bf16.mxu1 %v11580_v49 }
 0x515   :  { %v13709_v8 = vpack.c.bf16 %v2418_v4, %v2417_v7  ;;  %v10417_v9 = vpop.f32.mrb[70].mxu1  ;;  %v10461_v10 = vpop.f32.mrb[22].mxu0  ;;  %10476 = vmatprep.mubr.msk.f32.mxu1 %vm2427_vm3, %v2417_v7 }
 0x516   :  { %v2420_v11 = vmax.f32 %v10417_v9, %v10461_v10  ;;  %v2290_v12 = vpop.f32.mrb[71].mxu1  ;;  %v2404_v13 = vpop.f32.mrb[23].mxu0  ;;  %10477 = vmatmul.mubr.msk.f32.gmra.mrb[76].mxu1 %vm2427_vm3, %v2418_v4  ;;  %v11628_v9 = vpack.c.bf16 %v3550_v6, %v3549_v5  ;;  %v3700_v5 = vld [vmem:[#allocation8 + $0x10] sm:$0xff] }
 0x517   :  { %v2419_v14 = vmax.f32 %v2290_v12, %v2404_v13  ;;  %11549 = vmatprep.subr.bf16.mxu0 %v13709_v8  ;;  %v3802_v6 = vld [vmem:[#allocation8 + $0x30] sm:$0xff] }
 0x518   :  { %11551 = vmatpush3.bf16.msra.mxu0 %v13709_v8 }
 0x519   :  { %v13715_v15 = vpack.c.bf16 %v2420_v11, %v2419_v14  ;;  %10479 = vmatprep.mubr.msk.f32.mxu1 %vm2427_vm3, %v2419_v14  ;;  %v3551_v14 = vld [vmem:[#allocation17 + $0x90] sm:$0xff] }
 0x51a   :  { %10480 = vmatmul.mubr.msk.f32.gmra.mrb[78].mxu1 %vm2427_vm3, %v2420_v11 }
 0x51b   :  { %11553 = vmatprep.subr.bf16.mxu0 %v13715_v15 }
 0x51c   :  { %11555 = vmatpush3.bf16.msra.mxu0 %v13715_v15 }
 0x51d   :  { %11565 = vmatprep.subr.bf16.mxu0 %v13697_v58 }
 0x51f   :  { %10499 = vmatmul.mubr.msk.f32.vlgmr.msra.gmra.mrb[24].mxu0 %vm2579_vm2, %v2572_v16 }
 0x520   :  { %11567 = vmatpush3.bf16.msra.mxu0 %v13697_v58  ;;  %10501 = vmatprep.mubr.msk.f32.mxu0 %vm2579_vm2, %v2573_v17 }
 0x521   :  { %11569 = vmatprep.subr.bf16.mxu0 %v13703_v1 }
 0x523   :  { %10502 = vmatmul.mubr.msk.f32.gmra.mrb[26].mxu0 %vm2579_vm2, %v2574_v18 }
 0x524   :  { %11571 = vmatpush3.bf16.msra.mxu0 %v13703_v1  ;;  %10504 = vmatprep.mubr.msk.f32.mxu0 %vm2579_vm2, %v2575_v19 }
 0x525   :  { %11573 = vmatprep.subr.bf16.mxu0 %v13709_v8 }
 0x527   :  { %10505 = vmatmul.mubr.msk.f32.gmra.mrb[28].mxu0 %vm2579_vm2, %v2576_v20 }
 0x528   :  { %11575 = vmatpush3.bf16.msra.mxu0 %v13709_v8  ;;  %10507 = vmatprep.mubr.msk.f32.mxu0 %vm2579_vm2, %v2577_v21 }
 0x529   :  { %11577 = vmatprep.subr.bf16.mxu0 %v13715_v15 }
 0x52b   :  { %10508 = vmatmul.mubr.msk.f32.gmra.mrb[30].mxu0 %vm2579_vm2, %v2578_v22 }
 0x52c   :  { %11579 = vmatpush3.bf16.msra.mxu0 %v13715_v15  ;;  %10546 = vmatprep.mubr.msk.f32.mxu0 %vm2579_vm2, %v2851_v23 }
 0x52d   :  { %11589 = vmatprep.subr.bf16.mxu0 %v13697_v58 }
 0x52f   :  { %10547 = vmatmul.mubr.msk.f32.vlgmr.msra.gmra.mrb[32].mxu0 %vm2579_vm2, %v2852_v24 }
 0x530   :  { %11591 = vmatpush3.bf16.msra.mxu0 %v13697_v58  ;;  %10549 = vmatprep.mubr.msk.f32.mxu0 %vm2579_vm2, %v2853_v25 }
 0x531   :  { %11593 = vmatprep.subr.bf16.mxu0 %v13703_v1 }
 0x533   :  { %10550 = vmatmul.mubr.msk.f32.gmra.mrb[34].mxu0 %vm2579_vm2, %v2854_v26 }
 0x534   :  { %11595 = vmatpush3.bf16.msra.mxu0 %v13703_v1  ;;  %10552 = vmatprep.mubr.msk.f32.mxu0 %vm2579_vm2, %v2855_v27 }
 0x535   :  { %11597 = vmatprep.subr.bf16.mxu0 %v13709_v8 }
 0x537   :  { %10553 = vmatmul.mubr.msk.f32.gmra.mrb[36].mxu0 %vm2579_vm2, %v2856_v28 }
 0x538   :  { %11599 = vmatpush3.bf16.msra.mxu0 %v13709_v8  ;;  %10555 = vmatprep.mubr.msk.f32.mxu0 %vm2579_vm2, %v2857_v29 }
 0x539   :  { %11601 = vmatprep.subr.bf16.mxu0 %v13715_v15 }
 0x53b   :  { %10556 = vmatmul.mubr.msk.f32.gmra.mrb[38].mxu0 %vm2579_vm2, %v2858_v30 }
 0x53c   :  { %11603 = vmatpush3.bf16.msra.mxu0 %v13715_v15  ;;  %10594 = vmatprep.mubr.msk.f32.mxu0 %vm2579_vm2, %v3131_v31 }
 0x53d   :  { %11613 = vmatprep.subr.bf16.mxu0 %v13697_v58 }
 0x53f   :  { %10595 = vmatmul.mubr.msk.f32.vlgmr.msra.gmra.mrb[40].mxu0 %vm2579_vm2, %v3132_v32 }
 0x540   :  { %11615 = vmatpush3.bf16.msra.mxu0 %v13697_v58  ;;  %10597 = vmatprep.mubr.msk.f32.mxu0 %vm2579_vm2, %v3133_v33  ;;  %v3698_v33 = vld [vmem:[#allocation8] sm:$0xff] }
 0x541   :  { %11617 = vmatprep.subr.bf16.mxu0 %v13703_v1 }
 0x543   :  { %10598 = vmatmul.mubr.msk.f32.gmra.mrb[42].mxu0 %vm2579_vm2, %v3134_v34  ;;  %v3800_v34 = vld [vmem:[#allocation8 + $0x20] sm:$0xff] }
 0x544   :  { %11619 = vmatpush3.bf16.msra.mxu0 %v13703_v1  ;;  %10600 = vmatprep.mubr.msk.f32.mxu0 %vm2579_vm2, %v3135_v35  ;;  %v3272_v1 = vld [vmem:[#allocation17 + $0x78] sm:$0xff]  ;;  %v9035_v35 = vld [vmem:[#allocation18] ss:$0 sm:$0xff] }
 0x545   :  { %11621 = vmatprep.subr.bf16.mxu0 %v13709_v8  ;;  %v11608_v4 = vpack.c.bf16 %v3272_v1, %v3271_v0 }
 0x547   :  { %10601 = vmatmul.mubr.msk.f32.gmra.mrb[44].mxu0 %vm2579_vm2, %v3136_v36 }
 0x548   :  { %11623 = vmatpush3.bf16.msra.mxu0 %v13709_v8  ;;  %10603 = vmatprep.mubr.msk.f32.mxu0 %vm2579_vm2, %v3137_v37 }
 0x549   :  { %11625 = vmatprep.subr.bf16.mxu0 %v13715_v15 }
 0x54b   :  { %10604 = vmatmul.mubr.msk.f32.gmra.mrb[46].mxu0 %vm2579_vm2, %v3138_v38 }
 0x54c   :  { %11627 = vmatpush3.bf16.msra.mxu0 %v13715_v15  ;;  %10642 = vmatprep.mubr.msk.f32.mxu0 %vm2579_vm2, %v3411_v39  ;;  %v3552_v15 = vld [vmem:[#allocation17 + $0x98] sm:$0xff] }
 0x54d   :  { %v11632_v18 = vpack.c.bf16 %v3552_v15, %v3551_v14 }
 0x54f   :  { %10643 = vmatmul.mubr.msk.f32.vlgmr.msra.gmra.mrb[48].mxu0 %vm2579_vm2, %v3412_v40 }
 0x550   :  { %10645 = vmatprep.mubr.msk.f32.mxu0 %vm2579_vm2, %v3413_v41 }
 0x553   :  { %10646 = vmatmul.mubr.msk.f32.gmra.mrb[50].mxu0 %vm2579_vm2, %v3414_v42 }
 0x554   :  { %10648 = vmatprep.mubr.msk.f32.mxu0 %vm2579_vm2, %v3415_v43 }
 0x557   :  { %10649 = vmatmul.mubr.msk.f32.gmra.mrb[52].mxu0 %vm2579_vm2, %v3416_v44 }
 0x558   :  { %10651 = vmatprep.mubr.msk.f32.mxu0 %vm2579_vm2, %v3417_v45 }
 0x55b   :  { %10652 = vmatmul.mubr.msk.f32.gmra.mrb[54].mxu0 %vm2579_vm2, %v3418_v46 }
 0x55c   :  { %10690 = vmatprep.mubr.msk.f32.mxu0 %vm2579_vm2, %v3698_v33  ;;  %v4019_v33 = vld [vmem:[#allocation9 + $0x8] sm:$0xff] }
 0x5f2   :  { %v10500_v52 = vpop.f32.mrb[24].mxu0 }
 0x5f3   :  { %v2670_v53 = vpop.f32.mrb[25].mxu0 }
 0x5f4   :  { %10518 = vmatprep.mubr.msk.f32.mxu1 %vm2427_vm3, %v2670_v53 }
 0x5f5   :  { %10519 = vmatmul.mubr.msk.f32.vlgmr.msra.gmra.mrb[72].mxu1 %vm2427_vm3, %v10500_v52 }
 0x5f6   :  { %v10503_v57 = vpop.f32.mrb[26].mxu0  ;;  %11583 = vmatpush3.bf16.msra.mxu1 %v11580_v49 }
 0x5f7   :  { %v2680_v58 = vpop.f32.mrb[27].mxu0  ;;  %11585 = vmatprep.subr.bf16.mxu1 %v11584_v54 }
 0x5f8   :  { %10521 = vmatprep.mubr.msk.f32.mxu1 %vm2427_vm3, %v2680_v58 }
 0x5f9   :  { %10522 = vmatmul.mubr.msk.f32.gmra.mrb[74].mxu1 %vm2427_vm3, %v10503_v57 }
 0x5fa   :  { %v10506_v60 = vpop.f32.mrb[28].mxu0  ;;  %11587 = vmatpush3.bf16.msra.mxu1 %v11584_v54 }
 0x5fb   :  { %v2690_v61 = vpop.f32.mrb[29].mxu0  ;;  %11605 = vmatprep.subr.bf16.mxu1 %v11604_v59 }
 0x5fc   :  { %10524 = vmatprep.mubr.msk.f32.mxu1 %vm2427_vm3, %v2690_v61 }
 0x5fd   :  { %10525 = vmatmul.mubr.msk.f32.gmra.mrb[76].mxu1 %vm2427_vm3, %v10506_v60 }
 0x5fe   :  { %v10509_v62 = vpop.f32.mrb[30].mxu0 }
 0x5ff   :  { %v2700_v63 = vpop.f32.mrb[31].mxu0 }
 0x600   :  { %10527 = vmatprep.mubr.msk.f32.mxu1 %vm2427_vm3, %v2700_v63  ;;  %v3908_v63 = vld [vmem:[#allocation20 + $0x48] sm:$0xff] }
 0x601   :  { %10528 = vmatmul.mubr.msk.f32.gmra.mrb[78].mxu1 %vm2427_vm3, %v10509_v62  ;;  %v3907_v62 = vld [vmem:[#allocation20 + $0x40] sm:$0xff] }
 0x602   :  { %v10548_v2 = vpop.f32.mrb[32].mxu0 }
 0x603   :  { %v2949_v3 = vpop.f32.mrb[33].mxu0 }
 0x604   :  { %10566 = vmatprep.mubr.msk.f32.mxu1 %vm2427_vm3, %v2949_v3  ;;  %v3699_v3 = vld [vmem:[#allocation8 + $0x8] sm:$0xff] }
 0x605   :  { %10567 = vmatmul.mubr.msk.f32.vlgmr.msra.gmra.mrb[72].mxu1 %vm2427_vm3, %v10548_v2  ;;  %v11668_v2 = vpack.c.bf16 %v3908_v63, %v3907_v62 }
 0x606   :  { %v10551_v7 = vpop.f32.mrb[34].mxu0  ;;  %11607 = vmatpush3.bf16.msra.mxu1 %v11604_v59 }
 0x607   :  { %v2959_v8 = vpop.f32.mrb[35].mxu0  ;;  %11609 = vmatprep.subr.bf16.mxu1 %v11608_v4 }
 0x608   :  { %10569 = vmatprep.mubr.msk.f32.mxu1 %vm2427_vm3, %v2959_v8  ;;  %v3803_v8 = vld [vmem:[#allocation8 + $0x38] sm:$0xff] }
 0x609   :  { %10570 = vmatmul.mubr.msk.f32.gmra.mrb[74].mxu1 %vm2427_vm3, %v10551_v7  ;;  %v3701_v7 = vld [vmem:[#allocation8 + $0x18] sm:$0xff] }
 0x60a   :  { %v10554_v10 = vpop.f32.mrb[36].mxu0  ;;  %11611 = vmatpush3.bf16.msra.mxu1 %v11608_v4  ;;  %v3801_v4 = vld [vmem:[#allocation8 + $0x28] sm:$0xff] }
 0x60b   :  { %v2969_v11 = vpop.f32.mrb[37].mxu0  ;;  %11629 = vmatprep.subr.bf16.mxu1 %v11628_v9 }
 0x60c   :  { %10572 = vmatprep.mubr.msk.f32.mxu1 %vm2427_vm3, %v2969_v11 }
 0x60d   :  { %10573 = vmatmul.mubr.msk.f32.gmra.mrb[76].mxu1 %vm2427_vm3, %v10554_v10  ;;  %v3910_v10 = vld [vmem:[#allocation20 + $0x58] sm:$0xff] }
 0x60e   :  { %v10557_v12 = vpop.f32.mrb[38].mxu0 }
 0x60f   :  { %v2979_v13 = vpop.f32.mrb[39].mxu0 }
 0x610   :  { %10575 = vmatprep.mubr.msk.f32.mxu1 %vm2427_vm3, %v2979_v13 }
 0x611   :  { %10576 = vmatmul.mubr.msk.f32.gmra.mrb[78].mxu1 %vm2427_vm3, %v10557_v12  ;;  %v4433_v12 = vld [vmem:[#allocation9 + $0x40] sm:$0xff] }
 0x612   :  { %v10596_v16 = vpop.f32.mrb[40].mxu0 }
 0x613   :  { %v3229_v17 = vpop.f32.mrb[41].mxu0 }
 0x614   :  { %10614 = vmatprep.mubr.msk.f32.mxu1 %vm2427_vm3, %v3229_v17 }
 0x615   :  { %10615 = vmatmul.mubr.msk.f32.vlgmr.msra.gmra.mrb[72].mxu1 %vm2427_vm3, %v10596_v16 }
 0x616   :  { %v10599_v19 = vpop.f32.mrb[42].mxu0  ;;  %11631 = vmatpush3.bf16.msra.mxu1 %v11628_v9  ;;  %v3909_v9 = vld [vmem:[#allocation20 + $0x50] sm:$0xff] }
 0x617   :  { %v3239_v20 = vpop.f32.mrb[43].mxu0  ;;  %11633 = vmatprep.subr.bf16.mxu1 %v11632_v18  ;;  %v11672_v11 = vpack.c.bf16 %v3910_v10, %v3909_v9  ;;  %v4743_v10 = vld [vmem:[#allocation20 + $0x80] sm:$0xff] }
 0x618   :  { %10617 = vmatprep.mubr.msk.f32.mxu1 %vm2427_vm3, %v3239_v20 }
 0x619   :  { %10618 = vmatmul.mubr.msk.f32.gmra.mrb[74].mxu1 %vm2427_vm3, %v10599_v19 }
 0x61a   :  { %v10602_v21 = vpop.f32.mrb[44].mxu0  ;;  %11635 = vmatpush3.bf16.msra.mxu1 %v11632_v18 }
 0x61b   :  { %v3249_v22 = vpop.f32.mrb[45].mxu0 }
 0x61c   :  { %10620 = vmatprep.mubr.msk.f32.mxu1 %vm2427_vm3, %v3249_v22 }
 0x61d   :  { %10621 = vmatmul.mubr.msk.f32.gmra.mrb[76].mxu1 %vm2427_vm3, %v10602_v21 }
 0x61e   :  { %v10605_v23 = vpop.f32.mrb[46].mxu0 }
 0x61f   :  { %v3259_v24 = vpop.f32.mrb[47].mxu0 }
 0x620   :  { %10623 = vmatprep.mubr.msk.f32.mxu1 %vm2427_vm3, %v3259_v24 }
 0x621   :  { %10624 = vmatmul.mubr.msk.f32.gmra.mrb[78].mxu1 %vm2427_vm3, %v10605_v23 }
 0x622   :  { %v10644_v25 = vpop.f32.mrb[48].mxu0 }
 0x623   :  { %v3509_v26 = vpop.f32.mrb[49].mxu0 }
 0x624   :  { %10662 = vmatprep.mubr.msk.f32.mxu1 %vm2427_vm3, %v3509_v26  ;;  %v4119_v26 = vld [vmem:[#allocation20] sm:$0xff] }
 0x625   :  { %10663 = vmatmul.mubr.msk.f32.vlgmr.msra.gmra.mrb[72].mxu1 %vm2427_vm3, %v10644_v25 }
 0x626   :  { %v10647_v27 = vpop.f32.mrb[50].mxu0 }
 0x627   :  { %v3519_v28 = vpop.f32.mrb[51].mxu0 }
 0x628   :  { %10665 = vmatprep.mubr.msk.f32.mxu1 %vm2427_vm3, %v3519_v28 }
 0x629   :  { %10666 = vmatmul.mubr.msk.f32.gmra.mrb[74].mxu1 %vm2427_vm3, %v10647_v27  ;;  %v4120_v27 = vld [vmem:[#allocation20 + $0x8] sm:$0xff] }
 0x62a   :  { %v10650_v29 = vpop.f32.mrb[52].mxu0 }
 0x62b   :  { %v3529_v30 = vpop.f32.mrb[53].mxu0 }
 0x62c   :  { %10668 = vmatprep.mubr.msk.f32.mxu1 %vm2427_vm3, %v3529_v30  ;;  %v11684_v30 = vpack.c.bf16 %v4120_v27, %v4119_v26 }
 0x62d   :  { %10669 = vmatmul.mubr.msk.f32.gmra.mrb[76].mxu1 %vm2427_vm3, %v10650_v29  ;;  %v4018_v29 = vld [vmem:[#allocation9] sm:$0xff] }
 0x62e   :  { %v10653_v31 = vpop.f32.mrb[54].mxu0 }
 0x62f   :  { %v3539_v32 = vpop.f32.mrb[55].mxu0 }
 0x630   :  { %10671 = vmatprep.mubr.msk.f32.mxu1 %vm2427_vm3, %v3539_v32  ;;  %v4122_v32 = vld [vmem:[#allocation20 + $0x18] sm:$0xff] }
 0x631   :  { %10672 = vmatmul.mubr.msk.f32.gmra.mrb[78].mxu1 %vm2427_vm3, %v10653_v31  ;;  %v4121_v31 = vld [vmem:[#allocation20 + $0x10] sm:$0xff] }
 0x632   :  { %10712 = vmatprep.mubr.msk.f32.mxu1 %vm2579_vm2, %v3800_v34  ;;  %v4434_v34 = vld [vmem:[#allocation9 + $0x48] sm:$0xff] }
 0x6f8   :  { %v10664_v36 = vpop.f32.mrb[72].mxu1 }
 0x6f9   :  { %v12146_v37 = vadd.f32 %v10664_v36, %v9035_v35  ;;  %v3643_v38 = vpop.f32.mrb[73].mxu1  ;;  %v11688_v36 = vpack.c.bf16 %v4122_v32, %v4121_v31 }
 0x6fa   :  { %v12147_v39 = vadd.f32 %v9035_v35, %v3643_v38  ;;  %v4435_v38 = vld [vmem:[#allocation9 + $0x50] sm:$0xff] }
 0x6fb   :  { %v3691_v40 = vmax.f32 %v12146_v37, 0.0  ;;  %v4021_v37 = vld [vmem:[#allocation9 + $0x18] sm:$0xff] }
 0x6fc   :  { %v3690_v41 = vmax.f32 %v12147_v39, 0.0  ;;  %v10667_v42 = vpop.f32.mrb[74].mxu1  ;;  %v4436_v39 = vld [vmem:[#allocation9 + $0x58] sm:$0xff] }
 0x6fd   :  { %v12148_v43 = vadd.f32 %v10667_v42, %v9035_v35  ;;  %v3653_v44 = vpop.f32.mrb[75].mxu1  ;;  %v4643_v42 = vld [vmem:[#allocation9 + $0x70] sm:$0xff] }
 0x6fe   :  { %v11636_v45 = vpack.c.bf16 %v3691_v40, %v3690_v41  ;;  %v12149_v46 = vadd.f32 %v9035_v35, %v3653_v44  ;;  %v4641_v40 = vld [vmem:[#allocation9 + $0x60] sm:$0xff]  ;;  %v4642_v41 = vld [vmem:[#allocation9 + $0x68] sm:$0xff] }
 0x6ff   :  { %v3693_v47 = vmax.f32 %v12148_v43, 0.0  ;;  %v4644_v43 = vld [vmem:[#allocation9 + $0x78] sm:$0xff] }
 0x700   :  { %v3692_v48 = vmax.f32 %v12149_v46, 0.0  ;;  %v10670_v49 = vpop.f32.mrb[76].mxu1  ;;  %11637 = vmatprep.subr.bf16.mxu0 %v11636_v45  ;;  %11653 = vmatprep.subr.bf16.mxu1 %v11636_v45  ;;  %v4327_v46 = vld [vmem:[#allocation20 + $0x20] sm:$0xff] }
 0x701   :  { %v12150_v50 = vadd.f32 %v10670_v49, %v9035_v35  ;;  %v3663_v51 = vpop.f32.mrb[77].mxu1  ;;  %11639 = vmatpush3.bf16.msra.mxu0 %v11636_v45  ;;  %11655 = vmatpush3.bf16.msra.mxu1 %v11636_v45 }
 0x702   :  { %v11640_v52 = vpack.c.bf16 %v3693_v47, %v3692_v48  ;;  %v12151_v53 = vadd.f32 %v9035_v35, %v3663_v51  ;;  %v4328_v47 = vld [vmem:[#allocation20 + $0x28] sm:$0xff] }
 0x703   :  { %v3695_v54 = vmax.f32 %v12150_v50, 0.0  ;;  %v4225_v50 = vld [vmem:[#allocation9 + $0x20] sm:$0xff]  ;;  %v11700_v51 = vpack.c.bf16 %v4328_v47, %v4327_v46  ;;  %v9157_v46 = vld [vmem:[%s14456_s13 + $0xb0] sm:$0xff]  ;;  %v9158_v47 = vld [vmem:[%s14456_s13 + $0xb8] sm:$0xff] }
 0x704   :  { %v3694_v55 = vmax.f32 %v12151_v53, 0.0  ;;  %v10673_v56 = vpop.f32.mrb[78].mxu1  ;;  %11641 = vmatprep.subr.bf16.mxu0 %v11640_v52  ;;  %11657 = vmatprep.subr.bf16.mxu1 %v11640_v52  ;;  %v4330_v53 = vld [vmem:[#allocation20 + $0x38] sm:$0xff] }
 0x705   :  { %v12152_v57 = vadd.f32 %v10673_v56, %v9035_v35  ;;  %v3673_v58 = vpop.f32.mrb[79].mxu1  ;;  %11643 = vmatpush3.bf16.msra.mxu0 %v11640_v52  ;;  %11659 = vmatpush3.bf16.msra.mxu1 %v11640_v52  ;;  %v4329_v52 = vld [vmem:[#allocation20 + $0x30] sm:$0xff] }
 0x706   :  { %v11644_v59 = vpack.c.bf16 %v3695_v54, %v3694_v55  ;;  %v12153_v60 = vadd.f32 %v9035_v35, %v3673_v58  ;;  %v4020_v35 = vld [vmem:[#allocation9 + $0x10] sm:$0xff]  ;;  %v4226_v54 = vld [vmem:[#allocation9 + $0x28] sm:$0xff]  ;;  %v11704_v56 = vpack.c.bf16 %v4330_v53, %v4329_v52 }
 0x707   :  { %v3697_v61 = vmax.f32 %v12152_v57, 0.0  ;;  %v4227_v55 = vld [vmem:[#allocation9 + $0x30] sm:$0xff]  ;;  %v4228_v57 = vld [vmem:[#allocation9 + $0x38] sm:$0xff]  ;;  %v4535_v58 = vld [vmem:[#allocation20 + $0x60] sm:$0xff] }
 0x708   :  { %v3696_v0 = vmax.f32 %v12153_v60, 0.0  ;;  %11645 = vmatprep.subr.bf16.mxu0 %v11644_v59  ;;  %11661 = vmatprep.subr.bf16.mxu1 %v11644_v59 }
 0x709   :  { %11647 = vmatpush3.bf16.msra.mxu0 %v11644_v59  ;;  %11663 = vmatpush3.bf16.msra.mxu1 %v11644_v59  ;;  %v4536_v59 = vld [vmem:[#allocation20 + $0x68] sm:$0xff] }
 0x70a   :  { %v11648_v1 = vpack.c.bf16 %v3697_v61, %v3696_v0  ;;  %v11716_v60 = vpack.c.bf16 %v4536_v59, %v4535_v58 }
 0x70c   :  { %11649 = vmatprep.subr.bf16.mxu0 %v11648_v1  ;;  %11665 = vmatprep.subr.bf16.mxu1 %v11648_v1 }
 0x70d   :  { %11651 = vmatpush3.bf16.msra.mxu0 %v11648_v1  ;;  %11667 = vmatpush3.bf16.msra.mxu1 %v11648_v1 }
 0x70e   :  { %11669 = vmatprep.subr.bf16.mxu0 %v11668_v2 }
 0x710   :  { %10691 = vmatmul.mubr.msk.f32.vlgmr.msra.gmra.mrb[56].mxu0 %vm2579_vm2, %v3699_v3  ;;  %10713 = vmatmul.mubr.msk.f32.vlgmr.msra.gmra.mrb[80].mxu1 %vm2579_vm2, %v3801_v4 }
 0x711   :  { %10693 = vmatprep.mubr.msk.f32.mxu0 %vm2579_vm2, %v3700_v5  ;;  %10715 = vmatprep.mubr.msk.f32.mxu1 %vm2579_vm2, %v3802_v6  ;;  %v4537_v5 = vld [vmem:[#allocation20 + $0x70] sm:$0xff]  ;;  %v4538_v6 = vld [vmem:[#allocation20 + $0x78] sm:$0xff] }
 0x712   :  { %11671 = vmatpush3.bf16.msra.mxu0 %v11668_v2  ;;  %v11720_v9 = vpack.c.bf16 %v4538_v6, %v4537_v5  ;;  %v5211_v5 = vld [vmem:[%s14456_s13 + $0x38] sm:$0xff] }
 0x713   :  { %11673 = vmatprep.subr.bf16.mxu0 %v11672_v11  ;;  %v5297_v6 = vld [vmem:[#allocation11 + $0x18] sm:$0xff] }
 0x714   :  { %10694 = vmatmul.mubr.msk.f32.gmra.mrb[58].mxu0 %vm2579_vm2, %v3701_v7  ;;  %10716 = vmatmul.mubr.msk.f32.gmra.mrb[82].mxu1 %vm2579_vm2, %v3803_v8 }
 0x715   :  { %10796 = vmatprep.mubr.msk.f32.mxu1 %vm2427_vm3, %v4433_v12 }
 0x716   :  { %11675 = vmatpush3.bf16.msra.mxu0 %v11672_v11  ;;  %v4744_v11 = vld [vmem:[#allocation20 + $0x88] sm:$0xff] }
 0x7e3   :  { %v10692_v13 = vpop.f32.mrb[56].mxu0  ;;  %v10714_v14 = vpop.f32.mrb[80].mxu1 }
 0x7e4   :  { %v3902_v15 = vmax.f32 %v10692_v13, %v10714_v14  ;;  %v3780_v16 = vpop.f32.mrb[57].mxu0  ;;  %v3882_v17 = vpop.f32.mrb[81].mxu1  ;;  %v11732_v14 = vpack.c.bf16 %v4744_v11, %v4743_v10  ;;  %v5648_v10 = vld [vmem:[#allocation11 + $0x30] sm:$0xff]  ;;  %v5649_v11 = vld [vmem:[#allocation11 + $0x38] sm:$0xff] }
 0x7e5   :  { %v3901_v18 = vmax.f32 %v3780_v16, %v3882_v17  ;;  %v4746_v16 = vld [vmem:[#allocation20 + $0x98] sm:$0xff] }
 0x7e7   :  { %v13817_v19 = vpack.c.bf16 %v3902_v15, %v3901_v18  ;;  %v10695_v20 = vpop.f32.mrb[58].mxu0  ;;  %v10717_v21 = vpop.f32.mrb[82].mxu1  ;;  %10726 = vmatprep.mubr.msk.f32.mxu0 %vm2427_vm3, %v3901_v18  ;;  %v4852_v18 = vld [vmem:[%s14455_s8] sm:$0xff] }
 0x7e8   :  { %v3904_v22 = vmax.f32 %v10695_v20, %v10717_v21  ;;  %v3790_v23 = vpop.f32.mrb[59].mxu0  ;;  %v3892_v24 = vpop.f32.mrb[83].mxu1  ;;  %10727 = vmatmul.mubr.msk.f32.vlgmr.msra.gmra.mrb[60].mxu0 %vm2427_vm3, %v3902_v15  ;;  %v4745_v15 = vld [vmem:[#allocation20 + $0x90] sm:$0xff]  ;;  %v9152_v20 = vld [vmem:[%s14456_s13 + $0x88] sm:$0xff] }
 0x7e9   :  { %v3903_v25 = vmax.f32 %v3790_v23, %v3892_v24  ;;  %11677 = vmatprep.subr.bf16.mxu0 %v13817_v19  ;;  %11709 = vmatprep.subr.bf16.mxu1 %v13817_v19  ;;  %v11736_v17 = vpack.c.bf16 %v4746_v16, %v4745_v15  ;;  %v9170_v15 = vld [vmem:[%s14456_s13 + $0x50] sm:$0xff]  ;;  %v9171_v16 = vld [vmem:[%s14456_s13 + $0x58] sm:$0xff] }
 0x7ea   :  { %11679 = vmatpush3.bf16.msra.mxu0 %v13817_v19  ;;  %11711 = vmatpush3.bf16.msra.mxu1 %v13817_v19 }
 0x7eb   :  { %v11680_v28 = vpack.c.bf16 %v3904_v22, %v3903_v25  ;;  %10729 = vmatprep.mubr.msk.f32.mxu0 %vm2427_vm3, %v3903_v25 }
 0x7ec   :  { %10730 = vmatmul.mubr.msk.f32.gmra.mrb[62].mxu0 %vm2427_vm3, %v3904_v22  ;;  %v9112_v22 = vld [vmem:[#allocation21] ss:$0 sm:$0xff] }
 0x7ed   :  { %11681 = vmatprep.subr.bf16.mxu0 %v11680_v28  ;;  %11713 = vmatprep.subr.bf16.mxu1 %v11680_v28 }
 0x7ee   :  { %11683 = vmatpush3.bf16.msra.mxu0 %v11680_v28  ;;  %11715 = vmatpush3.bf16.msra.mxu1 %v11680_v28 }
 0x7ef   :  { %11725 = vmatprep.subr.bf16.mxu1 %v13817_v19  ;;  %10740 = vmatprep.mubr.msk.f32.mxu0 %vm2427_vm3, %v4018_v29 }
 0x7f0   :  { %11685 = vmatprep.subr.bf16.mxu0 %v11684_v30 }
 0x7f1   :  { %10741 = vmatmul.mubr.msk.f32.vlgmr.msra.gmra.mrb[64].mxu0 %vm2427_vm3, %v4019_v33  ;;  %10797 = vmatmul.mubr.msk.f32.vlgmr.msra.gmra.mrb[84].mxu1 %vm2427_vm3, %v4434_v34 }
 0x7f2   :  { %11687 = vmatpush3.bf16.msra.mxu0 %v11684_v30  ;;  %11727 = vmatpush3.bf16.msra.mxu1 %v13817_v19 }
 0x7f3   :  { %11729 = vmatprep.subr.bf16.mxu1 %v11680_v28  ;;  %10743 = vmatprep.mubr.msk.f32.mxu0 %vm2427_vm3, %v4020_v35 }
 0x7f4   :  { %11689 = vmatprep.subr.bf16.mxu0 %v11688_v36  ;;  %10799 = vmatprep.mubr.msk.f32.mxu1 %vm2427_vm3, %v4435_v38  ;;  %v9147_v38 = vld [vmem:[%s14455_s8 + $0x10] sm:$0xff] }
 0x7f5   :  { %10744 = vmatmul.mubr.msk.f32.gmra.mrb[66].mxu0 %vm2427_vm3, %v4021_v37  ;;  %10800 = vmatmul.mubr.msk.f32.gmra.mrb[86].mxu1 %vm2427_vm3, %v4436_v39  ;;  %v4853_v37 = vld [vmem:[%s14455_s8 + $0x8] sm:$0xff]  ;;  %v9148_v39 = vld [vmem:[%s14455_s8 + $0x18] sm:$0xff] }
 0x7f6   :  { %11691 = vmatpush3.bf16.msra.mxu0 %v11688_v36  ;;  %11731 = vmatpush3.bf16.msra.mxu1 %v11680_v28 }
 0x7f7   :  { %11693 = vmatprep.subr.bf16.mxu0 %v13817_v19  ;;  %10824 = vmatprep.mubr.msk.f32.mxu1 %vm2427_vm3, %v4641_v40  ;;  %v9153_v40 = vld [vmem:[%s14456_s13 + $0x90] sm:$0xff] }
 0x7f9   :  { %10825 = vmatmul.mubr.msk.f32.vlgmr.msra.gmra.mrb[88].mxu1 %vm2427_vm3, %v4642_v41  ;;  %v9154_v41 = vld [vmem:[%s14456_s13 + $0x98] sm:$0xff] }
 0x7fa   :  { %10827 = vmatprep.mubr.msk.f32.mxu1 %vm2427_vm3, %v4643_v42  ;;  %v11760_v42 = vpack.c.bf16 %v9154_v41, %v9153_v40  ;;  %v9186_v41 = vld [vmem:[%s14456_s13 + $0xf0] sm:$0xff] }
 0x7fd   :  { %10828 = vmatmul.mubr.msk.f32.gmra.mrb[90].mxu1 %vm2427_vm3, %v4644_v43  ;;  %v9155_v43 = vld [vmem:[%s14456_s13 + $0xa0] sm:$0xff] }
 0x7fe   :  { %10852 = vmatprep.mubr.msk.f32.mxu1 %vm2427_vm3, %v4852_v18 }
 0x8c4   :  { %v10742_v44 = vpop.f32.mrb[64].mxu0  ;;  %v10798_v61 = vpop.f32.mrb[84].mxu1 }
 0x8c5   :  { %v4100_v45 = vpop.f32.mrb[65].mxu0  ;;  %v4515_v62 = vpop.f32.mrb[85].mxu1 }
 0x8c6   :  { %10754 = vmatprep.mubr.msk.f32.mxu0 %vm2427_vm3, %v4100_v45 }
 0x8c7   :  { %10755 = vmatmul.mubr.msk.f32.vlgmr.msra.gmra.mrb[60].mxu0 %vm2427_vm3, %v10742_v44  ;;  %v9156_v44 = vld [vmem:[%s14456_s13 + $0xa8] sm:$0xff] }
 0x8c8   :  { %11695 = vmatpush3.bf16.msra.mxu0 %v13817_v19  ;;  %v10745_v48 = vpop.f32.mrb[66].mxu0  ;;  %v10801_v63 = vpop.f32.mrb[86].mxu1  ;;  %v9151_v19 = vld [vmem:[%s14456_s13 + $0x80] sm:$0xff]  ;;  %v11764_v45 = vpack.c.bf16 %v9156_v44, %v9155_v43 }
 0x8c9   :  { %11697 = vmatprep.subr.bf16.mxu0 %v11680_v28  ;;  %v4110_v49 = vpop.f32.mrb[67].mxu0  ;;  %v4525_v0 = vpop.f32.mrb[87].mxu1  ;;  %v11756_v21 = vpack.c.bf16 %v9152_v20, %v9151_v19  ;;  %v11800_v19 = vpack.c.bf16 %v9171_v16, %v9170_v15  ;;  %v9172_v20 = vld [vmem:[%s14456_s13 + $0x60] sm:$0xff]  ;;  %v5978_v15 = vld [vmem:[%s14457_s26 + $0x18] sm:$0xff] }
 0x8ca   :  { %10757 = vmatprep.mubr.msk.f32.mxu0 %vm2427_vm3, %v4110_v49  ;;  %v5120_v49 = vld [vmem:[#allocation11] sm:$0xff] }
 0x8cb   :  { %10758 = vmatmul.mubr.msk.f32.gmra.mrb[62].mxu0 %vm2427_vm3, %v10745_v48  ;;  %v11768_v48 = vpack.c.bf16 %v9158_v47, %v9157_v46  ;;  %v9192_v44 = vld [vmem:[%s14456_s13 + $0x100] sm:$0xff]  ;;  %v9194_v47 = vld [vmem:[%s14456_s13 + $0x110] sm:$0xff] }
 0x8cc   :  { %11699 = vmatpush3.bf16.msra.mxu0 %v11680_v28  ;;  %10768 = vmatprep.mubr.msk.f32.mxu0 %vm2427_vm3, %v4225_v50  ;;  %v10826_v1 = vpop.f32.mrb[88].mxu1  ;;  %v5204_v50 = vld [vmem:[%s14456_s13] sm:$0xff] }
 0x8cd   :  { %11701 = vmatprep.subr.bf16.mxu0 %v11700_v51  ;;  %v4723_v2 = vpop.f32.mrb[89].mxu1  ;;  %v5825_v16 = vld [vmem:[#allocation12] sm:$0xff] }
 0x8cf   :  { %10769 = vmatmul.mubr.msk.f32.vlgmr.msra.gmra.mrb[68].mxu0 %vm2427_vm3, %v4226_v54 }
 0x8d0   :  { %10771 = vmatprep.mubr.msk.f32.mxu0 %vm2427_vm3, %v4227_v55  ;;  %11703 = vmatpush3.bf16.msra.mxu0 %v11700_v51  ;;  %v10829_v3 = vpop.f32.mrb[90].mxu1  ;;  %v5205_v51 = vld [vmem:[%s14456_s13 + $0x8] sm:$0xff] }
 0x8d1   :  { %11705 = vmatprep.subr.bf16.mxu0 %v11704_v56  ;;  %v4733_v4 = vpop.f32.mrb[91].mxu1  ;;  %v11776_v52 = vpack.c.bf16 %v5205_v51, %v5204_v50  ;;  %v9196_v50 = vld [vmem:[%s14456_s13 + $0x120] sm:$0xff]  ;;  %v9197_v51 = vld [vmem:[%s14456_s13 + $0x128] sm:$0xff] }
 0x8d3   :  { %10772 = vmatmul.mubr.msk.f32.gmra.mrb[70].mxu0 %vm2427_vm3, %v4228_v57  ;;  %v5207_v57 = vld [vmem:[%s14456_s13 + $0x18] sm:$0xff] }
 0x8d4   :  { %11707 = vmatpush3.bf16.msra.mxu0 %v11704_v56  ;;  %v5206_v56 = vld [vmem:[%s14456_s13 + $0x10] sm:$0xff] }
 0x8d5   :  { %11717 = vmatprep.subr.bf16.mxu0 %v11716_v60 }
 0x9a2   :  { %v10770_v7 = vpop.f32.mrb[68].mxu0 }
 0x9a3   :  { %v4307_v8 = vpop.f32.mrb[69].mxu0 }
 0x9a4   :  { %10782 = vmatprep.mubr.msk.f32.mxu0 %vm2427_vm3, %v4307_v8 }
 0x9a5   :  { %10783 = vmatmul.mubr.msk.f32.vlgmr.msra.gmra.mrb[60].mxu0 %vm2427_vm3, %v10770_v7  ;;  %v5472_v7 = vld [vmem:[#allocation11 + $0x20] sm:$0xff] }
 0x9a6   :  { %v10773_v12 = vpop.f32.mrb[70].mxu0  ;;  %11719 = vmatpush3.bf16.msra.mxu0 %v11716_v60 }
 0x9a7   :  { %v4317_v13 = vpop.f32.mrb[71].mxu0  ;;  %11721 = vmatprep.subr.bf16.mxu0 %v11720_v9 }
 0x9a8   :  { %10785 = vmatprep.mubr.msk.f32.mxu0 %vm2427_vm3, %v4317_v13  ;;  %v9169_v13 = vld [vmem:[%s14456_s13 + $0x48] sm:$0xff] }
 0x9a9   :  { %10786 = vmatmul.mubr.msk.f32.gmra.mrb[62].mxu0 %vm2427_vm3, %v10773_v12  ;;  %v9168_v12 = vld [vmem:[%s14456_s13 + $0x40] sm:$0xff] }
 0x9aa   :  { %11723 = vmatpush3.bf16.msra.mxu0 %v11720_v9  ;;  %10810 = vmatprep.mubr.msk.f32.mxu0 %vm2427_vm3, %v4515_v62  ;;  %v5473_v9 = vld [vmem:[#allocation11 + $0x28] sm:$0xff] }
 0x9ab   :  { %11733 = vmatprep.subr.bf16.mxu0 %v11732_v14 }
 0x9ad   :  { %10811 = vmatmul.mubr.msk.f32.vlgmr.msra.gmra.mrb[60].mxu0 %vm2427_vm3, %v10798_v61  ;;  %v11780_v61 = vpack.c.bf16 %v5207_v57, %v5206_v56  ;;  %v13039_v56 = vmov 0.0|0.0   ;;  %v13041_v57 = vmov 0.0  }
 0x9ae   :  { %11735 = vmatpush3.bf16.msra.mxu0 %v11732_v14  ;;  %10813 = vmatprep.mubr.msk.f32.mxu0 %vm2427_vm3, %v4525_v0  ;;  %v5209_v0 = vld [vmem:[%s14456_s13 + $0x28] sm:$0xff]  ;;  %v11796_v14 = vpack.c.bf16 %v9169_v13, %v9168_v12 }
 0x9af   :  { %11737 = vmatprep.subr.bf16.mxu0 %v11736_v17 }
 0x9b1   :  { %10814 = vmatmul.mubr.msk.f32.gmra.mrb[62].mxu0 %vm2427_vm3, %v10801_v63  ;;  %v5208_v63 = vld [vmem:[%s14456_s13 + $0x20] sm:$0xff] }
 0x9b2   :  { %11739 = vmatpush3.bf16.msra.mxu0 %v11736_v17  ;;  %10838 = vmatprep.mubr.msk.f32.mxu0 %vm2427_vm3, %v4723_v2  ;;  %v5296_v2 = vld [vmem:[#allocation11 + $0x10] sm:$0xff] }
 0x9b3   :  { %11757 = vmatprep.subr.bf16.mxu0 %v11756_v21 }
 0x9b5   :  { %10839 = vmatmul.mubr.msk.f32.vlgmr.msra.gmra.mrb[60].mxu0 %vm2427_vm3, %v10826_v1  ;;  %v5121_v1 = vld [vmem:[#allocation11 + $0x8] sm:$0xff] }
 0x9b6   :  { %10841 = vmatprep.mubr.msk.f32.mxu0 %vm2427_vm3, %v4733_v4  ;;  %11759 = vmatpush3.bf16.msra.mxu0 %v11756_v21  ;;  %v5210_v4 = vld [vmem:[%s14456_s13 + $0x30] sm:$0xff]  ;;  %v9173_v21 = vld [vmem:[%s14456_s13 + $0x68] sm:$0xff] }
 0x9b7   :  { %11761 = vmatprep.subr.bf16.mxu0 %v11760_v42  ;;  %v11788_v8 = vpack.c.bf16 %v5211_v5, %v5210_v4  ;;  %v6541_v4 = vld [vmem:[#allocation24 + $0x58] sm:$0xff] }
 0x9b9   :  { %10842 = vmatmul.mubr.msk.f32.gmra.mrb[62].mxu0 %vm2427_vm3, %v10829_v3  ;;  %v11784_v3 = vpack.c.bf16 %v5209_v0, %v5208_v63  ;;  %v6538_v0 = vld [vmem:[#allocation24 + $0x40] sm:$0xff] }
 0x9ba   :  { %11763 = vmatpush3.bf16.msra.mxu0 %v11760_v42  ;;  %v9187_v42 = vld [vmem:[%s14456_s13 + $0xf8] sm:$0xff] }
 0x9bb   :  { %11765 = vmatprep.subr.bf16.mxu0 %v11764_v45  ;;  %v11828_v43 = vpack.c.bf16 %v9187_v42, %v9186_v41 }
 0x9be   :  { %11767 = vmatpush3.bf16.msra.mxu0 %v11764_v45  ;;  %v9193_v45 = vld [vmem:[%s14456_s13 + $0x108] sm:$0xff] }
 0x9bf   :  { %11769 = vmatprep.subr.bf16.mxu0 %v11768_v48  ;;  %v11836_v46 = vpack.c.bf16 %v9193_v45, %v9192_v44  ;;  %v5993_v44 = vld [vmem:[%s14457_s26 + $0x90] sm:$0xff]  ;;  %v5996_v45 = vld [vmem:[%s14457_s26 + $0xa8] sm:$0xff] }
 0x9c2   :  { %11771 = vmatpush3.bf16.msra.mxu0 %v11768_v48  ;;  %v9195_v48 = vld [vmem:[%s14456_s13 + $0x118] sm:$0xff] }
 0x9c3   :  { %11777 = vmatprep.subr.bf16.mxu0 %v11776_v52 }
 0xa88   :  { %v10840_v23 = vpop.f32.mrb[60].mxu0 }
 0xa89   :  { %v12154_v24 = vadd.f32 %v10840_v23, %v9112_v22  ;;  %v4825_v25 = vpop.f32.mrb[61].mxu0  ;;  %v11804_v23 = vpack.c.bf16 %v9173_v21, %v9172_v20  ;;  %v5980_v20 = vld [vmem:[%s14457_s26 + $0x28] sm:$0xff]  ;;  %v5982_v21 = vld [vmem:[%s14457_s26 + $0x38] sm:$0xff] }
 0xa8a   :  { %v12155_v26 = vadd.f32 %v9112_v22, %v4825_v25  ;;  %v9174_v25 = vld [vmem:[%s14456_s13 + $0x70] sm:$0xff] }
 0xa8b   :  { %v4849_v27 = vmax.f32 %v12154_v24, 0.0 }
 0xa8c   :  { %v4848_v28 = vmax.f32 %v12155_v26, 0.0  ;;  %v10843_v29 = vpop.f32.mrb[62].mxu0  ;;  %v9175_v26 = vld [vmem:[%s14456_s13 + $0x78] sm:$0xff] }
 0xa8d   :  { %v12156_v30 = vadd.f32 %v10843_v29, %v9112_v22  ;;  %v4835_v31 = vpop.f32.mrb[63].mxu0 }
 0xa8e   :  { %v11740_v32 = vpack.c.bf16 %v4849_v27, %v4848_v28  ;;  %v12157_v33 = vadd.f32 %v9112_v22, %v4835_v31  ;;  %v11808_v28 = vpack.c.bf16 %v9175_v26, %v9174_v25  ;;  %v9181_v31 = vld [vmem:[%s14456_s13 + $0xc8] sm:$0xff]  ;;  %v5979_v25 = vld [vmem:[%s14457_s26 + $0x20] sm:$0xff]  ;;  %v5981_v26 = vld [vmem:[%s14457_s26 + $0x30] sm:$0xff] }
 0xa8f   :  { %v4851_v34 = vmax.f32 %v12156_v30, 0.0  ;;  %v9180_v30 = vld [vmem:[%s14456_s13 + $0xc0] sm:$0xff] }
 0xa90   :  { %v4850_v35 = vmax.f32 %v12157_v33, 0.0  ;;  %11741 = vmatprep.subr.bf16.mxu1 %v11740_v32  ;;  %v11816_v33 = vpack.c.bf16 %v9181_v31, %v9180_v30  ;;  %v5983_v31 = vld [vmem:[%s14457_s26 + $0x40] sm:$0xff] }
 0xa91   :  { %11743 = vmatpush3.bf16.msra.mxu1 %v11740_v32 }
 0xa92   :  { %v11744_v36 = vpack.c.bf16 %v4851_v34, %v4850_v35  ;;  %v9182_v35 = vld [vmem:[%s14456_s13 + $0xd0] sm:$0xff] }
 0xa94   :  { %11745 = vmatprep.subr.bf16.mxu1 %v11744_v36 }
 0xa95   :  { %11747 = vmatpush3.bf16.msra.mxu1 %v11744_v36 }
 0xa96   :  { %11749 = vmatprep.subr.bf16.mxu1 %v11740_v32 }
 0xa98   :  { %10853 = vmatmul.mubr.msk.f32.vlgmr.msra.gmra.mrb[92].mxu1 %vm2427_vm3, %v4853_v37 }
 0xa99   :  { %11751 = vmatpush3.bf16.msra.mxu1 %v11740_v32  ;;  %10863 = vmatprep.mubr.msk.f32.mxu1 %vm2427_vm3, %v9147_v38  ;;  %v9184_v38 = vld [vmem:[%s14456_s13 + $0xe0] sm:$0xff] }
 0xa9a   :  { %11753 = vmatprep.subr.bf16.mxu1 %v11744_v36 }
 0xa9d   :  { %11755 = vmatpush3.bf16.msra.mxu1 %v11744_v36  ;;  %v9183_v36 = vld [vmem:[%s14456_s13 + $0xd8] sm:$0xff] }
 0xa9e   :  { %v11820_v37 = vpack.c.bf16 %v9183_v36, %v9182_v35 }
 0xaa0   :  { %10864 = vmatmul.mubr.msk.f32.vlgmr.msra.gmra.mrb[94].mxu1 %vm2427_vm3, %v9148_v39  ;;  %v9185_v39 = vld [vmem:[%s14456_s13 + $0xe8] sm:$0xff] }
 0xaa1   :  { %10889 = vmatprep.mubr.msk.f32.mxu1 %vm5122_vm4, %v5120_v49  ;;  %v11824_v40 = vpack.c.bf16 %v9185_v39, %v9184_v38  ;;  %v11840_v49 = vpack.c.bf16 %v9195_v48, %v9194_v47  ;;  %v5989_v38 = vld [vmem:[%s14457_s26 + $0x70] sm:$0xff]  ;;  %v5992_v39 = vld [vmem:[%s14457_s26 + $0x88] sm:$0xff] }
 0xb6b   :  { %v10854_v53 = vpop.f32.mrb[92].mxu1 }
 0xb6c   :  { %v4926_v54 = vpop.f32.mrb[93].mxu1 }
 0xb73   :  { %v10865_v55 = vpop.f32.mrb[94].mxu1 }
 0xb74   :  { %v5020_v58 = vmax.f32 %v10854_v53, %v10865_v55  ;;  %v5010_v59 = vpop.f32.mrb[95].mxu1  ;;  %v9198_v53 = vld [vmem:[%s14456_s13 + $0x130] sm:$0xff] }
 0xb75   :  { %v5019_v60 = vmax.f32 %v4926_v54, %v5010_v59  ;;  %v9199_v54 = vld [vmem:[%s14456_s13 + $0x138] sm:$0xff] }
 0xb76   :  { %v11848_v55 = vpack.c.bf16 %v9199_v54, %v9198_v53  ;;  %v6374_v59 = vld [vmem:[#allocation24 + $0x8] sm:$0xff] }
 0xb77   :  { %v11772_v62 = vpack.c.bf16 %v5020_v58, %v5019_v60  ;;  %10882 = vmatprep.mubr.msk.f32.mxu0 %vm2579_vm2, %v5019_v60  ;;  %v6375_v60 = vld [vmem:[#allocation24 + $0x10] sm:$0xff] }
 0xb78   :  { %10883 = vmatmul.mubr.msk.f32.vlgmr.msra.gmra.mrb[72].mxu0 %vm2579_vm2, %v5020_v58  ;;  %v6373_v58 = vld [vmem:[#allocation24] sm:$0xff] }
 0xb79   :  { %11773 = vmatprep.subr.bf16.mxu1 %v11772_v62  ;;  %11779 = vmatpush3.bf16.msra.mxu0 %v11776_v52  ;;  %v11844_v52 = vpack.c.bf16 %v9197_v51, %v9196_v50  ;;  %v5997_v50 = vld [vmem:[%s14457_s26 + $0xb0] sm:$0xff]  ;;  %v6000_v51 = vld [vmem:[%s14457_s26 + $0xc8] sm:$0xff] }
 0xb7a   :  { %11775 = vmatpush3.bf16.msra.mxu1 %v11772_v62  ;;  %11781 = vmatprep.subr.bf16.mxu0 %v11780_v61 }
 0xb7b   :  { %11793 = vmatprep.subr.bf16.mxu1 %v11772_v62 }
 0xb7d   :  { %10890 = vmatmul.mubr.msk.f32.vlgmr.msra.gmra.mrb[96].mxu1 %vm5122_vm4, %v5121_v1  ;;  %11783 = vmatpush3.bf16.msra.mxu0 %v11780_v61  ;;  %v13934_v61 = vpack.c.bf16 %v6374_v59, %v6373_v58  ;;  %v6539_v1 = vld [vmem:[#allocation24 + $0x48] sm:$0xff] }
 0xb7e   :  { %11795 = vmatpush3.bf16.msra.mxu1 %v11772_v62  ;;  %10915 = vmatprep.mubr.msk.f32.mxu1 %vm5122_vm4, %v5296_v2  ;;  %v13941_v2 = vpack.c.bf16 %v6539_v1, %v6538_v0  ;;  %v6001_v58 = vld [vmem:[%s14457_s26 + $0xd0] sm:$0xff]  ;;  %v6003_v1 = vld [vmem:[%s14457_s26 + $0xe0] sm:$0xff] }
 0xb7f   :  { %11813 = vmatprep.subr.bf16.mxu1 %v11772_v62  ;;  %11785 = vmatprep.subr.bf16.mxu0 %v11784_v3 }
 0xb81   :  { %10916 = vmatmul.mubr.msk.f32.vlgmr.msra.gmra.mrb[98].mxu1 %vm5122_vm4, %v5297_v6  ;;  %11787 = vmatpush3.bf16.msra.mxu0 %v11784_v3  ;;  %v6540_v3 = vld [vmem:[#allocation24 + $0x50] sm:$0xff]  ;;  %v9161_v6 = vld [vmem:[#allocation23] ss:$0 sm:$0xff] }
 0xb82   :  { %11815 = vmatpush3.bf16.msra.mxu1 %v11772_v62  ;;  %10941 = vmatprep.mubr.msk.f32.mxu1 %vm5122_vm4, %v5472_v7  ;;  %v13946_v5 = vpack.c.bf16 %v6541_v4, %v6540_v3  ;;  %v6005_v3 = vld [vmem:[%s14457_s26 + $0xf0] sm:$0xff] }
 0xb83   :  { %11833 = vmatprep.subr.bf16.mxu1 %v11772_v62  ;;  %11789 = vmatprep.subr.bf16.mxu0 %v11788_v8  ;;  %v11888_v4 = vpack.c.bf16 %v6005_v3, %v6003_v1  ;;  %v14086_v3 = vld [vmem:[%s14461_s9 + $0x1] ss:$0 sm:$0xff] }
 0xb85   :  { %10942 = vmatmul.mubr.msk.f32.vlgmr.msra.gmra.mrb[100].mxu1 %vm5122_vm4, %v5473_v9  ;;  %11791 = vmatpush3.bf16.msra.mxu0 %v11788_v8 }
 0xb86   :  { %11835 = vmatpush3.bf16.msra.mxu1 %v11772_v62  ;;  %10967 = vmatprep.mubr.msk.f32.mxu1 %vm5122_vm4, %v5648_v10  ;;  %v6376_v62 = vld [vmem:[#allocation24 + $0x18] sm:$0xff] }
 0xb87   :  { %11797 = vmatprep.subr.bf16.mxu0 %v11796_v14  ;;  %11852 = vmatprep.subr.bf16.mxu1 %v13039_v56  ;;  %v13937_v63 = vpack.c.bf16 %v6376_v62, %v6375_v60  ;;  %v6004_v60 = vld [vmem:[%s14457_s26 + $0xe8] sm:$0xff]  ;;  %v6006_v62 = vld [vmem:[%s14457_s26 + $0xf8] sm:$0xff] }
 0xb88   :  { %v11886_v0 = vpack.c.bf16 %v6006_v62, %v6004_v60 }
 0xb89   :  { %10968 = vmatmul.mubr.msk.f32.vlgmr.msra.gmra.mrb[102].mxu1 %vm5122_vm4, %v5649_v11 }
 0xb8a   :  { %10993 = vmatprep.mubr.msk.f32.mxu1 %vm13040_vm5, %v13041_v57 }
 0xc50   :  { %v10891_v17 = vpop.f32.mrb[96].mxu1 }
 0xc51   :  { %v5195_v18 = vpop.f32.mrb[97].mxu1 }
 0xc52   :  { %10908 = vmatprep.mubr.msk.f32.mxu0 %vm2579_vm2, %v5195_v18  ;;  %v5975_v18 = vld [vmem:[%s14457_s26] sm:$0xff] }
 0xc53   :  { %10909 = vmatmul.mubr.msk.f32.vlgmr.msra.gmra.mrb[72].mxu0 %vm2579_vm2, %v10891_v17 }
 0xc54   :  { %11799 = vmatpush3.bf16.msra.mxu0 %v11796_v14  ;;  %v10917_v22 = vpop.f32.mrb[98].mxu1  ;;  %v5976_v14 = vld [vmem:[%s14457_s26 + $0x8] sm:$0xff] }
 0xc55   :  { %11801 = vmatprep.subr.bf16.mxu0 %v11800_v19  ;;  %v5370_v24 = vpop.f32.mrb[99].mxu1  ;;  %v11858_v17 = vpack.c.bf16 %v5978_v15, %v5976_v14  ;;  %v14011_v14 = vld [vmem:[%s14459_s4 + $0x2] ss:$0 sm:$0xff] }
 0xc56   :  { %10934 = vmatprep.mubr.msk.f32.mxu0 %vm2579_vm2, %v5370_v24  ;;  %v11862_v24 = vpack.c.bf16 %v5982_v21, %v5980_v20 }
 0xc58   :  { %11803 = vmatpush3.bf16.msra.mxu0 %v11800_v19  ;;  %v10943_v27 = vpop.f32.mrb[100].mxu1  ;;  %v5977_v19 = vld [vmem:[%s14457_s26 + $0x10] sm:$0xff] }
 0xc59   :  { %11805 = vmatprep.subr.bf16.mxu0 %v11804_v23  ;;  %v5546_v29 = vpop.f32.mrb[101].mxu1 }
 0xc5c   :  { %11807 = vmatpush3.bf16.msra.mxu0 %v11804_v23  ;;  %v10969_v32 = vpop.f32.mrb[102].mxu1  ;;  %v11860_v23 = vpack.c.bf16 %v5977_v19, %v5975_v18 }
 0xc5d   :  { %11809 = vmatprep.subr.bf16.mxu0 %v11808_v28  ;;  %v5722_v34 = vpop.f32.mrb[103].mxu1 }
 0xc60   :  { %11811 = vmatpush3.bf16.msra.mxu0 %v11808_v28  ;;  %v5986_v28 = vld [vmem:[%s14457_s26 + $0x58] sm:$0xff] }
 0xc61   :  { %11817 = vmatprep.subr.bf16.mxu0 %v11816_v33 }
 0xc63   :  { %10935 = vmatmul.mubr.msk.f32.vlgmr.msra.gmra.mrb[72].mxu0 %vm2579_vm2, %v10917_v22  ;;  %v5900_v22 = vld [vmem:[#allocation12 + $0x8] sm:$0xff] }
 0xc64   :  { %11819 = vmatpush3.bf16.msra.mxu0 %v11816_v33  ;;  %10960 = vmatprep.mubr.msk.f32.mxu0 %vm2579_vm2, %v5546_v29  ;;  %v11864_v29 = vpack.c.bf16 %v5981_v26, %v5979_v25  ;;  %v5988_v33 = vld [vmem:[%s14457_s26 + $0x68] sm:$0xff] }
 0xc65   :  { %11821 = vmatprep.subr.bf16.mxu0 %v11820_v37  ;;  %v6091_v25 = vld [vmem:[%s14458_s21 + $0x8] sm:$0xff] }
 0xc68   :  { %11823 = vmatpush3.bf16.msra.mxu0 %v11820_v37  ;;  %v5987_v37 = vld [vmem:[%s14457_s26 + $0x60] sm:$0xff] }
 0xc69   :  { %11825 = vmatprep.subr.bf16.mxu0 %v11824_v40  ;;  %v11872_v41 = vpack.c.bf16 %v5989_v38, %v5987_v37  ;;  %v9214_v37 = vld [vmem:[%s14458_s21 + $0x58] sm:$0xff] }
 0xc6c   :  { %11827 = vmatpush3.bf16.msra.mxu0 %v11824_v40  ;;  %v5994_v40 = vld [vmem:[%s14457_s26 + $0x98] sm:$0xff] }
 0xc6d   :  { %11829 = vmatprep.subr.bf16.mxu0 %v11828_v43  ;;  %v11874_v42 = vpack.c.bf16 %v5994_v40, %v5992_v39  ;;  %v6455_v39 = vld [vmem:[#allocation24 + $0x20] sm:$0xff]  ;;  %v6456_v40 = vld [vmem:[#allocation24 + $0x28] sm:$0xff] }
 0xc70   :  { %11831 = vmatpush3.bf16.msra.mxu0 %v11828_v43  ;;  %v5991_v43 = vld [vmem:[%s14457_s26 + $0x80] sm:$0xff] }
 0xc71   :  { %11837 = vmatprep.subr.bf16.mxu0 %v11836_v46  ;;  %v11876_v47 = vpack.c.bf16 %v5993_v44, %v5991_v43  ;;  %v6458_v43 = vld [vmem:[#allocation24 + $0x38] sm:$0xff] }
 0xc73   :  { %10961 = vmatmul.mubr.msk.f32.vlgmr.msra.gmra.mrb[72].mxu0 %vm2579_vm2, %v10943_v27  ;;  %v5984_v27 = vld [vmem:[%s14457_s26 + $0x48] sm:$0xff] }
 0xc74   :  { %11839 = vmatpush3.bf16.msra.mxu0 %v11836_v46  ;;  %10986 = vmatprep.mubr.msk.f32.mxu0 %vm2579_vm2, %v5722_v34  ;;  %v11866_v30 = vpack.c.bf16 %v5986_v28, %v5984_v27  ;;  %v5990_v34 = vld [vmem:[%s14457_s26 + $0x78] sm:$0xff] }
 0xc75   :  { %11841 = vmatprep.subr.bf16.mxu0 %v11840_v49  ;;  %v11870_v36 = vpack.c.bf16 %v5990_v34, %v5988_v33  ;;  %v5998_v46 = vld [vmem:[%s14457_s26 + $0xb8] sm:$0xff]  ;;  %v9211_v33 = vld [vmem:[%s14458_s21 + $0x40] sm:$0xff]  ;;  %v9212_v34 = vld [vmem:[%s14458_s21 + $0x48] sm:$0xff] }
 0xc76   :  { %v11878_v48 = vpack.c.bf16 %v5998_v46, %v5996_v45  ;;  %v6009_v45 = vlaneseq }
 0xc78   :  { %11843 = vmatpush3.bf16.msra.mxu0 %v11840_v49  ;;  %v5995_v49 = vld [vmem:[%s14457_s26 + $0xa0] sm:$0xff]  ;;  %v14071_v46 = vshrl.u32 %v6009_v45, 7 }
 0xc79   :  { %11845 = vmatprep.subr.bf16.mxu0 %v11844_v52  ;;  %v11880_v53 = vpack.c.bf16 %v5997_v50, %v5995_v49 }
 0xc7c   :  { %11847 = vmatpush3.bf16.msra.mxu0 %v11844_v52  ;;  %v6002_v52 = vld [vmem:[%s14457_s26 + $0xd8] sm:$0xff] }
 0xc7d   :  { %11849 = vmatprep.subr.bf16.mxu0 %v11848_v55  ;;  %v11882_v54 = vpack.c.bf16 %v6002_v52, %v6000_v51 }
 0xc80   :  { %11851 = vmatpush3.bf16.msra.mxu0 %v11848_v55  ;;  %v5999_v55 = vld [vmem:[%s14457_s26 + $0xc0] sm:$0xff] }
 0xc81   :  { %11908 = vmatprep.subr.bf16.mxu0 %v13039_v56  ;;  %v11884_v59 = vpack.c.bf16 %v6001_v58, %v5999_v55  ;;  %v14081_v55 = vld [vmem:[%s14461_s9] ss:$0 sm:$0xff] }
 0xc83   :  { %10987 = vmatmul.mubr.msk.f32.vlgmr.msra.gmra.mrb[72].mxu0 %vm2579_vm2, %v10969_v32  ;;  %v5985_v32 = vld [vmem:[%s14457_s26 + $0x50] sm:$0xff] }
 0xc84   :  { %11044 = vmatprep.mubr.msk.f32.mxu0 %vm13040_vm5, %v13041_v57  ;;  %11910 = vmatpush3.bf16.msra.mxu0 %v13934_v61  ;;  %v11868_v35 = vpack.c.bf16 %v5985_v32, %v5983_v31  ;;  %v6093_v31 = vld [vmem:[%s14458_s21 + $0x18] sm:$0xff] }
 0xc85   :  { %11911 = vmatprep.subr.bf16.mxu0 %v13039_v56 }
 0xc88   :  { %11913 = vmatpush3.bf16.msra.mxu0 %v13937_v63 }
 0xc89   :  { %11920 = vmatprep.subr.bf16.mxu0 %v13039_v56 }
 0xc8b   :  { %11045 = vmatmul.mubr.f32.vlgmr.msra.gmra.mrb[74].mxu0 %v13041_v57 }
 0xc8c   :  { %11922 = vmatpush3.bf16.msra.mxu0 %v13941_v2  ;;  %11066 = vmatprep.mubr.msk.f32.mxu0 %vm13040_vm5, %v13041_v57 }
 0xc8d   :  { %11923 = vmatprep.subr.bf16.mxu0 %v13039_v56 }
 0xc90   :  { %11925 = vmatpush3.bf16.msra.mxu0 %v13946_v5 }
 0xc91   :  { %11932 = vmatprep.subr.bf16.mxu0 %v13039_v56 }
 0xc93   :  { %11067 = vmatmul.mubr.f32.vlgmr.msra.gmra.mrb[76].mxu0 %v13041_v57 }
 0xc94   :  { %11088 = vmatprep.mubr.msk.f32.mxu0 %vm13040_vm5, %v13041_v57 }
 0xd56   :  { %v10988_v7 = vpop.f32.mrb[72].mxu0 }
 0xd57   :  { %v12158_v8 = vadd.f32 %v10988_v7, %v9161_v6  ;;  %v5812_v9 = vpop.f32.mrb[73].mxu0  ;;  %v9206_v7 = vld [vmem:[%s14458_s21 + $0x28] sm:$0xff] }
 0xd58   :  { %v12159_v10 = vadd.f32 %v9161_v6, %v5812_v9  ;;  %v9205_v6 = vld [vmem:[%s14458_s21 + $0x20] sm:$0xff]  ;;  %v9207_v9 = vld [vmem:[%s14458_s21 + $0x30] sm:$0xff] }
 0xd59   :  { %v5824_v11 = vmax.f32 %v12158_v8, 0.0  ;;  %v13997_v8 = vpack.c.bf16 %v9206_v7, %v9205_v6 }
 0xd5a   :  { %v5823_v12 = vmax.f32 %v12159_v10, 0.0  ;;  %v9208_v10 = vld [vmem:[%s14458_s21 + $0x38] sm:$0xff] }
 0xd5b   :  { %11934 = vmatpush3.bf16.msra.mxu0 %v13997_v8 }
 0xd5c   :  { %v11853_v13 = vpack.c.bf16 %v5824_v11, %v5823_v12  ;;  %11935 = vmatprep.subr.bf16.mxu0 %v13039_v56  ;;  %v14003_v11 = vpack.c.bf16 %v9208_v10, %v9207_v9  ;;  %v14008_v12 = vld [vmem:[%s14459_s4] ss:$0 sm:$0xff] }
 0xd5e   :  { %11854 = vmatpush3.bf16.msra.mxu1 %v11853_v13 }
 0xd5f   :  { %11855 = vmatprep.subr.bf16.mxu1 %v13039_v56  ;;  %11937 = vmatpush3.bf16.msra.mxu0 %v14003_v11 }
 0xd60   :  { %11944 = vmatprep.subr.bf16.mxu0 %v13039_v56 }
 0xd61   :  { %10994 = vmatmul.mubr.msk.f32.vlgmr.msra.gmra.mrb[104].mxu1 %vm5122_vm4, %v5825_v16 }
 0xd62   :  { %11857 = vmatpush3.bf16.msra.mxu1 %v11853_v13  ;;  %11000 = vmatprep.mubr.msk.f32.mxu1 %vm13040_vm5, %v13041_v57  ;;  %v6450_v13 = vpop.f32.mrb[74].mxu0 }
 0xd63   :  { %11859 = vmatprep.subr.bf16.mxu1 %v11858_v17  ;;  %v6451_v15 = vadd.f32 %v14008_v12, %v6450_v13  ;;  %v11046_v16 = vpop.f32.mrb[75].mxu0 }
 0xd65   :  { %11001 = vmatmul.mubr.msk.f32.vlgmr.msra.gmra.mrb[106].mxu1 %vm5122_vm4, %v5900_v22  ;;  %v6621_v18 = vrot.slane %v6451_v15, 2 }
 0xd66   :  { %11861 = vmatpush1.bf16.msra.mxu1 %v11860_v23  ;;  %6083 = vmatprep.mubr.f32.mxu1 %v13041_v57  ;;  %v6616_v17 = vpop.f32.mrb[76].mxu0 }
 0xd67   :  { %11863 = vmatprep.subr.bf16.mxu1 %v11862_v24  ;;  %v6617_v19 = vadd.f32 %v14011_v14, %v6616_v17  ;;  %v11068_v20 = vpop.f32.mrb[77].mxu0  ;;  %6622 = vrot.lane.b32.xlu0 %v6621_v18, %s13042_s2  ;;  %v6090_v24 = vld [vmem:[%s14458_s21] sm:$0xff] }
 0xd68   :  { %v14019_v27 = vpack.c.bf16 %v6091_v25, %v6090_v24  ;;  %v14091_v18 = vld [vmem:[%s14461_s9 + $0x2] ss:$0 sm:$0xff] }
 0xd69   :  { %v6643_v21 = vrot.slane %v6617_v19, 2 }
 0xd6a   :  { %11865 = vmatpush1.bf16.msra.mxu1 %v11864_v29 }
 0xd6b   :  { %11867 = vmatprep.subr.bf16.mxu1 %v11866_v30  ;;  %6644 = vrot.lane.b32.xlu1 %v6643_v21, %s13042_s2  ;;  %v6092_v30 = vld [vmem:[%s14458_s21 + $0x10] sm:$0xff] }
 0xd6c   :  { %v14024_v32 = vpack.c.bf16 %v6093_v31, %v6092_v30 }
 0xd6e   :  { %11869 = vmatpush1.bf16.msra.mxu1 %v11868_v35  ;;  %v14039_v35 = vpack.c.bf16 %v9212_v34, %v9211_v33 }
 0xd6f   :  { %11871 = vmatprep.subr.bf16.mxu1 %v11870_v36  ;;  %v9213_v36 = vld [vmem:[%s14458_s21 + $0x50] sm:$0xff] }
 0xd70   :  { %v14046_v38 = vpack.c.bf16 %v9214_v37, %v9213_v36 }
 0xd72   :  { %11873 = vmatpush1.bf16.msra.mxu1 %v11872_v41  ;;  %v14052_v41 = vpack.c.bf16 %v6456_v40, %v6455_v39 }
 0xd73   :  { %11875 = vmatprep.subr.bf16.mxu1 %v11874_v42  ;;  %v6457_v42 = vld [vmem:[#allocation24 + $0x30] sm:$0xff] }
 0xd74   :  { %v14057_v44 = vpack.c.bf16 %v6458_v43, %v6457_v42 }
 0xd76   :  { %11877 = vmatpush1.bf16.msra.mxu1 %v11876_v47  ;;  %v6011_v47 = vsub.s32 0, %v14071_v46 }
 0xd77   :  { %11879 = vmatprep.subr.bf16.mxu1 %v11878_v48  ;;  %v6007_v48 = vld [vmem:[%s14460_s10] sm:$0x3] }
 0xd78   :  { %v6012_v49 = vrot.slane %v6007_v48, %v6011_v47 }
 0xd7a   :  { %11881 = vmatpush1.bf16.msra.mxu1 %v11880_v53 }
 0xd7b   :  { %11883 = vmatprep.subr.bf16.mxu1 %v11882_v54 }
 0xd7e   :  { %11885 = vmatpush1.bf16.msra.mxu1 %v11884_v59 }
 0xd7f   :  { %11887 = vmatprep.subr.bf16.mxu1 %v11886_v0 }
 0xd82   :  { %11889 = vmatpush1.bf16.msra.mxu1 %v11888_v4 }
 0xd83   :  { %11890 = vmatprep.subr.bf16.mxu1 %v13039_v56 }
 0xdd9   :  { %v6623_v53 = vpop.permute.xlu0 %6622 }
 0xddd   :  { %v6645_v25 = vpop.permute.xlu1 %6644 }
 0xe34   :  { %v5895_v22 = vpop.f32.mrb[104].mxu1 }
 0xe35   :  { %v10995_v23 = vpop.f32.mrb[105].mxu1 }
 0xe38   :  { %v5970_v26 = vpop.f32.mrb[106].mxu1 }
 0xe39   :  { %v5974_v28 = vmax.f32 %v5895_v22, %v5970_v26  ;;  %v11002_v29 = vpop.f32.mrb[107].mxu1 }
 0xe3b   :  { %6084 = vmatmul.mubr.f32.vlgmr.msra.gmra.mrb[108].mxu1 %v5974_v28  ;;  %v6015_v28 = vsub.s32 1, %v14071_v46 }
 0xe3c   :  { %11892 = vmatpush3.bf16.msra.mxu1 %v14019_v27  ;;  %11011 = vmatprep.mubr.msk.f32.mxu1 %vm13040_vm5, %v13041_v57 }
 0xe3d   :  { %11893 = vmatprep.subr.bf16.mxu1 %v13039_v56  ;;  %v6016_v29 = vrot.slane %v6007_v48, %v6015_v28 }
 0xe40   :  { %11895 = vmatpush3.bf16.msra.mxu1 %v14024_v32 }
 0xe41   :  { %11896 = vmatprep.subr.bf16.mxu1 %v13039_v56 }
 0xe43   :  { %11012 = vmatmul.mubr.f32.vlgmr.msra.gmra.mrb[110].mxu1 %v13041_v57 }
 0xe44   :  { %11898 = vmatpush3.bf16.msra.mxu1 %v13997_v8  ;;  %11022 = vmatprep.mubr.msk.f32.mxu1 %vm13040_vm5, %v13041_v57 }
 0xe45   :  { %11899 = vmatprep.subr.bf16.mxu1 %v13039_v56 }
 0xe48   :  { %11901 = vmatpush3.bf16.msra.mxu1 %v14003_v11 }
 0xe49   :  { %11902 = vmatprep.subr.bf16.mxu1 %v13039_v56 }
 0xe4b   :  { %11023 = vmatmul.mubr.f32.vlgmr.msra.gmra.mrb[112].mxu1 %v13041_v57 }
 0xe4c   :  { %11904 = vmatpush3.bf16.msra.mxu1 %v14039_v35  ;;  %11033 = vmatprep.mubr.msk.f32.mxu1 %vm13040_vm5, %v13041_v57 }
 0xe4d   :  { %11905 = vmatprep.subr.bf16.mxu1 %v13039_v56 }
 0xe50   :  { %11907 = vmatpush3.bf16.msra.mxu1 %v14046_v38 }
 0xe51   :  { %11914 = vmatprep.subr.bf16.mxu1 %v13039_v56 }
 0xe53   :  { %11034 = vmatmul.mubr.f32.vlgmr.msra.gmra.mrb[114].mxu1 %v13041_v57 }
 0xe54   :  { %11916 = vmatpush3.bf16.msra.mxu1 %v14052_v41  ;;  %11055 = vmatprep.mubr.msk.f32.mxu1 %vm13040_vm5, %v13041_v57 }
 0xe55   :  { %11917 = vmatprep.subr.bf16.mxu1 %v13039_v56 }
 0xe58   :  { %11919 = vmatpush3.bf16.msra.mxu1 %v14057_v44 }
 0xe59   :  { %11926 = vmatprep.subr.bf16.mxu1 %v13039_v56 }
 0xe5b   :  { %11056 = vmatmul.mubr.f32.vlgmr.msra.gmra.mrb[116].mxu1 %v13041_v57 }
 0xe5c   :  { %11928 = vmatpush3.bf16.msra.mxu1 %v14019_v27  ;;  %11077 = vmatprep.mubr.msk.f32.mxu1 %vm13040_vm5, %v13041_v57 }
 0xe5d   :  { %11929 = vmatprep.subr.bf16.mxu1 %v13039_v56 }
 0xe60   :  { %11931 = vmatpush3.bf16.msra.mxu1 %v14024_v32 }
 0xe61   :  { %11938 = vmatprep.subr.bf16.mxu1 %v13039_v56 }
 0xf0e   :  { %v6085_v50 = vpop.f32.mrb[108].mxu1 }
 0xf0f   :  { %v14077_v51 = vadd.f32 %v6085_v50, %v6012_v49  ;;  %v6087_v52 = vpop.f32.mrb[109].mxu1 }
 0xf10   :  { %v14100_v33 = vadd.f32 %v6087_v52, %v6016_v29 }
 0xf11   :  { %v6625_v54 = vadd.f32 %v6623_v53, %v14077_v51 }
 0xf13   :  { %v9224_v59 = vmul.f32 -1.442695, %v6625_v54 }
 0xf15   :  { %12352 = vpow2.f32 %v9224_v59  ;;  %v14111_v59 = vld [vmem:[%s14459_s4 + $0x1] ss:$0 sm:$0xff] }
 0xf16   :  { %v6170_v58 = vpop.f32.mrb[110].mxu1 }
 0xf17   :  { %v6171_v60 = vadd.f32 %v14081_v55, %v6170_v58  ;;  %v11013_v62 = vpop.f32.mrb[111].mxu1 }
 0xf19   :  { %v6340_v0 = vadd.f32 %v6171_v60, %v14077_v51 }
 0xf1b   :  { %v9217_v1 = vmul.f32 -1.442695, %v6340_v0 }
 0xf1d   :  { %12354 = vpow2.f32 %v9217_v1 }
 0xf1e   :  { %v6253_v4 = vpop.f32.mrb[112].mxu1 }
 0xf1f   :  { %v6254_v6 = vadd.f32 %v14086_v3, %v6253_v4  ;;  %v11024_v7 = vpop.f32.mrb[113].mxu1  ;;  %v12353_v9 = vpop.eup %12352 }
 0xf20   :  { %v6629_v16 = vadd.f32 1.0, %v12353_v9 }
 0xf21   :  { %6348 = vrot.lane.b32.xlu1 %v6254_v6, %s13043_s3 }
 0xf26   :  { %v6336_v10 = vpop.f32.mrb[114].mxu1 }
 0xf27   :  { %v12355_v13 = vpop.eup %12354  ;;  %v11035_v15 = vpop.f32.mrb[115].mxu1  ;;  %v6337_v21 = vadd.f32 %v14091_v18, %v6336_v10 }
 0xf28   :  { %v6344_v17 = vadd.f32 1.0, %v12355_v13 }
 0xf2a   :  { %12356 = vrcp.f32 %v6344_v17 }
 0xf2b   :  { %12358 = vrcp.f32 %v6629_v16 }
 0xf2e   :  { %v6533_v19 = vpop.f32.mrb[116].mxu1 }
 0xf2f   :  { %v11057_v20 = vpop.f32.mrb[117].mxu1  ;;  %v6534_v60 = vadd.f32 %v14111_v59, %v6533_v19 }
 0xf31   :  { %v6633_v62 = vrot.slane %v6534_v60, 2 }
 0xf33   :  { %v6635_v0 = vadd.f32 %v6633_v62, %v14100_v33 }
 0xf34   :  { %v12357_v22 = vpop.eup %12356 }
 0xf35   :  { %v6358_v23 = vmul.f32 %v12357_v22, %v6337_v21  ;;  %v12359_v24 = vpop.eup %12358  ;;  %v9225_v1 = vmul.f32 -1.442695, %v6635_v0 }
 0xf36   :  { %v6647_v26 = vmul.f32 %v12359_v24, %v6645_v25 }
 0xf37   :  { %6360 = vrot.lane.b32.xlu0 %v6358_v23, %s13029_s17 }
 0xf3b   :  { %6649 = vrot.lane.b32.xlu0 %v6647_v26, %s13029_s17 }
 0xf93   :  { %v6349_v40 = vpop.permute.xlu1 %6348 }
 0xf94   :  { %v6351_v42 = vadd.f32 %v6349_v40, %v14077_v51 }
 0xf96   :  { %v9218_v43 = vmul.f32 -1.442695, %v6351_v42 }
 0xfa9   :  { %v6361_v30 = vpop.permute.xlu0 %6360 }
 0xfaa   :  { %v6363_v31 = vadd.f32 %v6361_v30, %v14077_v51 }
 0xfac   :  { %12360 = vtanh.f32 %v6363_v31 }
 0xfad   :  { %v6650_v34 = vpop.permute.xlu0 %6649 }
 0xfae   :  { %v6652_v36 = vadd.f32 %v6650_v34, %v14100_v33 }
 0xfb0   :  { %12362 = vtanh.f32 %v6652_v36 }
 0xfb1   :  { %12364 = vpow2.f32 %v9218_v43 }
 0xfb6   :  { %v12361_v37 = vpop.eup %12360 }
 0xfb7   :  { %6367 = vrot.lane.b32.xlu1 %v12361_v37, %s13042_s2 }
 0xfba   :  { %v12363_v39 = vpop.eup %12362 }
 0xfbb   :  { %6656 = vrot.lane.b32.xlu1 %v12363_v39, %s13042_s2  ;;  %v12365_v45 = vpop.eup %12364 }
 0xfbc   :  { %v6355_v48 = vadd.f32 1.0, %v12365_v45 }
 0xfbe   :  { %12366 = vrcp.f32 %v6355_v48 }
 0xfbf   :  { %12368 = vpow2.f32 %v9225_v1 }
 0xfc8   :  { %v12367_v49 = vpop.eup %12366 }
 0xfc9   :  { %v6365_v50 = vsub.f32 1.0, %v12367_v49  ;;  %v6371_v53 = vmul.f32 0.0, %v12367_v49  ;;  %v12369_v4 = vpop.eup %12368 }
 0xfca   :  { %v6639_v6 = vadd.f32 1.0, %v12369_v4 }
 0xfcc   :  { %12370 = vrcp.f32 %v6639_v6 }
 0xfd6   :  { %v12371_v7 = vpop.eup %12370 }
 0xfd7   :  { %v6654_v10 = vsub.f32 1.0, %v12371_v7  ;;  %v6660_v16 = vmul.f32 0.0, %v12371_v7 }
0x1029   :  { %v6368_v52 = vpop.permute.xlu1 %6367 }
0x102a   :  { %v6370_v54 = vmul.f32 %v6368_v52, %v6365_v50 }
0x102c   :  { %v14106_v58 = vadd.f32 %v6371_v53, %v6370_v54 }
0x102d   :  { %v6657_v9 = vpop.permute.xlu1 %6656 }
0x102e   :  { %6663 = vrot.lane.b32.xlu0 %v14106_v58, %s13042_s2  ;;  %v6659_v13 = vmul.f32 %v6657_v9, %v6654_v10 }
0x1030   :  { %v14123_v17 = vadd.f32 %v6660_v16, %v6659_v13 }
0x1032   :  { %v6920_v19 = vrot.slane %v14123_v17, 6 }
0x10a0   :  { %v14115_v15 = vpop.permute.xlu0 %6663 }
0x10a1   :  { %11078 = vmatmul.mubr.msk.f32.vlgmr.msra.gmra.mrb[118].mxu1 %vm2427_vm3, %v14115_v15  ;;  %11089 = vmatmul.mubr.msk.f32.vlgmr.msra.gmra.mrb[78].mxu0 %vm2427_vm3, %v14115_v15 }
0x10a2   :  { %11940 = vmatpush3.bf16.msra.mxu1 %v14039_v35  ;;  %11946 = vmatpush3.bf16.msra.mxu0 %v13934_v61 }
0x10a3   :  { %11941 = vmatprep.subr.bf16.mxu1 %v13039_v56  ;;  %11947 = vmatprep.subr.bf16.mxu0 %v13039_v56 }
0x10a4   :  { %11099 = vmatprep.mubr.msk.f32.mxu1 %vm13040_vm5, %v13041_v57  ;;  %11110 = vmatprep.mubr.msk.f32.mxu0 %vm13040_vm5, %v13041_v57 }
0x10a6   :  { %11943 = vmatpush3.bf16.msra.mxu1 %v14046_v38  ;;  %11949 = vmatpush3.bf16.msra.mxu0 %v13937_v63 }
0x10a7   :  { %11950 = vmatprep.subr.bf16.mxu1 %v13039_v56  ;;  %11956 = vmatprep.subr.bf16.mxu0 %v13039_v56 }
0x10a9   :  { %11100 = vmatmul.mubr.msk.f32.vlgmr.msra.gmra.mrb[120].mxu1 %vm2427_vm3, %v14115_v15  ;;  %11111 = vmatmul.mubr.msk.f32.vlgmr.msra.gmra.mrb[80].mxu0 %vm2427_vm3, %v6920_v19 }
0x10aa   :  { %11952 = vmatpush3.bf16.msra.mxu1 %v14052_v41  ;;  %11958 = vmatpush3.bf16.msra.mxu0 %v13941_v2 }
0x10ab   :  { %11953 = vmatprep.subr.bf16.mxu1 %v13039_v56  ;;  %11959 = vmatprep.subr.bf16.mxu0 %v13039_v56 }
0x10ac   :  { %11121 = vmatprep.mubr.msk.f32.mxu1 %vm13040_vm5, %v13041_v57  ;;  %11132 = vmatprep.mubr.msk.f32.mxu0 %vm13040_vm5, %v13041_v57 }
0x10ae   :  { %11955 = vmatpush3.bf16.msra.mxu1 %v14057_v44  ;;  %11961 = vmatpush3.bf16.msra.mxu0 %v13946_v5 }
0x10af   :  { %11962 = vmatprep.subr.bf16.mxu1 %v13039_v56  ;;  %11968 = vmatprep.subr.bf16.mxu0 %v13039_v56 }
0x10b1   :  { %11122 = vmatmul.mubr.msk.f32.vlgmr.msra.gmra.mrb[122].mxu1 %vm2427_vm3, %v6920_v19  ;;  %11133 = vmatmul.mubr.msk.f32.vlgmr.msra.gmra.mrb[82].mxu0 %vm2427_vm3, %v6920_v19 }
0x10b2   :  { %11964 = vmatpush3.bf16.msra.mxu1 %v14019_v27  ;;  %11970 = vmatpush3.bf16.msra.mxu0 %v13997_v8 }
0x10b3   :  { %11965 = vmatprep.subr.bf16.mxu1 %v13039_v56  ;;  %11971 = vmatprep.subr.bf16.mxu0 %v13039_v56 }
0x10b4   :  { %11143 = vmatprep.mubr.msk.f32.mxu1 %vm13040_vm5, %v13041_v57  ;;  %11154 = vmatprep.mubr.msk.f32.mxu0 %vm13040_vm5, %v13041_v57 }
0x10b6   :  { %11967 = vmatpush3.bf16.msra.mxu1 %v14024_v32  ;;  %11973 = vmatpush3.bf16.msra.mxu0 %v14003_v11 }
0x10b7   :  { %11974 = vmatprep.subr.bf16.mxu1 %v13039_v56  ;;  %11980 = vmatprep.subr.bf16.mxu0 %v13039_v56 }
0x1174   :  { %v6733_v20 = vpop.f32.mrb[118].mxu1  ;;  %v6803_v21 = vpop.f32.mrb[78].mxu0 }
0x1175   :  { %v6734_v22 = vadd.f32 %v14081_v55, %v6733_v20  ;;  %v11079_v23 = vpop.f32.mrb[119].mxu1  ;;  %v11090_v24 = vpop.f32.mrb[79].mxu0  ;;  %v6804_v62 = vadd.f32 %v14086_v3, %v6803_v21 }
0x1177   :  { %v6878_v25 = vrot.slane %v6734_v22, 6  ;;  %v6888_v1 = vrot.slane %v6804_v62, 6 }
0x1179   :  { %v6880_v26 = vadd.f32 %v6878_v25, %v14077_v51 }
0x117b   :  { %v9229_v29 = vmul.f32 -1.442695, %v6880_v26 }
0x117c   :  { %v6873_v30 = vpop.f32.mrb[120].mxu1  ;;  %v6989_v31 = vpop.f32.mrb[80].mxu0 }
0x117d   :  { %12372 = vpow2.f32 %v9229_v29  ;;  %v6990_v34 = vadd.f32 %v14008_v12, %v6989_v31  ;;  %v11101_v36 = vpop.f32.mrb[121].mxu1  ;;  %v11112_v37 = vpop.f32.mrb[81].mxu0  ;;  %v6874_v53 = vadd.f32 %v14091_v18, %v6873_v30 }
0x117e   :  { %v6915_v36 = vrot.slane %v14106_v58, 6 }
0x117f   :  { %v7134_v39 = vrot.slane %v6990_v34, 4  ;;  %v6900_v54 = vrot.slane %v6874_v53, 6 }
0x1181   :  { %7135 = vrot.lane.b32.xlu0 %v7134_v39, %s13042_s2 }
0x1184   :  { %v7059_v40 = vpop.f32.mrb[122].mxu1  ;;  %v7129_v42 = vpop.f32.mrb[82].mxu0 }
0x1185   :  { %v7130_v43 = vadd.f32 %v14011_v14, %v7129_v42  ;;  %v11123_v45 = vpop.f32.mrb[123].mxu1  ;;  %v11134_v48 = vpop.f32.mrb[83].mxu0 }
0x1187   :  { %v12373_v49 = vpop.eup %12372  ;;  %v7156_v50 = vrot.slane %v7130_v43, 4 }
0x1188   :  { %v6884_v52 = vadd.f32 1.0, %v12373_v49 }
0x1189   :  { %7157 = vrot.lane.b32.xlu0 %v7156_v50, %s13042_s2  ;;  %v7060_v50 = vadd.f32 %v14111_v59, %v7059_v40 }
0x118a   :  { %12374 = vrcp.f32 %v6884_v52 }
0x118b   :  { %v7146_v52 = vrot.slane %v7060_v50, 4 }
0x118d   :  { %v7148_v53 = vadd.f32 %v7146_v52, %v14100_v33 }
0x1194   :  { %v12375_v60 = vpop.eup %12374 }
0x1195   :  { %v6902_v0 = vmul.f32 %v12375_v60, %v6900_v54  ;;  %v9235_v54 = vmul.f32 -1.442695, %v7148_v53 }
0x1197   :  { %6904 = vrot.lane.b32.xlu1 %v6902_v0, %s13029_s17 }
0x119b   :  { %6889 = vrot.lane.b32.xlu1 %v6888_v1, %s13043_s3  ;;  %v7173_v1 = vrot.slane %v14123_v17, 2 }
0x11f3   :  { %v7136_v4 = vpop.permute.xlu0 %7135 }
0x11f4   :  { %v7138_v6 = vadd.f32 %v7136_v4, %v14077_v51 }
0x11f6   :  { %v9234_v7 = vmul.f32 -1.442695, %v7138_v6 }
0x11f8   :  { %12376 = vpow2.f32 %v9234_v7 }
0x11fb   :  { %v7158_v20 = vpop.permute.xlu0 %7157 }
0x1202   :  { %v12377_v9 = vpop.eup %12376 }
0x1203   :  { %v7142_v10 = vadd.f32 1.0, %v12377_v9 }
0x1205   :  { %12378 = vrcp.f32 %v7142_v10 }
0x1209   :  { %v6905_v13 = vpop.permute.xlu1 %6904 }
0x120a   :  { %v6907_v16 = vadd.f32 %v6905_v13, %v14077_v51 }
0x120c   :  { %12380 = vtanh.f32 %v6907_v16 }
0x120d   :  { %v6890_v23 = vpop.permute.xlu1 %6889 }
0x120e   :  { %v6892_v24 = vadd.f32 %v6890_v23, %v14077_v51 }
0x120f   :  { %v12379_v19 = vpop.eup %12378 }
0x1210   :  { %v7160_v21 = vmul.f32 %v12379_v19, %v7158_v20  ;;  %v9230_v25 = vmul.f32 -1.442695, %v6892_v24 }
0x1212   :  { %7162 = vrot.lane.b32.xlu0 %v7160_v21, %s13029_s17  ;;  %12382 = vpow2.f32 %v9230_v25 }
0x1216   :  { %v12381_v22 = vpop.eup %12380 }
0x1217   :  { %6911 = vrot.lane.b32.xlu1 %v12381_v22, %s13042_s2 }
0x121c   :  { %v12383_v26 = vpop.eup %12382 }
0x121d   :  { %v6896_v29 = vadd.f32 1.0, %v12383_v26 }
0x121f   :  { %12384 = vrcp.f32 %v6896_v29 }
0x1229   :  { %v12385_v31 = vpop.eup %12384 }
0x122a   :  { %v6909_v37 = vsub.f32 1.0, %v12385_v31  ;;  %v6917_v42 = vmul.f32 %v12385_v31, %v6915_v36 }
0x1284   :  { %v7163_v30 = vpop.permute.xlu0 %7162 }
0x1285   :  { %v7165_v34 = vadd.f32 %v7163_v30, %v14100_v33 }
0x1287   :  { %12386 = vtanh.f32 %v7165_v34 }
0x1288   :  { %12388 = vpow2.f32 %v9235_v54 }
0x1289   :  { %v6912_v39 = vpop.permute.xlu1 %6911 }
0x128a   :  { %v6914_v43 = vmul.f32 %v6912_v39, %v6909_v37 }
0x128c   :  { %v14182_v45 = vadd.f32 %v6917_v42, %v6914_v43 }
0x128e   :  { %v7178_v48 = vrot.slane %v14182_v45, 2 }
0x1290   :  { %7179 = vrot.lane.b32.xlu0 %v7178_v48, %s13042_s2 }
0x1291   :  { %v12387_v49 = vpop.eup %12386 }
0x1292   :  { %7169 = vrot.lane.b32.xlu1 %v12387_v49, %s13042_s2  ;;  %v12389_v58 = vpop.eup %12388 }
0x1293   :  { %v7152_v60 = vadd.f32 1.0, %v12389_v58 }
0x1295   :  { %12390 = vrcp.f32 %v7152_v60 }
0x129f   :  { %v12391_v62 = vpop.eup %12390 }
0x12a0   :  { %v7167_v4 = vsub.f32 1.0, %v12391_v62  ;;  %v7175_v7 = vmul.f32 %v12391_v62, %v7173_v1 }
0x1302   :  { %v7180_v0 = vpop.permute.xlu0 %7179 }
0x1303   :  { %11144 = vmatmul.mubr.msk.f32.vlgmr.msra.gmra.mrb[124].mxu1 %vm2427_vm3, %v7180_v0  ;;  %11155 = vmatmul.mubr.msk.f32.vlgmr.msra.gmra.mrb[84].mxu0 %vm2427_vm3, %v7180_v0 }
0x1304   :  { %11976 = vmatpush3.bf16.msra.mxu1 %v14039_v35  ;;  %11982 = vmatpush3.bf16.msra.mxu0 %v13934_v61  ;;  %v7170_v40 = vpop.permute.xlu1 %7169 }
0x1305   :  { %v7172_v6 = vmul.f32 %v7170_v40, %v7167_v4  ;;  %11977 = vmatprep.subr.bf16.mxu1 %v13039_v56  ;;  %11983 = vmatprep.subr.bf16.mxu0 %v13039_v56 }
0x1306   :  { %11165 = vmatprep.mubr.msk.f32.mxu1 %vm13040_vm5, %v13041_v57  ;;  %11176 = vmatprep.mubr.msk.f32.mxu0 %vm13040_vm5, %v13041_v57 }
0x1307   :  { %v14200_v9 = vadd.f32 %v7175_v7, %v7172_v6 }
0x1308   :  { %11979 = vmatpush3.bf16.msra.mxu1 %v14046_v38  ;;  %11985 = vmatpush3.bf16.msra.mxu0 %v13937_v63 }
0x1309   :  { %v7436_v10 = vrot.slane %v14200_v9, 4  ;;  %11986 = vmatprep.subr.bf16.mxu1 %v13039_v56  ;;  %11992 = vmatprep.subr.bf16.mxu0 %v13039_v56 }
0x130b   :  { %11166 = vmatmul.mubr.msk.f32.vlgmr.msra.gmra.mrb[126].mxu1 %vm2427_vm3, %v7180_v0  ;;  %11177 = vmatmul.mubr.msk.f32.vlgmr.msra.gmra.mrb[86].mxu0 %vm2427_vm3, %v7436_v10 }
0x130c   :  { %11988 = vmatpush3.bf16.msra.mxu1 %v14052_v41  ;;  %11994 = vmatpush3.bf16.msra.mxu0 %v13941_v2 }
0x130d   :  { %11989 = vmatprep.subr.bf16.mxu1 %v13039_v56  ;;  %11995 = vmatprep.subr.bf16.mxu0 %v13039_v56 }
0x130e   :  { %11187 = vmatprep.mubr.msk.f32.mxu1 %vm13040_vm5, %v13041_v57  ;;  %11198 = vmatprep.mubr.msk.f32.mxu0 %vm13040_vm5, %v13041_v57 }
0x1310   :  { %11991 = vmatpush3.bf16.msra.mxu1 %v14057_v44  ;;  %11997 = vmatpush3.bf16.msra.mxu0 %v13946_v5 }
0x1311   :  { %11998 = vmatprep.subr.bf16.mxu1 %v13039_v56  ;;  %12004 = vmatprep.subr.bf16.mxu0 %v13039_v56 }
0x1313   :  { %11188 = vmatmul.mubr.msk.f32.vlgmr.msra.gmra.mrb[128].mxu1 %vm2427_vm3, %v7436_v10  ;;  %11199 = vmatmul.mubr.msk.f32.vlgmr.msra.gmra.mrb[88].mxu0 %vm2427_vm3, %v7436_v10 }
0x1314   :  { %12000 = vmatpush3.bf16.msra.mxu1 %v14019_v27  ;;  %12006 = vmatpush3.bf16.msra.mxu0 %v13997_v8 }
0x1315   :  { %12001 = vmatprep.subr.bf16.mxu1 %v13039_v56  ;;  %12007 = vmatprep.subr.bf16.mxu0 %v13039_v56 }
0x1316   :  { %11209 = vmatprep.mubr.msk.f32.mxu1 %vm13040_vm5, %v13041_v57  ;;  %11220 = vmatprep.mubr.msk.f32.mxu0 %vm13040_vm5, %v13041_v57 }
0x1318   :  { %12003 = vmatpush3.bf16.msra.mxu1 %v14024_v32  ;;  %12009 = vmatpush3.bf16.msra.mxu0 %v14003_v11 }
0x1319   :  { %12010 = vmatprep.subr.bf16.mxu1 %v13039_v56  ;;  %12016 = vmatprep.subr.bf16.mxu0 %v13039_v56 }
0x13d6   :  { %v7249_v27 = vpop.f32.mrb[124].mxu1  ;;  %v7319_v8 = vpop.f32.mrb[84].mxu0 }
0x13d7   :  { %v7250_v13 = vadd.f32 %v14081_v55, %v7249_v27  ;;  %v11145_v16 = vpop.f32.mrb[125].mxu1  ;;  %v11156_v19 = vpop.f32.mrb[85].mxu0  ;;  %v7320_v50 = vadd.f32 %v14086_v3, %v7319_v8 }
0x13d9   :  { %v7394_v20 = vrot.slane %v7250_v13, 4  ;;  %v7404_v53 = vrot.slane %v7320_v50, 4  ;;  %v7689_v50 = vrot.slane %v14200_v9, 2 }
0x13db   :  { %v7396_v21 = vadd.f32 %v7394_v20, %v14077_v51 }
0x13dd   :  { %v9239_v22 = vmul.f32 -1.442695, %v7396_v21 }
0x13de   :  { %v7389_v23 = vpop.f32.mrb[126].mxu1  ;;  %v7505_v24 = vpop.f32.mrb[86].mxu0 }
0x13df   :  { %12392 = vpow2.f32 %v9239_v22  ;;  %v7506_v32 = vadd.f32 %v14008_v12, %v7505_v24  ;;  %v11167_v11 = vpop.f32.mrb[127].mxu1  ;;  %v11178_v25 = vpop.f32.mrb[87].mxu0  ;;  %v7390_v43 = vadd.f32 %v14091_v18, %v7389_v23  ;;  %v7431_v24 = vrot.slane %v14182_v45, 6 }
0x13e1   :  { %v7650_v26 = vrot.slane %v7506_v32, 6  ;;  %v7416_v48 = vrot.slane %v7390_v43, 4 }
0x13e3   :  { %7651 = vrot.lane.b32.xlu0 %v7650_v26, %s13042_s2 }
0x13e6   :  { %v7575_v29 = vpop.f32.mrb[128].mxu1  ;;  %v7645_v30 = vpop.f32.mrb[88].mxu0 }
0x13e7   :  { %v7646_v31 = vadd.f32 %v14011_v14, %v7645_v30  ;;  %v11189_v34 = vpop.f32.mrb[129].mxu1  ;;  %v11200_v36 = vpop.f32.mrb[89].mxu0 }
0x13e8   :  { %v7576_v34 = vadd.f32 %v14111_v59, %v7575_v29 }
0x13e9   :  { %v12393_v37 = vpop.eup %12392  ;;  %v7672_v39 = vrot.slane %v7646_v31, 6 }
0x13ea   :  { %v7400_v42 = vadd.f32 1.0, %v12393_v37  ;;  %v7662_v36 = vrot.slane %v7576_v34, 6 }
0x13eb   :  { %7673 = vrot.lane.b32.xlu0 %v7672_v39, %s13042_s2 }
0x13ec   :  { %12394 = vrcp.f32 %v7400_v42  ;;  %v7664_v37 = vadd.f32 %v7662_v36, %v14100_v33 }
0x13ee   :  { %v9245_v39 = vmul.f32 -1.442695, %v7664_v37 }
0x13f6   :  { %v12395_v49 = vpop.eup %12394 }
0x13f7   :  { %v7418_v52 = vmul.f32 %v12395_v49, %v7416_v48 }
0x13f9   :  { %7420 = vrot.lane.b32.xlu1 %v7418_v52, %s13029_s17 }
0x13fd   :  { %7405 = vrot.lane.b32.xlu1 %v7404_v53, %s13043_s3 }
0x1455   :  { %v7652_v54 = vpop.permute.xlu0 %7651 }
0x1456   :  { %v7654_v58 = vadd.f32 %v7652_v54, %v14077_v51 }
0x1458   :  { %v9244_v60 = vmul.f32 -1.442695, %v7654_v58 }
0x145a   :  { %12396 = vpow2.f32 %v9244_v60 }
0x145d   :  { %v7674_v6 = vpop.permute.xlu0 %7673 }
0x1464   :  { %v12397_v62 = vpop.eup %12396 }
0x1465   :  { %v7658_v0 = vadd.f32 1.0, %v12397_v62 }
0x1467   :  { %12398 = vrcp.f32 %v7658_v0 }
0x146b   :  { %v7421_v1 = vpop.permute.xlu1 %7420 }
0x146c   :  { %v7423_v4 = vadd.f32 %v7421_v1, %v14077_v51 }
0x146e   :  { %12400 = vtanh.f32 %v7423_v4 }
0x146f   :  { %v7406_v27 = vpop.permute.xlu1 %7405 }
0x1470   :  { %v7408_v8 = vadd.f32 %v7406_v27, %v14077_v51 }
0x1471   :  { %v12399_v40 = vpop.eup %12398 }
0x1472   :  { %v7676_v7 = vmul.f32 %v12399_v40, %v7674_v6  ;;  %v9240_v13 = vmul.f32 -1.442695, %v7408_v8 }
0x1474   :  { %7678 = vrot.lane.b32.xlu0 %v7676_v7, %s13029_s17  ;;  %12402 = vpow2.f32 %v9240_v13 }
0x1478   :  { %v12401_v10 = vpop.eup %12400 }
0x1479   :  { %7427 = vrot.lane.b32.xlu1 %v12401_v10, %s13042_s2 }
0x147e   :  { %v12403_v16 = vpop.eup %12402 }
0x147f   :  { %v7412_v19 = vadd.f32 1.0, %v12403_v16 }
0x1481   :  { %12404 = vrcp.f32 %v7412_v19 }
0x148b   :  { %v12405_v21 = vpop.eup %12404 }
0x148c   :  { %v7425_v23 = vsub.f32 1.0, %v12405_v21  ;;  %v7433_v11 = vmul.f32 %v12405_v21, %v7431_v24 }
0x14e6   :  { %v7679_v20 = vpop.permute.xlu0 %7678 }
0x14e7   :  { %v7681_v22 = vadd.f32 %v7679_v20, %v14100_v33 }
0x14e9   :  { %12406 = vtanh.f32 %v7681_v22 }
0x14ea   :  { %12408 = vpow2.f32 %v9245_v39 }
0x14eb   :  { %v7428_v32 = vpop.permute.xlu1 %7427 }
0x14ec   :  { %v7430_v25 = vmul.f32 %v7428_v32, %v7425_v23 }
0x14ee   :  { %v14252_v26 = vadd.f32 %v7433_v11, %v7430_v25 }
0x14f0   :  { %v7694_v30 = vrot.slane %v14252_v26, 4 }
0x14f2   :  { %7695 = vrot.lane.b32.xlu0 %v7694_v30, %s13042_s2 }
0x14f3   :  { %v12407_v31 = vpop.eup %12406 }
0x14f4   :  { %7685 = vrot.lane.b32.xlu1 %v12407_v31, %s13042_s2  ;;  %v12409_v42 = vpop.eup %12408 }
0x14f5   :  { %v7668_v43 = vadd.f32 1.0, %v12409_v42 }
0x14f7   :  { %12410 = vrcp.f32 %v7668_v43 }
0x1501   :  { %v12411_v48 = vpop.eup %12410 }
0x1502   :  { %v7683_v52 = vsub.f32 1.0, %v12411_v48  ;;  %v7691_v54 = vmul.f32 %v12411_v48, %v7689_v50  ;;  %v8236_v50 = vld [vmem:[#allocation26] sm:$0xff] }
0x1564   :  { %v7696_v49 = vpop.permute.xlu0 %7695 }
0x1565   :  { %11210 = vmatmul.mubr.msk.f32.vlgmr.msra.gmra.mrb[130].mxu1 %vm2427_vm3, %v7696_v49  ;;  %11221 = vmatmul.mubr.msk.f32.vlgmr.msra.gmra.mrb[90].mxu0 %vm2427_vm3, %v7696_v49 }
0x1566   :  { %12012 = vmatpush3.bf16.msra.mxu1 %v14039_v35  ;;  %12018 = vmatpush3.bf16.msra.mxu0 %v13934_v61  ;;  %v7686_v29 = vpop.permute.xlu1 %7685 }
0x1567   :  { %v7688_v53 = vmul.f32 %v7686_v29, %v7683_v52  ;;  %12013 = vmatprep.subr.bf16.mxu1 %v13039_v56  ;;  %12019 = vmatprep.subr.bf16.mxu0 %v13039_v56  ;;  %v8237_v52 = vld [vmem:[#allocation26 + $0x8] sm:$0xff]  ;;  %v8238_v29 = vld [vmem:[#allocation26 + $0x10] sm:$0xff] }
0x1568   :  { %11231 = vmatprep.mubr.msk.f32.mxu1 %vm13040_vm5, %v13041_v57  ;;  %11242 = vmatprep.mubr.msk.f32.mxu0 %vm13040_vm5, %v13041_v57 }
0x1569   :  { %v14270_v58 = vadd.f32 %v7691_v54, %v7688_v53  ;;  %v12035_v53 = vpack.c.bf16 %v8237_v52, %v8236_v50  ;;  %v8239_v54 = vld [vmem:[#allocation26 + $0x18] sm:$0xff] }
0x156a   :  { %12015 = vmatpush3.bf16.msra.mxu1 %v14046_v38  ;;  %12021 = vmatpush3.bf16.msra.mxu0 %v13937_v63 }
0x156b   :  { %v14275_v61 = vrot.slane %v14270_v58, 2  ;;  %12022 = vmatprep.subr.bf16.mxu1 %v13039_v56  ;;  %12028 = vmatprep.subr.bf16.mxu0 %v13039_v56 }
0x156d   :  { %11232 = vmatmul.mubr.msk.f32.vlgmr.msra.gmra.mrb[132].mxu1 %vm2427_vm3, %v7696_v49  ;;  %11243 = vmatmul.mubr.msk.f32.vlgmr.msra.gmra.mrb[92].mxu0 %vm2427_vm3, %v14275_v61 }
0x156e   :  { %12024 = vmatpush3.bf16.msra.mxu1 %v14052_v41  ;;  %12030 = vmatpush3.bf16.msra.mxu0 %v13941_v2 }
0x156f   :  { %12025 = vmatprep.subr.bf16.mxu1 %v13039_v56  ;;  %12031 = vmatprep.subr.bf16.mxu0 %v13039_v56 }
0x1570   :  { %11253 = vmatprep.mubr.msk.f32.mxu1 %vm13040_vm5, %v13041_v57  ;;  %11264 = vmatprep.mubr.msk.f32.mxu0 %vm13040_vm5, %v13041_v57 }
0x1572   :  { %12027 = vmatpush3.bf16.msra.mxu1 %v14057_v44  ;;  %12033 = vmatpush3.bf16.msra.mxu0 %v13946_v5 }
0x1573   :  { %12034 = vmatprep.subr.bf16.mxu1 %v13039_v56 }
0x1575   :  { %11254 = vmatmul.mubr.msk.f32.vlgmr.msra.gmra.mrb[134].mxu1 %vm2427_vm3, %v14275_v61  ;;  %11265 = vmatmul.mubr.msk.f32.vlgmr.msra.gmra.mrb[94].mxu0 %vm2427_vm3, %v14275_v61 }
0x1576   :  { %11283 = vmatprep.mubr.msk.f32.mxu1 %vm13040_vm5, %v13041_v57  ;;  %8529 = vmatprep.mubr.f32.mxu0 %v13041_v57 }
0x1577   :  { %12036 = vmatpush3.bf16.msra.mxu1 %v12035_v53 }
0x1578   :  { %12037 = vmatprep.subr.bf16.mxu1 %v13039_v56 }
0x1638   :  { %v7765_v63 = vpop.f32.mrb[130].mxu1  ;;  %v7835_v2 = vpop.f32.mrb[90].mxu0 }
0x1639   :  { %v7766_v35 = vadd.f32 %v14081_v55, %v7765_v63  ;;  %v11211_v38 = vpop.f32.mrb[131].mxu1  ;;  %v11222_v41 = vpop.f32.mrb[91].mxu0  ;;  %v8240_v63 = vld [vmem:[#allocation26 + $0x20] sm:$0xff] }
0x163a   :  { %v7947_v41 = vrot.slane %v14252_v26, 6 }
0x163b   :  { %v7910_v5 = vrot.slane %v7766_v35, 2 }
0x163d   :  { %v7912_v44 = vadd.f32 %v7910_v5, %v14077_v51 }
0x163f   :  { %v9249_v60 = vmul.f32 -1.442695, %v7912_v44 }
0x1640   :  { %v7905_v62 = vpop.f32.mrb[132].mxu1  ;;  %v8021_v0 = vpop.f32.mrb[92].mxu0 }
0x1641   :  { %12412 = vpow2.f32 %v9249_v60  ;;  %v8022_v1 = vadd.f32 %v14008_v12, %v8021_v0  ;;  %v11233_v4 = vpop.f32.mrb[133].mxu1  ;;  %v11244_v40 = vpop.f32.mrb[93].mxu0  ;;  %v7906_v16 = vadd.f32 %v14091_v18, %v7905_v62  ;;  %v7836_v18 = vadd.f32 %v14086_v3, %v7835_v2  ;;  %v8241_v2 = vld [vmem:[#allocation26 + $0x28] sm:$0xff] }
0x1642   :  { %v8242_v40 = vld [vmem:[#allocation26 + $0x30] sm:$0xff] }
0x1643   :  { %8166 = vrot.lane.b32.xlu0 %v8022_v1, %s13042_s2  ;;  %v7932_v19 = vrot.slane %v7906_v16, 2  ;;  %v7920_v34 = vrot.slane %v7836_v18, 2 }
0x1648   :  { %v14304_v6 = vpop.f32.mrb[134].mxu1  ;;  %v8161_v7 = vpop.f32.mrb[94].mxu0 }
0x1649   :  { %v8162_v55 = vadd.f32 %v14011_v14, %v8161_v7  ;;  %v11255_v10 = vpop.f32.mrb[135].mxu1  ;;  %v11266_v27 = vpop.f32.mrb[95].mxu0  ;;  %v8092_v62 = vadd.f32 %v14111_v59, %v14304_v6  ;;  %v8243_v7 = vld [vmem:[#allocation26 + $0x38] sm:$0xff] }
0x164b   :  { %v12413_v8 = vpop.eup %12412  ;;  %8184 = vrot.lane.b32.xlu1 %v8162_v55, %s13042_s2  ;;  %v8176_v0 = vadd.f32 %v8092_v62, %v14100_v33  ;;  %v12044_v55 = vpack.c.bf16 %v8243_v7, %v8242_v40 }
0x164c   :  { %v7916_v13 = vadd.f32 1.0, %v12413_v8 }
0x164d   :  { %v9255_v1 = vmul.f32 -1.442695, %v8176_v0 }
0x164e   :  { %12414 = vrcp.f32 %v7916_v13 }
0x1658   :  { %v12415_v12 = vpop.eup %12414 }
0x1659   :  { %v7934_v20 = vmul.f32 %v12415_v12, %v7932_v19 }
0x165b   :  { %7936 = vrot.lane.b32.xlu1 %v7934_v20, %s13029_s17 }
0x16b5   :  { %v8167_v21 = vpop.permute.xlu0 %8166 }
0x16b6   :  { %v8169_v22 = vadd.f32 %v8167_v21, %v14077_v51 }
0x16b8   :  { %v9254_v23 = vmul.f32 -1.442695, %v8169_v22 }
0x16ba   :  { %12416 = vpow2.f32 %v9254_v23 }
0x16bd   :  { %v8185_v32 = vpop.permute.xlu1 %8184 }
0x16c4   :  { %v12417_v14 = vpop.eup %12416 }
0x16c5   :  { %v8173_v24 = vadd.f32 1.0, %v12417_v14 }
0x16c7   :  { %12418 = vrcp.f32 %v8173_v24 }
0x16cd   :  { %v7937_v11 = vpop.permute.xlu1 %7936 }
0x16ce   :  { %v7939_v25 = vadd.f32 %v7937_v11, %v14077_v51 }
0x16d0   :  { %12420 = vtanh.f32 %v7939_v25 }
0x16d1   :  { %v12419_v30 = vpop.eup %12418 }
0x16d2   :  { %v8187_v31 = vmul.f32 %v12419_v30, %v8185_v32 }
0x16d4   :  { %8189 = vrot.lane.b32.xlu0 %v8187_v31, %s13029_s17  ;;  %v9258_v31 = vld [vmem:[#allocation29] ss:$0 sm:$0xff]  ;;  %s14462_s17 = sld [smem:[#allocation68_spill]] }
0x16d8   :  { %7921 = vrot.lane.b32.xlu0 %v7920_v34, %s13043_s3 }
0x16da   :  { %v12421_v36 = vpop.eup %12420  ;;  %v8661_v46 = vld [vmem:[%s14462_s17 + $0x68] sm:$0xff] }
0x16dc   :  { %7943 = vrot.lane.b32.xlu0 %v12421_v36, %s13042_s2 }
0x16e0   :  { %8209 = vrot.lane.b32.xlu0 %v14182_v45, %s13042_s2 }
0x16e4   :  { %8216 = vrot.lane.b32.xlu0 %v14252_v26, %s13042_s2 }
0x1746   :  { %v8190_v37 = vpop.permute.xlu0 %8189 }
0x1747   :  { %v8192_v39 = vadd.f32 %v8190_v37, %v14100_v33 }
0x1749   :  { %12422 = vtanh.f32 %v8192_v39  ;;  %v13044_v39 = vmov 0  }
0x174a   :  { %v7922_v3 = vpop.permute.xlu0 %7921  ;;  %12350 = vset.pattern.permute.xlu1 %v13044_v39  ;;  %12351 = vset.pattern.permute.xlu0 %v13044_v39  ;;  %v8444_v39 = vld [vmem:[#allocation30 + $0x50] sm:$0xff] }
0x174b   :  { %v7924_v42 = vadd.f32 %v7922_v3, %v14077_v51  ;;  %v12038_v51 = vpack.c.bf16 %v8239_v54, %v8238_v29  ;;  %v9259_v3 = vld [vmem:[#allocation2] ss:$0 sm:$0xff] }
0x174d   :  { %v9250_v43 = vmul.f32 -1.442695, %v7924_v42  ;;  %12039 = vmatpush3.bf16.msra.mxu1 %v12038_v51 }
0x174e   :  { %12040 = vmatprep.subr.bf16.mxu1 %v13039_v56 }
0x174f   :  { %12424 = vpow2.f32 %v9250_v43 }
0x1753   :  { %v12423_v48 = vpop.eup %12422 }
0x1754   :  { %8196 = vrot.lane.b32.xlu1 %v12423_v48, %s13042_s2 }
0x1758   :  { %8212 = vrot.lane.b32.xlu1 %v14270_v58, %s13043_s3  ;;  %v12041_v58 = vpack.c.bf16 %v8241_v2, %v8240_v63 }
0x1759   :  { %v12425_v49 = vpop.eup %12424 }
0x175a   :  { %v7928_v45 = vadd.f32 1.0, %v12425_v49  ;;  %12042 = vmatpush3.bf16.msra.mxu1 %v12041_v58 }
0x175b   :  { %12043 = vmatprep.subr.bf16.mxu1 %v13039_v56 }
0x175c   :  { %12426 = vrcp.f32 %v7928_v45  ;;  %8219 = vrot.lane.b32.xlu1 %v14200_v9, %s13043_s3  ;;  %v7944_v9 = vpop.permute.xlu0 %7943 }
0x175d   :  { %12428 = vpow2.f32 %v9255_v1 }
0x175e   :  { %12045 = vmatpush3.bf16.msra.mxu1 %v12044_v55 }
0x1760   :  { %v8210_v59 = vpop.permute.xlu0 %8209 }
0x1764   :  { %v8217_v12 = vpop.permute.xlu0 %8216 }
0x1766   :  { %v12427_v35 = vpop.eup %12426 }
0x1767   :  { %v7941_v38 = vsub.f32 1.0, %v12427_v35  ;;  %v7949_v5 = vmul.f32 %v12427_v35, %v7947_v41  ;;  %v12429_v4 = vpop.eup %12428 }
0x1768   :  { %v8180_v26 = vadd.f32 1.0, %v12429_v4 }
0x1769   :  { %v7946_v44 = vmul.f32 %v7944_v9, %v7941_v38 }
0x176a   :  { %12430 = vrcp.f32 %v8180_v26 }
0x176b   :  { %v7950_v60 = vadd.f32 %v7949_v5, %v7946_v44 }
0x176d   :  { %8224 = vrot.lane.b32.xlu0 %v7950_v60, %s13042_s2 }
0x1774   :  { %v12431_v10 = vpop.eup %12430 }
0x1775   :  { %v8194_v27 = vsub.f32 1.0, %v12431_v10  ;;  %v8201_v16 = vmul.f32 %v12431_v10, %v14275_v61 }
0x17c6   :  { %v8197_v8 = vpop.permute.xlu1 %8196 }
0x17c7   :  { %v8199_v13 = vmul.f32 %v8197_v8, %v8194_v27 }
0x17c9   :  { %v8202_v19 = vadd.f32 %v8201_v16, %v8199_v13  ;;  %v8435_v13 = vld [vmem:[#allocation30 + $0x8] sm:$0xff]  ;;  %v8437_v16 = vld [vmem:[#allocation30 + $0x18] sm:$0xff] }
0x17ca   :  { %v8213_v33 = vpop.permute.xlu1 %8212 }
0x17cb   :  { %8205 = vrot.lane.b32.xlu1 %v8202_v19, %s13043_s3  ;;  %v14340_v21 = vsel %vm2427_vm3, %v8210_v59, %v8213_v33  ;;  %v8434_v19 = vld [vmem:[#allocation30] sm:$0xff]  ;;  %v12046_v33 = vpack.c.bf16 %v8437_v16, %v8435_v13  ;;  %v8436_v59 = vld [vmem:[#allocation30 + $0x10] sm:$0xff] }
0x17cc   :  { %v8546_v16 = vld [vmem:[#allocation32 + $0x40] sm:$0xff] }
0x17cd   :  { %12047 = vmatprep.subr.bf16.mxu0 %v12046_v33  ;;  %v8564_v33 = vld [vmem:[#allocation32 + $0xd0] sm:$0xff] }
0x17ce   :  { %v8220_v6 = vpop.permute.xlu1 %8219 }
0x17cf   :  { %8227 = vrot.lane.b32.xlu1 %v14123_v17, %s13043_s3  ;;  %v14349_v23 = vsel %vm2427_vm3, %v8217_v12, %v8220_v6 }
0x17df   :  { %v8225_v17 = vpop.permute.xlu0 %8224 }
0x183d   :  { %v8206_v20 = vpop.permute.xlu1 %8205 }
0x183e   :  { %v14344_v22 = vsel %vm2427_vm3, %v14115_v15, %v8206_v20  ;;  %v9256_v15 = vld [vmem:[#allocation27] ss:$0 sm:$0xff]  ;;  %v12048_v20 = vpack.c.bf16 %v8436_v59, %v8434_v19  ;;  %v8547_v19 = vld [vmem:[#allocation32 + $0x48] sm:$0xff] }
0x183f   :  { %v8232_v61 = vsel %vm8231_vm6, %v14344_v22, %v14340_v21  ;;  %v8565_v59 = vld [vmem:[#allocation32 + $0xd8] sm:$0xff] }
0x1840   :  { %v8233_v24 = vsel %vm497_vm0, %v8232_v61, %v14349_v23  ;;  %12049 = vmatpush1.bf16.msra.mxu0 %v12048_v20  ;;  %v8439_v61 = vld [vmem:[#allocation30 + $0x28] sm:$0xff]  ;;  %v8548_v20 = vld [vmem:[#allocation32 + $0x50] sm:$0xff] }
0x1841   :  { %v8228_v14 = vpop.permute.xlu1 %8227 }
0x1842   :  { %v14354_v32 = vsel %vm2427_vm3, %v8225_v17, %v8228_v14  ;;  %v8441_v17 = vld [vmem:[#allocation30 + $0x38] sm:$0xff] }
0x1843   :  { %v8235_v11 = vsel %vm8234_vm7, %v8233_v24, %v14354_v32 }
0x1844   :  { %11284 = vmatmul.mubr.msk.f32.vlgmr.msra.gmra.mrb[136].mxu1 %vm2579_vm2, %v8235_v11  ;;  %v12050_v11 = vpack.c.bf16 %v8441_v17, %v8439_v61  ;;  %v8549_v61 = vld [vmem:[#allocation32 + $0x58] sm:$0xff]  ;;  %v8566_v17 = vld [vmem:[#allocation32 + $0xe0] sm:$0xff] }
0x1846   :  { %12051 = vmatprep.subr.bf16.mxu0 %v12050_v11 }
0x1917   :  { %v8320_v25 = vpop.f32.mrb[136].mxu1 }
0x1918   :  { %v8321_v30 = vadd.f32 %v9256_v15, %v8320_v25  ;;  %v11285_v18 = vpop.f32.mrb[137].mxu1  ;;  %v8438_v15 = vld [vmem:[#allocation30 + $0x20] sm:$0xff]  ;;  %v8440_v25 = vld [vmem:[#allocation30 + $0x30] sm:$0xff] }
0x1919   :  { %v8443_v18 = vld [vmem:[#allocation30 + $0x48] sm:$0xff] }
0x191a   :  { %12432 = vtanh.f32 %v8321_v30  ;;  %v12052_v30 = vpack.c.bf16 %v8440_v25, %v8438_v15 }
0x191c   :  { %12053 = vmatpush1.bf16.msra.mxu0 %v12052_v30 }
0x1924   :  { %v12433_v34 = vpop.eup %12432 }
0x1925   :  { %v8332_v36 = vmul.f32 %v12433_v34, %v9258_v31  ;;  %v8445_v31 = vld [vmem:[#allocation30 + $0x58] sm:$0xff] }
0x1927   :  { %v8333_v37 = vsel %vm2579_vm2, %v8332_v36, 0.0  ;;  %v12054_v36 = vpack.c.bf16 %v8445_v31, %v8443_v18 }
0x1928   :  { %8334 = vadd.xlane.f32.xlu0 %v8333_v37  ;;  %v8442_v37 = vld [vmem:[#allocation30 + $0x40] sm:$0xff] }
0x1929   :  { %12055 = vmatprep.subr.bf16.mxu0 %v12054_v36 }
0x19b5   :  { %v8335_v42 = vpop.xlane.xlu0 %8334 }
0x19b6   :  { %v8343_v43 = vadd.f32 %v9259_v3, %v8335_v42  ;;  %v12056_v3 = vpack.c.bf16 %v8444_v39, %v8442_v37  ;;  %v8447_v42 = vld [vmem:[#allocation30 + $0x68] sm:$0xff] }
0x19b8   :  { %v8345_v48 = vrot.slane %v8343_v43, 2  ;;  %v8348_v45 = vrot.slane %v8343_v43, 4  ;;  %v8351_v52 = vrot.slane %v8343_v43, 6  ;;  %12057 = vmatpush1.bf16.msra.mxu0 %v12056_v3 }
0x19ba   :  { %v8347_v49 = vmax.f32 %v8343_v43, %v8345_v48 }
0x19bc   :  { %v8350_v50 = vmax.f32 %v8347_v49, %v8348_v45  ;;  %v8446_v49 = vld [vmem:[#allocation30 + $0x60] sm:$0xff]  ;;  %v8448_v45 = vld [vmem:[#allocation30 + $0x70] sm:$0xff] }
0x19be   :  { %v8353_v29 = vmax.f32 %v8350_v50, %v8351_v52  ;;  %v12060_v50 = vpack.c.bf16 %v8448_v45, %v8446_v49  ;;  %v8554_v52 = vld [vmem:[#allocation32 + $0x80] sm:$0xff]  ;;  %v8568_v45 = vld [vmem:[#allocation32 + $0xf0] sm:$0xff] }
0x19c0   :  { %v8354_v53 = vsub.f32 %v8343_v43, %v8353_v29  ;;  %v8358_v54 = vrot.slane %v8353_v29, 6  ;;  %v8363_v51 = vrot.slane %v8353_v29, 4  ;;  %v8368_v63 = vrot.slane %v8353_v29, 2  ;;  %v8555_v29 = vld [vmem:[#allocation32 + $0x88] sm:$0xff] }
0x19c2   :  { %v8355_v2 = vmul.f32 1.442695, %v8354_v53  ;;  %v8360_v35 = vsub.f32 %v8343_v43, %v8358_v54  ;;  %v8365_v58 = vsub.f32 %v8343_v43, %v8363_v51  ;;  %v8370_v38 = vsub.f32 %v8343_v43, %v8368_v63  ;;  %v8449_v43 = vld [vmem:[#allocation30 + $0x78] sm:$0xff]  ;;  %v8538_v53 = vld [vmem:[#allocation32] sm:$0xff]  ;;  %v8539_v51 = vld [vmem:[#allocation32 + $0x8] sm:$0xff] }
0x19c3   :  { %v12058_v48 = vpack.c.bf16 %v8449_v43, %v8447_v42  ;;  %v12062_v54 = vpack.c.bf16 %v8555_v29, %v8554_v52  ;;  %v8556_v63 = vld [vmem:[#allocation32 + $0x90] sm:$0xff]  ;;  %v8553_v29 = vld [vmem:[#allocation32 + $0x78] sm:$0xff] }
0x19c4   :  { %v8361_v41 = vmul.f32 1.442695, %v8360_v35  ;;  %v8366_v9 = vmul.f32 1.442695, %v8365_v58  ;;  %v8371_v5 = vmul.f32 1.442695, %v8370_v38  ;;  %12434 = vpow2.f32 %v8355_v2 }
0x19c5   :  { %12059 = vmatprep.subr.bf16.mxu0 %v12058_v48  ;;  %v8557_v2 = vld [vmem:[#allocation32 + $0x98] sm:$0xff]  ;;  %v12064_v35 = vpack.c.bf16 %v8539_v51, %v8538_v53  ;;  %v8540_v38 = vld [vmem:[#allocation32 + $0x10] sm:$0xff]  ;;  %12063 = vmatprep.subr.bf16.mxu1 %v12062_v54 }
0x19c6   :  { %12436 = vpow2.f32 %v8361_v41  ;;  %12061 = vmatpush1.bf16.msra.mxu0 %v12060_v50  ;;  %v12066_v58 = vpack.c.bf16 %v8557_v2, %v8556_v63  ;;  %v8541_v41 = vld [vmem:[#allocation32 + $0x18] sm:$0xff]  ;;  %v8552_v52 = vld [vmem:[#allocation32 + $0x70] sm:$0xff] }
0x19c7   :  { %12438 = vpow2.f32 %v8366_v9  ;;  %12094 = vmatprep.subr.bf16.mxu0 %v13039_v56  ;;  %v8558_v9 = vld [vmem:[#allocation32 + $0xa0] sm:$0xff]  ;;  %12065 = vmatpush3.bf16.msra.mxu1 %v12064_v35  ;;  %v8569_v50 = vld [vmem:[#allocation32 + $0xf8] sm:$0xff]  ;;  %v12092_v53 = vpack.c.bf16 %v8553_v29, %v8552_v52  ;;  %v8648_v54 = vld [vmem:[%s14462_s17] sm:$0xff] }
0x19c8   :  { %12440 = vpow2.f32 %v8371_v5  ;;  %v8559_v5 = vld [vmem:[#allocation32 + $0xa8] sm:$0xff]  ;;  %12067 = vmatprep.subr.bf16.mxu1 %v12066_v58  ;;  %v8649_v51 = vld [vmem:[%s14462_s17 + $0x8] sm:$0xff]  ;;  %v8650_v63 = vld [vmem:[%s14462_s17 + $0x10] sm:$0xff] }
0x19c9   :  { %v12095_v2 = vpack.c.bf16 %v8649_v51, %v8648_v54  ;;  %v8651_v35 = vld [vmem:[%s14462_s17 + $0x18] sm:$0xff] }
0x19ca   :  { %v12098_v58 = vpack.c.bf16 %v8651_v35, %v8650_v63 }
0x19ce   :  { %v12435_v44 = vpop.eup %12434 }
0x19d0   :  { %v12437_v60 = vpop.eup %12436 }
0x19d1   :  { %v12439_v62 = vpop.eup %12438  ;;  %v8374_v0 = vrot.slane %v12437_v60, 2 }
0x19d2   :  { %v12441_v1 = vpop.eup %12440  ;;  %v8378_v26 = vrot.slane %v12439_v62, 4 }
0x19d3   :  { %v8376_v4 = vadd.f32 %v12435_v44, %v8374_v0  ;;  %v8382_v7 = vrot.slane %v12441_v1, 6  ;;  %v8543_v0 = vld [vmem:[#allocation32 + $0x28] sm:$0xff] }
0x19d5   :  { %v8380_v40 = vadd.f32 %v8378_v26, %v8376_v4  ;;  %v8561_v4 = vld [vmem:[#allocation32 + $0xb8] sm:$0xff] }
0x19d7   :  { %v8384_v55 = vadd.f32 %v8382_v7, %v8380_v40  ;;  %v8544_v7 = vld [vmem:[#allocation32 + $0x30] sm:$0xff] }
0x19d9   :  { %12442 = vrcp.f32 %v8384_v55  ;;  %v8545_v55 = vld [vmem:[#allocation32 + $0x38] sm:$0xff] }
0x19e3   :  { %v12443_v10 = vpop.eup %12442 }
0x19e4   :  { %v8386_v27 = vmul.f32 %v12443_v10, %v12435_v44  ;;  %v8395_v8 = vrot.slane %v12443_v10, 6  ;;  %v8408_v12 = vrot.slane %v12443_v10, 4  ;;  %v8421_v24 = vrot.slane %v12443_v10, 2  ;;  %v8562_v10 = vld [vmem:[#allocation32 + $0xc0] sm:$0xff] }
0x19e5   :  { %v12068_v44 = vpack.c.bf16 %v8541_v41, %v8540_v38  ;;  %v8652_v38 = vld [vmem:[%s14462_s17 + $0x20] sm:$0xff]  ;;  %v8653_v41 = vld [vmem:[%s14462_s17 + $0x28] sm:$0xff] }
0x19e6   :  { %8389 = vperm.xlu1 %12350, %v8386_v27   ;;  %v8397_v6 = vmul.f32 %v12437_v60, %v8395_v8  ;;  %v8410_v14 = vmul.f32 %v12439_v62, %v8408_v12  ;;  %v8423_v34 = vmul.f32 %v12441_v1, %v8421_v24  ;;  %v12070_v60 = vpack.c.bf16 %v8559_v5, %v8558_v9  ;;  %v8542_v62 = vld [vmem:[#allocation32 + $0x20] sm:$0xff]  ;;  %v8560_v1 = vld [vmem:[#allocation32 + $0xb0] sm:$0xff]  ;;  %v8563_v27 = vld [vmem:[#allocation32 + $0xc8] sm:$0xff] }
0x19e7   :  { %12069 = vmatpush3.bf16.msra.mxu1 %v12068_v44  ;;  %v12072_v26 = vpack.c.bf16 %v8543_v0, %v8542_v62  ;;  %v12074_v40 = vpack.c.bf16 %v8561_v4, %v8560_v1  ;;  %v12076_v8 = vpack.c.bf16 %v8545_v55, %v8544_v7  ;;  %v12078_v13 = vpack.c.bf16 %v8563_v27, %v8562_v10  ;;  %v8654_v5 = vld [vmem:[%s14462_s17 + $0x30] sm:$0xff]  ;;  %v8655_v44 = vld [vmem:[%s14462_s17 + $0x38] sm:$0xff]  ;;  %v8656_v62 = vld [vmem:[%s14462_s17 + $0x40] sm:$0xff] }
0x19e8   :  { %12071 = vmatprep.subr.bf16.mxu1 %v12070_v60  ;;  %v12082_v12 = vpack.c.bf16 %v8565_v59, %v8564_v33  ;;  %v12084_v24 = vpack.c.bf16 %v8549_v61, %v8548_v20  ;;  %v12101_v9 = vpack.c.bf16 %v8653_v41, %v8652_v38  ;;  %v12104_v60 = vpack.c.bf16 %v8655_v44, %v8654_v5  ;;  %v8657_v0 = vld [vmem:[%s14462_s17 + $0x48] sm:$0xff]  ;;  %v8658_v4 = vld [vmem:[%s14462_s17 + $0x50] sm:$0xff]  ;;  %v8450_v7 = vld [vmem:[%s14463_s11] sm:$0x3] }
0x19e9   :  { %v12107_v1 = vpack.c.bf16 %v8657_v0, %v8656_v62  ;;  %v8455_v55 = vrot.slane %v8450_v7, %v6011_v47  ;;  %v8459_v10 = vrot.slane %v8450_v7, %v6015_v28  ;;  %v8660_v47 = vld [vmem:[%s14462_s17 + $0x60] sm:$0xff]  ;;  %v8662_v59 = vld [vmem:[%s14462_s17 + $0x70] sm:$0xff]  ;;  %v8743_v61 = vld [vmem:[%s13217_s7 + $0x8] sm:$0xff] }
0x19ea   :  { %8400 = vperm.xlu1 %12350, %v8397_v6   ;;  %v12080_v6 = vpack.c.bf16 %v8547_v19, %v8546_v16  ;;  %v12113_v28 = vpack.c.bf16 %v8661_v46, %v8660_v47  ;;  %v8742_v20 = vld [vmem:[%s13217_s7] sm:$0xff] }
0x19eb   :  { %12073 = vmatpush3.bf16.msra.mxu1 %v12072_v26  ;;  %v8659_v26 = vld [vmem:[%s14462_s17 + $0x58] sm:$0xff] }
0x19ec   :  { %12075 = vmatprep.subr.bf16.mxu1 %v12074_v40  ;;  %v12110_v40 = vpack.c.bf16 %v8659_v26, %v8658_v4 }
0x19ee   :  { %8413 = vperm.xlu1 %12350, %v8410_v14   ;;  %v8567_v14 = vld [vmem:[#allocation32 + $0xe8] sm:$0xff] }
0x19ef   :  { %12077 = vmatpush3.bf16.msra.mxu1 %v12076_v8  ;;  %v12086_v11 = vpack.c.bf16 %v8567_v14, %v8566_v17  ;;  %v8744_v17 = vld [vmem:[%s13217_s7 + $0x10] sm:$0xff]  ;;  %v12119_v14 = vpack.c.bf16 %v8743_v61, %v8742_v20 }
0x19f0   :  { %12079 = vmatprep.subr.bf16.mxu1 %v12078_v13 }
0x19f2   :  { %8426 = vperm.xlu1 %12350, %v8423_v34  }
0x19f3   :  { %12081 = vmatpush3.bf16.msra.mxu1 %v12080_v6  ;;  %v8663_v6 = vld [vmem:[%s14462_s17 + $0x78] sm:$0xff] }
0x19f4   :  { %12083 = vmatprep.subr.bf16.mxu1 %v12082_v12  ;;  %v12116_v12 = vpack.c.bf16 %v8663_v6, %v8662_v59 }
0x19f7   :  { %12085 = vmatpush3.bf16.msra.mxu1 %v12084_v24  ;;  %v8745_v24 = vld [vmem:[%s13217_s7 + $0x18] sm:$0xff] }
0x19f8   :  { %12087 = vmatprep.subr.bf16.mxu1 %v12086_v11  ;;  %v12122_v11 = vpack.c.bf16 %v8745_v24, %v8744_v17 }
0x1a65   :  { %v8390_v15 = vpop.permute.xlu1 %8389 }
0x1a66   :  { %v8392_v36 = vmul.f32 %v8390_v15, %v14344_v22  ;;  %v8747_v15 = vld [vmem:[%s13217_s7 + $0x28] sm:$0xff] }
0x1a69   :  { %v8401_v25 = vpop.permute.xlu1 %8400 }
0x1a6a   :  { %v8403_v30 = vmul.f32 %v8401_v25, %v14340_v21  ;;  %v8550_v21 = vld [vmem:[#allocation32 + $0x60] sm:$0xff] }
0x1a6c   :  { %v8405_v31 = vrot.slane %v8403_v30, 2 }
0x1a6d   :  { %v8414_v18 = vpop.permute.xlu1 %8413 }
0x1a6e   :  { %v8416_v34 = vmul.f32 %v8414_v18, %v14349_v23  ;;  %v8407_v3 = vadd.f32 %v8405_v31, %v8392_v36  ;;  %v8551_v23 = vld [vmem:[#allocation32 + $0x68] sm:$0xff]  ;;  %v9261_v18 = vld [vmem:[#allocation33] ss:$0 sm:$0xff] }
0x1a6f   :  { %v12088_v22 = vpack.c.bf16 %v8551_v23, %v8550_v21 }
0x1a70   :  { %v8418_v37 = vrot.slane %v8416_v34, 4 }
0x1a71   :  { %v8427_v39 = vpop.permute.xlu1 %8426  ;;  %12089 = vmatpush3.bf16.msra.mxu1 %v12088_v22  ;;  %v9263_v22 = vld [vmem:[#allocation36] ss:$0 sm:$0xff] }
0x1a72   :  { %v8429_v42 = vmul.f32 %v8427_v39, %v14354_v32  ;;  %v8420_v43 = vadd.f32 %v8418_v37, %v8407_v3  ;;  %v12090_v32 = vpack.c.bf16 %v8569_v50, %v8568_v45  ;;  %v8748_v39 = vld [vmem:[%s13217_s7 + $0x30] sm:$0xff]  ;;  %v8749_v3 = vld [vmem:[%s13217_s7 + $0x38] sm:$0xff] }
0x1a74   :  { %v8431_v48 = vrot.slane %v8429_v42, 6  ;;  %12091 = vmatprep.subr.bf16.mxu1 %v12090_v32  ;;  %v12128_v42 = vpack.c.bf16 %v8749_v3, %v8748_v39 }
0x1a75   :  { %12093 = vmatpush3.bf16.msra.mxu1 %v12092_v53 }
0x1a76   :  { %v8433_v49 = vadd.f32 %v8431_v48, %v8420_v43  ;;  %12118 = vmatprep.subr.bf16.mxu1 %v13039_v56  ;;  %v9262_v43 = vld [vmem:[#allocation35] ss:$0 sm:$0xff] }
0x1a78   :  { %9260 = vmatmul.mubr.msk.f32.vlgmr.msra.gmra.mrb[96].mxu0 %vm2579_vm2, %v8433_v49 }
0x1a79   :  { %11318 = vmatprep.mubr.msk.f32.mxu0 %vm13040_vm5, %v13041_v57  ;;  %12096 = vmatpush3.bf16.msra.mxu0 %v12095_v2 }
0x1a7a   :  { %12097 = vmatprep.subr.bf16.mxu0 %v13039_v56 }
0x1a7d   :  { %12099 = vmatpush3.bf16.msra.mxu0 %v12098_v58 }
0x1a7e   :  { %12100 = vmatprep.subr.bf16.mxu0 %v13039_v56 }
0x1a81   :  { %12102 = vmatpush3.bf16.msra.mxu0 %v12101_v9 }
0x1a82   :  { %12103 = vmatprep.subr.bf16.mxu0 %v13039_v56 }
0x1a85   :  { %12105 = vmatpush3.bf16.msra.mxu0 %v12104_v60 }
0x1a86   :  { %12106 = vmatprep.subr.bf16.mxu0 %v13039_v56 }
0x1a89   :  { %12108 = vmatpush3.bf16.msra.mxu0 %v12107_v1 }
0x1a8a   :  { %12109 = vmatprep.subr.bf16.mxu0 %v13039_v56 }
0x1a8d   :  { %12111 = vmatpush3.bf16.msra.mxu0 %v12110_v40 }
0x1a8e   :  { %12112 = vmatprep.subr.bf16.mxu0 %v13039_v56 }
0x1a91   :  { %12114 = vmatpush3.bf16.msra.mxu0 %v12113_v28 }
0x1a92   :  { %12115 = vmatprep.subr.bf16.mxu0 %v13039_v56 }
0x1a95   :  { %12117 = vmatpush3.bf16.msra.mxu0 %v12116_v12 }
0x1b4b   :  { %v8531_v27 = vpop.f32.mrb[96].mxu0 }
0x1b4c   :  { %v8532_v8 = vadd.f32 %v8531_v27, %v8455_v55  ;;  %v8533_v13 = vpop.f32.mrb[97].mxu0 }
0x1b4d   :  { %v8534_v16 = vadd.f32 %v8533_v13, %v8459_v10 }
0x1b4e   :  { %v8536_v33 = vmax.f32 %v8532_v8, 0.0 }
0x1b4f   :  { %v8537_v19 = vmax.f32 %v8534_v16, 0.0 }
0x1b51   :  { %8641 = vmatprep.mubr.f32.mxu1 %v8537_v19 }
0x1b52   :  { %8642 = vmatmul.mubr.f32.vlgmr.msra.gmra.mrb[138].mxu1 %v8536_v33 }
0x1b53   :  { %11337 = vmatprep.mubr.msk.f32.mxu1 %vm13040_vm5, %v13041_v57  ;;  %12120 = vmatpush3.bf16.msra.mxu1 %v12119_v14  ;;  %v8746_v57 = vld [vmem:[%s13217_s7 + $0x20] sm:$0xff] }
0x1b54   :  { %12121 = vmatprep.subr.bf16.mxu1 %v13039_v56  ;;  %v12125_v25 = vpack.c.bf16 %v8747_v15, %v8746_v57 }
0x1b57   :  { %12123 = vmatpush3.bf16.msra.mxu1 %v12122_v11 }
0x1b58   :  { %12124 = vmatprep.subr.bf16.mxu1 %v13039_v56 }
0x1b5b   :  { %12126 = vmatpush3.bf16.msra.mxu1 %v12125_v25 }
0x1b5c   :  { %12127 = vmatprep.subr.bf16.mxu1 %v13039_v56 }
0x1b5f   :  { %12129 = vmatpush3.bf16.msra.mxu1 %v12128_v42 }
0x1c25   :  { %v9991_v30 = vpop.f32.mrb[138].mxu1 }
0x1c26   :  { %v9992_v31 = vpop.f32.mrb[139].mxu1 }
0x1c27   :  { %v9993_v34 = vadd.f32 %v9992_v31, %v9991_v30 }
0x1c29   :  { %v8644_v36 = vadd.f32 %v9993_v34, %v9261_v18 }
0x1c2b   :  { %v8647_v37 = vmax.f32 %v8644_v36, 0.0 }
0x1c2d   :  { %11319 = vmatmul.mubr.f32.vlgmr.msra.gmra.mrb[98].mxu0 %v8647_v37 }
0x1d00   :  { %v8737_v48 = vpop.f32.mrb[98].mxu0 }
0x1d01   :  { %v8738_v49 = vadd.f32 %v9262_v43, %v8737_v48  ;;  %v11320_v21 = vpop.f32.mrb[99].mxu0 }
0x1d03   :  { %v8741_v23 = vmax.f32 %v8738_v49, 0.0 }
0x1d05   :  { %11338 = vmatmul.mubr.msk.f32.vlgmr.msra.gmra.mrb[140].mxu1 %vm2579_vm2, %v8741_v23 }
0x1dd8   :  { %v8826_v56 = vpop.f32.mrb[140].mxu1 }
0x1dd9   :  { %v8827_v45 = vadd.f32 %v9263_v22, %v8826_v56  ;;  %v11339_v50 = vpop.f32.mrb[141].mxu1 }
0x1ddb   :  { %8831 = vst.msk [vmem:[#allocation38] sm:$0x3] %vm8830_vm8, %v8827_v45 }
0x1ddc   :  { %12939 = shalt.err (!%p12936_p12)
}
0x1ddd   :  { %s12940_s7 = scalar_lea.hbm %s13227_s23, 32 }
0x1dde   :  { %p12941_p13 = scmp.ne.s32.totalorder %s13227_s23, %s12940_s7  ;;  %p12944_p0 = scmp.lt.u32.totalorder %s12940_s7, %s13227_s23 }
0x1de0   :  { %p12946_p1 = pnand %p12944_p0, %p12941_p13 }
0x1de2   :  { %12949 = shalt.err (!%p12946_p1)
}
0x1de3   :  { %8841 = dma.vmem_to_hbm [thread:$0]  %s8839_s15, 32, %s13227_s23, [#allocation5]  }
0x1de4   :  { %12974 = dma.done.wait [#allocation5], 32  }
0x1de5   :  { %12975 = vsyncadd [#allocation5], 4294967264 }
0x1de6   :  { %8845 = vsyncpa [#allocation4], 1 }
0x1de7   :  { %8846 = vsyncpa [#allocation7], 1 }
0x1de8   :  { %8847 = vsyncpa [#allocation10], 1 }
0x1de9   :  { %8848 = vsyncpa [#allocation13], 1 }
0x1dea   :  { %8849 = vsyncpa [#allocation16], 1 }
0x1deb   :  { %8850 = vsyncpa [#allocation19], 1 }
0x1dec   :  { %8851 = vsyncpa [#allocation22], 1 }
0x1ded   :  { %8852 = vsyncpa [#allocation25], 1 }
0x1dee   :  { %8853 = vsyncpa [#allocation28], 1 }
0x1def   :  { %8854 = vsyncpa [#allocation31], 1 }
0x1df0   :  { %8855 = vsyncpa [#allocation34], 1 }
0x1df1   :  { %8856 = vsyncpa [#allocation37], 1 }
0x1df2   :  { %8857 = vsyncpa [#allocation5], 1 }

</bundles_post_ra>
